<compile_context>
chip_gen: v6e
topology: v6e:2x2x1
jax: 0.10.0
libtpu: 0.0.40
codegen_flags: <defaults>
</compile_context>

<pallas_src>
from functools import partial

import jax
import jax.numpy as jnp
from jax.experimental import pallas as pl
from jax.experimental.pallas import tpu as pltpu


# ----------------------------------------------------------------------------
# Fused SPPF kernel (cv1 + 3x max-pool + concat + cv2), one batch element/step
# ----------------------------------------------------------------------------

def _sppf_fused_kernel(x_ref, w1_ref, b1_ref, w2_ref, b2_ref, o_ref,
                       pad_ref, cat_ref, *, H, W, C1, c_, c2, k):
    """x_ref : (1, H, W, C1)    bf16   raw NHWC input image
       w1_ref: (C1, c_)         bf16   cv1 weight (BN folded)
       b1_ref: (1, c_)          f32    cv1 bias   (BN folded)
       w2_ref: (4*c_, c2)       bf16   cv2 weight (BN folded)
       b2_ref: (1, c2)          f32    cv2 bias   (BN folded)
       o_ref : (1, H, W, c2)    f32    NHWC output
       pad_ref: (H+2p, W+2p, c_) f32   VMEM scratch, -inf padded pool buffer
       cat_ref: (H*W, 4*c_)     bf16   VMEM scratch, concat block for cv2
    """
    p = k // 2
    HW = H * W
    Wp = W + 2 * p

    def silu(v):
        # SiLU in f32; approximate reciprocal goes to the EUP slot (free-ish).
        return v * pl.reciprocal(1.0 + jnp.exp(-v), approx=True)

    # ---- cv1: 1x1 conv + BN + SiLU (bf16 MXU operands, f32 accumulate) ----
    x = x_ref[0].reshape(HW, C1)                                   # bf16
    x1 = silu(jnp.dot(x, w1_ref[...], preferred_element_type=jnp.float32)
              + b1_ref[...])                                       # (HW, c_) f32
    cat_ref[:, 0:c_] = x1.astype(jnp.bfloat16)

    # ---- -inf border strips (interior is overwritten by every pool) ----
    pad_ref[0:p, :, :] = jnp.full((p, Wp, c_), -jnp.inf, jnp.float32)
    pad_ref[p + H:p + H + p, :, :] = jnp.full((p, Wp, c_), -jnp.inf, jnp.float32)
    pad_ref[p:p + H, 0:p, :] = jnp.full((H, p, c_), -jnp.inf, jnp.float32)
    pad_ref[p:p + H, p + W:p + W + p, :] = jnp.full((H, p, c_), -jnp.inf,
                                                    jnp.float32)

    def pool(v):
        """k x k max pool, stride 1, 'same' (separable: rows then columns)."""
        pad_ref[p:p + H, p:p + W, :] = v
        r = pad_ref[0:H, :, :]                  # outer-axis slices: cheap
        for i in range(1, k):
            r = jnp.maximum(r, pad_ref[i:i + H, :, :])
        # TODO(synk): the sublane-offset column slices below could be replaced
        # by pltpu.roll on the (idle) XLU; kept as slices for lowering safety.
        o = r[:, 0:W, :]
        for j in range(1, k):
            o = jnp.maximum(o, r[:, j:j + W, :])
        return o                                # (H, W, c_) f32

    x1_hwc = x1.reshape(H, W, c_)
    y1 = pool(x1_hwc)
    cat_ref[:, c_:2 * c_] = y1.reshape(HW, c_).astype(jnp.bfloat16)
    y2 = pool(y1)
    cat_ref[:, 2 * c_:3 * c_] = y2.reshape(HW, c_).astype(jnp.bfloat16)
    y3 = pool(y2)
    cat_ref[:, 3 * c_:4 * c_] = y3.reshape(HW, c_).astype(jnp.bfloat16)

    # ---- cv2 on concat([x1, y1, y2, y3]): ONE long-K MXU matmul + SiLU ----
    out = silu(jnp.dot(cat_ref[...], w2_ref[...],
                       preferred_element_type=jnp.float32) + b2_ref[...])
    o_ref[0] = out.reshape(H, W, c2).astype(o_ref.dtype)


# ----------------------------------------------------------------------------
# Wrapper
# ----------------------------------------------------------------------------

def _sppf_vmem_bytes(H, W, C1, c_, c2, k):
    """Footprint-based VMEM limit (x2 for double buffering) + headroom."""
    p = k // 2
    x_blk = H * W * C1 * 2                         # bf16 input block
    o_blk = H * W * c2 * 4                         # f32 output block
    weights = C1 * c_ * 2 + 4 * c_ * c2 * 2 + (c_ + c2) * 4
    pad = (H + 2 * p) * (W + 2 * p) * c_ * 4
    cat = H * W * 4 * c_ * 2
    need = 2 * (x_blk + o_blk + weights) + pad + cat
    return int(1.5 * need) + (4 << 20)


def sppf_fused(x_nhwc_bf16, w1_bf16, b1, w2_bf16, b2, k=5):
    """x: (N,H,W,C1) bf16, w1: (C1,c_) bf16, w2: (4*c_,c2) bf16, b*: f32."""
    N, H, W, C1 = x_nhwc_bf16.shape
    c_ = w1_bf16.shape[1]
    c2 = w2_bf16.shape[1]
    p = k // 2
    kern = partial(_sppf_fused_kernel, H=H, W=W, C1=C1, c_=c_, c2=c2, k=k)
    return pl.pallas_call(
        kern,
        out_shape=jax.ShapeDtypeStruct((N, H, W, c2), jnp.float32),
        grid=(N,),
        in_specs=[
            pl.BlockSpec((1, H, W, C1), lambda n: (n, 0, 0, 0)),
            # Resident (constant-index) weights / biases.
            # TODO(synk): pipeline_mode=pl.Buffered(1) to drop the redundant
            # second buffer for these on v7x once verified on hardware.
            pl.BlockSpec((C1, c_), lambda n: (0, 0)),
            pl.BlockSpec((1, c_), lambda n: (0, 0)),
            pl.BlockSpec((4 * c_, c2), lambda n: (0, 0)),
            pl.BlockSpec((1, c2), lambda n: (0, 0)),
        ],
        out_specs=pl.BlockSpec((1, H, W, c2), lambda n: (n, 0, 0, 0)),
        scratch_shapes=[
            pltpu.VMEM((H + 2 * p, W + 2 * p, c_), jnp.float32),
            pltpu.VMEM((H * W, 4 * c_), jnp.bfloat16),
        ],
        compiler_params=pltpu.CompilerParams(
            dimension_semantics=("parallel",),
            vmem_limit_bytes=_sppf_vmem_bytes(H, W, C1, c_, c2, k)),
    )(x_nhwc_bf16, w1_bf16, b1.reshape(1, c_), w2_bf16, b2.reshape(1, c2))


# ----------------------------------------------------------------------------
# Parameter initialization (deterministic, BN folded into conv weight/bias)
# ----------------------------------------------------------------------------

def init_conv1x1(key, cin, cout):
    kw_, kg, kb, km, kv = jax.random.split(key, 5)
    w = 0.1 * jax.random.normal(kw_, (cin, cout), jnp.float32)
    gamma = 1.0 + 0.1 * jax.random.normal(kg, (cout,), jnp.float32)
    beta = 0.1 * jax.random.normal(kb, (cout,), jnp.float32)
    mean = 0.1 * jax.random.normal(km, (cout,), jnp.float32)
    var = 0.5 + 0.1 * jnp.abs(jax.random.normal(kv, (cout,), jnp.float32))
    eps = 1e-3
    scale = gamma / jnp.sqrt(var + eps)
    return w * scale, beta - mean * scale          # effective weight, bias


def init_sppf_params(key, c1, c2):
    c_ = c1 // 2
    k1, k2 = jax.random.split(key)
    return {
        "cv1": init_conv1x1(k1, c1, c_),
        "cv2": init_conv1x1(k2, 4 * c_, c2),
    }


# ----------------------------------------------------------------------------
# SPPF forward (Pallas)
# ----------------------------------------------------------------------------

def sppf_forward(x_nchw, params, k=5):
    w1, b1 = params["cv1"]
    w2, b2 = params["cv2"]
    # NCHW -> NHWC; the bf16 cast fuses into the same XLA layout pass, halving
    # the kernel's input DMA bytes (biggest relative win on v5e/v6e).
    x = jnp.transpose(x_nchw, (0, 2, 3, 1)).astype(jnp.bfloat16)
    out = sppf_fused(x, w1.astype(jnp.bfloat16), b1,
                     w2.astype(jnp.bfloat16), b2, k=k)
    # TODO(synk): emit a lane-dense (N, c2, H*W) block directly from the kernel
    # (in-kernel transpose) to drop this extra XLA layout pass when c2 >= 128.
    return jnp.transpose(out, (0, 3, 1, 2))                 # NHWC -> NCHW


# ----------------------------------------------------------------------------
# Pure-JAX f32 reference (for correctness check)
# ----------------------------------------------------------------------------

def _ref_conv1x1(x, w, b):
    y = jax.lax.conv_general_dilated(
        x, w.reshape(1, 1, *w.shape), (1, 1), ((0, 0), (0, 0)),
        dimension_numbers=("NHWC", "HWIO", "NHWC"))
    y = y + b
    return y * jax.nn.sigmoid(y)


def _ref_pool(x, k):
    p = k // 2
    return jax.lax.reduce_window(
        x, -jnp.inf, jax.lax.max, (1, k, k, 1), (1, 1, 1, 1),
        ((0, 0), (p, p), (p, p), (0, 0)))


def sppf_reference(x_nchw, params, k=5):
    x = jnp.transpose(x_nchw, (0, 2, 3, 1))
    x1 = _ref_conv1x1(x, *params["cv1"])
    y1 = _ref_pool(x1, k)
    y2 = _ref_pool(y1, k)
    y3 = _ref_pool(y2, k)
    cat = jnp.concatenate([x1, y1, y2, y3], axis=-1)
    out = _ref_conv1x1(cat, *params["cv2"])
    return jnp.transpose(out, (0, 3, 1, 2))


# ----------------------------------------------------------------------------
# Main
# ----------------------------------------------------------------------------

if __name__ == "__main__":
    key = jax.random.PRNGKey(0)
    kx, kp = jax.random.split(key)

    # Small test shapes; real SPPF runs c_>=256, c2>=512 (lane-dense channels).
    N, C1, C2, H, W = 2, 16, 16, 16, 16          # c_ = C1 // 2 = 8
    x = jax.random.normal(kx, (N, C1, H, W), jnp.float32)   # NCHW like PyTorch
    params = init_sppf_params(kp, C1, C2)

    out = jax.block_until_ready(sppf_forward(x, params))
    ref = jax.block_until_ready(sppf_reference(x, params))

    assert out.shape == (N, C2, H, W), out.shape
    max_err = float(jnp.max(jnp.abs(out - ref)))
    assert jnp.allclose(out, ref, rtol=5e-2, atol=5e-2), max_err

    print("KERNEL_OK")
</pallas_src>

<mosaic_0001>
module attributes {stable_mosaic.version = 11 : i64} {
  func.func @_sppf_fused_kernel(%arg0: i32, %arg1: memref<1x16x16x16xbf16, #tpu.memory_space<vmem>>, %arg2: memref<16x8xbf16, #tpu.memory_space<vmem>>, %arg3: memref<1x8xf32, #tpu.memory_space<vmem>>, %arg4: memref<32x16xbf16, #tpu.memory_space<vmem>>, %arg5: memref<1x16xf32, #tpu.memory_space<vmem>>, %arg6: memref<1x16x16x16xf32, #tpu.memory_space<vmem>>, %arg7: memref<20x20x8xf32, #tpu.memory_space<vmem>>, %arg8: memref<256x32xbf16, #tpu.memory_space<vmem>>) attributes {dimension_semantics = [#tpu.dimension_semantics<parallel>], iteration_bounds = array<i64: 2>, scalar_prefetch = 0 : i64, scratch_operands = 2 : i64, tpu.core_type = #tpu.core_type<tc>, window_params = [{transform_indices = @transform_0, window_bounds = array<i64: 1, 16, 16, 16>}, {pipeline_mode = #tpu.pipeline_mode<synchronous>, transform_indices = @transform_1, window_bounds = array<i64: 16, 8>}, {pipeline_mode = #tpu.pipeline_mode<synchronous>, transform_indices = @transform_2, window_bounds = array<i64: 1, 8>}, {pipeline_mode = #tpu.pipeline_mode<synchronous>, transform_indices = @transform_3, window_bounds = array<i64: 32, 16>}, {pipeline_mode = #tpu.pipeline_mode<synchronous>, transform_indices = @transform_4, window_bounds = array<i64: 1, 16>}, {transform_indices = @transform_5, window_bounds = array<i64: 1, 16, 16, 16>}]} {
    %c0 = arith.constant 0 : index
    %c0_0 = arith.constant 0 : index
    %c0_1 = arith.constant 0 : index
    %c0_2 = arith.constant 0 : index
    %0 = vector.load %arg1[%c0, %c0_0, %c0_1, %c0_2] : memref<1x16x16x16xbf16, #tpu.memory_space<vmem>>, vector<1x16x16x16xbf16>
    %1 = vector.shape_cast %0 : vector<1x16x16x16xbf16> to vector<16x16x16xbf16>
    %2 = vector.shape_cast %1 : vector<16x16x16xbf16> to vector<256x16xbf16>
    %c0_3 = arith.constant 0 : index
    %c0_4 = arith.constant 0 : index
    %3 = vector.load %arg2[%c0_3, %c0_4] : memref<16x8xbf16, #tpu.memory_space<vmem>>, vector<16x8xbf16>
    %cst = arith.constant dense<0.000000e+00> : vector<256x8xf32>
    %4 = tpu.matmul %2, %3, %cst {dimension_numbers = #tpu.dot_dimension_numbers<[1], [0], [0], [1], [0, 0, 1, 1], [], []>} : vector<256x16xbf16>, vector<16x8xbf16>, vector<256x8xf32> -> vector<256x8xf32>
    %c0_5 = arith.constant 0 : index
    %c0_6 = arith.constant 0 : index
    %5 = vector.load %arg3[%c0_5, %c0_6] : memref<1x8xf32, #tpu.memory_space<vmem>>, vector<1x8xf32>
    %6 = vector.broadcast %5 : vector<1x8xf32> to vector<256x8xf32>
    %7 = arith.addf %4, %6 : vector<256x8xf32>
    %cst_7 = arith.constant 0.000000e+00 : f32
    %8 = vector.broadcast %cst_7 : f32 to vector<256x8xf32>
    %9 = arith.subf %8, %7 : vector<256x8xf32>
    %10 = math.exp %9 : vector<256x8xf32>
    %cst_8 = arith.constant 1.000000e+00 : f32
    %11 = vector.broadcast %cst_8 : f32 to vector<256x8xf32>
    %12 = arith.addf %11, %10 : vector<256x8xf32>
    %13 = tpu.reciprocal %12 {approx = true} : vector<256x8xf32> -> vector<256x8xf32>
    %14 = arith.mulf %7, %13 : vector<256x8xf32>
    %15 = arith.truncf %14 : vector<256x8xf32> to vector<256x8xbf16>
    %c0_9 = arith.constant 0 : index
    %c0_10 = arith.constant 0 : index
    %16 = vector.load %arg8[%c0_9, %c0_10] : memref<256x32xbf16, #tpu.memory_space<vmem>>, vector<256x8xbf16>
    tpu.vector_store %arg8[%c0_9, %c0_10], %15 {strides = array<i32>} : memref<256x32xbf16, #tpu.memory_space<vmem>>, vector<256x8xbf16>,
    %cst_11 = arith.constant 0xFF800000 : f32
    %17 = vector.broadcast %cst_11 : f32 to vector<2x20x8xf32>
    %c0_12 = arith.constant 0 : index
    %c0_13 = arith.constant 0 : index
    %c0_14 = arith.constant 0 : index
    %18 = vector.load %arg7[%c0_12, %c0_13, %c0_14] : memref<20x20x8xf32, #tpu.memory_space<vmem>>, vector<2x20x8xf32>
    tpu.vector_store %arg7[%c0_12, %c0_13, %c0_14], %17 {strides = array<i32>} : memref<20x20x8xf32, #tpu.memory_space<vmem>>, vector<2x20x8xf32>,
    %cst_15 = arith.constant 0xFF800000 : f32
    %19 = vector.broadcast %cst_15 : f32 to vector<2x20x8xf32>
    %c18 = arith.constant 18 : index
    %c0_16 = arith.constant 0 : index
    %c0_17 = arith.constant 0 : index
    %20 = vector.load %arg7[%c18, %c0_16, %c0_17] : memref<20x20x8xf32, #tpu.memory_space<vmem>>, vector<2x20x8xf32>
    tpu.vector_store %arg7[%c18, %c0_16, %c0_17], %19 {strides = array<i32>} : memref<20x20x8xf32, #tpu.memory_space<vmem>>, vector<2x20x8xf32>,
    %cst_18 = arith.constant 0xFF800000 : f32
    %21 = vector.broadcast %cst_18 : f32 to vector<16x2x8xf32>
    %c2 = arith.constant 2 : index
    %c0_19 = arith.constant 0 : index
    %c0_20 = arith.constant 0 : index
    %22 = vector.load %arg7[%c2, %c0_19, %c0_20] : memref<20x20x8xf32, #tpu.memory_space<vmem>>, vector<16x2x8xf32>
    tpu.vector_store %arg7[%c2, %c0_19, %c0_20], %21 {strides = array<i32>} : memref<20x20x8xf32, #tpu.memory_space<vmem>>, vector<16x2x8xf32>,
    %cst_21 = arith.constant 0xFF800000 : f32
    %23 = vector.broadcast %cst_21 : f32 to vector<16x2x8xf32>
    %c2_22 = arith.constant 2 : index
    %c18_23 = arith.constant 18 : index
    %c0_24 = arith.constant 0 : index
    %24 = vector.load %arg7[%c2_22, %c18_23, %c0_24] : memref<20x20x8xf32, #tpu.memory_space<vmem>>, vector<16x2x8xf32>
    tpu.vector_store %arg7[%c2_22, %c18_23, %c0_24], %23 {strides = array<i32>} : memref<20x20x8xf32, #tpu.memory_space<vmem>>, vector<16x2x8xf32>,
    %25 = vector.shape_cast %14 : vector<256x8xf32> to vector<16x16x8xf32>
    %c2_25 = arith.constant 2 : index
    %c2_26 = arith.constant 2 : index
    %c0_27 = arith.constant 0 : index
    %26 = vector.load %arg7[%c2_25, %c2_26, %c0_27] : memref<20x20x8xf32, #tpu.memory_space<vmem>>, vector<16x16x8xf32>
    tpu.vector_store %arg7[%c2_25, %c2_26, %c0_27], %25 {strides = array<i32>} : memref<20x20x8xf32, #tpu.memory_space<vmem>>, vector<16x16x8xf32>,
    %c0_28 = arith.constant 0 : index
    %c0_29 = arith.constant 0 : index
    %c0_30 = arith.constant 0 : index
    %27 = vector.load %arg7[%c0_28, %c0_29, %c0_30] : memref<20x20x8xf32, #tpu.memory_space<vmem>>, vector<16x20x8xf32>
    %c1 = arith.constant 1 : index
    %c0_31 = arith.constant 0 : index
    %c0_32 = arith.constant 0 : index
    %28 = vector.load %arg7[%c1, %c0_31, %c0_32] : memref<20x20x8xf32, #tpu.memory_space<vmem>>, vector<16x20x8xf32>
    %29 = arith.maximumf %27, %28 : vector<16x20x8xf32>
    %c2_33 = arith.constant 2 : index
    %c0_34 = arith.constant 0 : index
    %c0_35 = arith.constant 0 : index
    %30 = vector.load %arg7[%c2_33, %c0_34, %c0_35] : memref<20x20x8xf32, #tpu.memory_space<vmem>>, vector<16x20x8xf32>
    %31 = arith.maximumf %29, %30 : vector<16x20x8xf32>
    %c3 = arith.constant 3 : index
    %c0_36 = arith.constant 0 : index
    %c0_37 = arith.constant 0 : index
    %32 = vector.load %arg7[%c3, %c0_36, %c0_37] : memref<20x20x8xf32, #tpu.memory_space<vmem>>, vector<16x20x8xf32>
    %33 = arith.maximumf %31, %32 : vector<16x20x8xf32>
    %c4 = arith.constant 4 : index
    %c0_38 = arith.constant 0 : index
    %c0_39 = arith.constant 0 : index
    %34 = vector.load %arg7[%c4, %c0_38, %c0_39] : memref<20x20x8xf32, #tpu.memory_space<vmem>>, vector<16x20x8xf32>
    %35 = arith.maximumf %33, %34 : vector<16x20x8xf32>
    %36 = vector.extract_strided_slice %35 {offsets = [0, 0, 0], sizes = [16, 16, 8], strides = [1, 1, 1]} : vector<16x20x8xf32> to vector<16x16x8xf32>
    %37 = vector.extract_strided_slice %35 {offsets = [0, 1, 0], sizes = [16, 16, 8], strides = [1, 1, 1]} : vector<16x20x8xf32> to vector<16x16x8xf32>
    %38 = arith.maximumf %36, %37 : vector<16x16x8xf32>
    %39 = vector.extract_strided_slice %35 {offsets = [0, 2, 0], sizes = [16, 16, 8], strides = [1, 1, 1]} : vector<16x20x8xf32> to vector<16x16x8xf32>
    %40 = arith.maximumf %38, %39 : vector<16x16x8xf32>
    %41 = vector.extract_strided_slice %35 {offsets = [0, 3, 0], sizes = [16, 16, 8], strides = [1, 1, 1]} : vector<16x20x8xf32> to vector<16x16x8xf32>
    %42 = arith.maximumf %40, %41 : vector<16x16x8xf32>
    %43 = vector.extract_strided_slice %35 {offsets = [0, 4, 0], sizes = [16, 16, 8], strides = [1, 1, 1]} : vector<16x20x8xf32> to vector<16x16x8xf32>
    %44 = arith.maximumf %42, %43 : vector<16x16x8xf32>
    %45 = vector.shape_cast %44 : vector<16x16x8xf32> to vector<256x8xf32>
    %46 = arith.truncf %45 : vector<256x8xf32> to vector<256x8xbf16>
    %c0_40 = arith.constant 0 : index
    %c8 = arith.constant 8 : index
    %47 = vector.load %arg8[%c0_40, %c8] : memref<256x32xbf16, #tpu.memory_space<vmem>>, vector<256x8xbf16>
    tpu.vector_store %arg8[%c0_40, %c8], %46 {strides = array<i32>} : memref<256x32xbf16, #tpu.memory_space<vmem>>, vector<256x8xbf16>,
    %c2_41 = arith.constant 2 : index
    %c2_42 = arith.constant 2 : index
    %c0_43 = arith.constant 0 : index
    %48 = vector.load %arg7[%c2_41, %c2_42, %c0_43] : memref<20x20x8xf32, #tpu.memory_space<vmem>>, vector<16x16x8xf32>
    tpu.vector_store %arg7[%c2_41, %c2_42, %c0_43], %44 {strides = array<i32>} : memref<20x20x8xf32, #tpu.memory_space<vmem>>, vector<16x16x8xf32>,
    %c0_44 = arith.constant 0 : index
    %c0_45 = arith.constant 0 : index
    %c0_46 = arith.constant 0 : index
    %49 = vector.load %arg7[%c0_44, %c0_45, %c0_46] : memref<20x20x8xf32, #tpu.memory_space<vmem>>, vector<16x20x8xf32>
    %c1_47 = arith.constant 1 : index
    %c0_48 = arith.constant 0 : index
    %c0_49 = arith.constant 0 : index
    %50 = vector.load %arg7[%c1_47, %c0_48, %c0_49] : memref<20x20x8xf32, #tpu.memory_space<vmem>>, vector<16x20x8xf32>
    %51 = arith.maximumf %49, %50 : vector<16x20x8xf32>
    %c2_50 = arith.constant 2 : index
    %c0_51 = arith.constant 0 : index
    %c0_52 = arith.constant 0 : index
    %52 = vector.load %arg7[%c2_50, %c0_51, %c0_52] : memref<20x20x8xf32, #tpu.memory_space<vmem>>, vector<16x20x8xf32>
    %53 = arith.maximumf %51, %52 : vector<16x20x8xf32>
    %c3_53 = arith.constant 3 : index
    %c0_54 = arith.constant 0 : index
    %c0_55 = arith.constant 0 : index
    %54 = vector.load %arg7[%c3_53, %c0_54, %c0_55] : memref<20x20x8xf32, #tpu.memory_space<vmem>>, vector<16x20x8xf32>
    %55 = arith.maximumf %53, %54 : vector<16x20x8xf32>
    %c4_56 = arith.constant 4 : index
    %c0_57 = arith.constant 0 : index
    %c0_58 = arith.constant 0 : index
    %56 = vector.load %arg7[%c4_56, %c0_57, %c0_58] : memref<20x20x8xf32, #tpu.memory_space<vmem>>, vector<16x20x8xf32>
    %57 = arith.maximumf %55, %56 : vector<16x20x8xf32>
    %58 = vector.extract_strided_slice %57 {offsets = [0, 0, 0], sizes = [16, 16, 8], strides = [1, 1, 1]} : vector<16x20x8xf32> to vector<16x16x8xf32>
    %59 = vector.extract_strided_slice %57 {offsets = [0, 1, 0], sizes = [16, 16, 8], strides = [1, 1, 1]} : vector<16x20x8xf32> to vector<16x16x8xf32>
    %60 = arith.maximumf %58, %59 : vector<16x16x8xf32>
    %61 = vector.extract_strided_slice %57 {offsets = [0, 2, 0], sizes = [16, 16, 8], strides = [1, 1, 1]} : vector<16x20x8xf32> to vector<16x16x8xf32>
    %62 = arith.maximumf %60, %61 : vector<16x16x8xf32>
    %63 = vector.extract_strided_slice %57 {offsets = [0, 3, 0], sizes = [16, 16, 8], strides = [1, 1, 1]} : vector<16x20x8xf32> to vector<16x16x8xf32>
    %64 = arith.maximumf %62, %63 : vector<16x16x8xf32>
    %65 = vector.extract_strided_slice %57 {offsets = [0, 4, 0], sizes = [16, 16, 8], strides = [1, 1, 1]} : vector<16x20x8xf32> to vector<16x16x8xf32>
    %66 = arith.maximumf %64, %65 : vector<16x16x8xf32>
    %67 = vector.shape_cast %66 : vector<16x16x8xf32> to vector<256x8xf32>
    %68 = arith.truncf %67 : vector<256x8xf32> to vector<256x8xbf16>
    %c0_59 = arith.constant 0 : index
    %c16 = arith.constant 16 : index
    %69 = vector.load %arg8[%c0_59, %c16] : memref<256x32xbf16, #tpu.memory_space<vmem>>, vector<256x8xbf16>
    tpu.vector_store %arg8[%c0_59, %c16], %68 {strides = array<i32>} : memref<256x32xbf16, #tpu.memory_space<vmem>>, vector<256x8xbf16>,
    %c2_60 = arith.constant 2 : index
    %c2_61 = arith.constant 2 : index
    %c0_62 = arith.constant 0 : index
    %70 = vector.load %arg7[%c2_60, %c2_61, %c0_62] : memref<20x20x8xf32, #tpu.memory_space<vmem>>, vector<16x16x8xf32>
    tpu.vector_store %arg7[%c2_60, %c2_61, %c0_62], %66 {strides = array<i32>} : memref<20x20x8xf32, #tpu.memory_space<vmem>>, vector<16x16x8xf32>,
    %c0_63 = arith.constant 0 : index
    %c0_64 = arith.constant 0 : index
    %c0_65 = arith.constant 0 : index
    %71 = vector.load %arg7[%c0_63, %c0_64, %c0_65] : memref<20x20x8xf32, #tpu.memory_space<vmem>>, vector<16x20x8xf32>
    %c1_66 = arith.constant 1 : index
    %c0_67 = arith.constant 0 : index
    %c0_68 = arith.constant 0 : index
    %72 = vector.load %arg7[%c1_66, %c0_67, %c0_68] : memref<20x20x8xf32, #tpu.memory_space<vmem>>, vector<16x20x8xf32>
    %73 = arith.maximumf %71, %72 : vector<16x20x8xf32>
    %c2_69 = arith.constant 2 : index
    %c0_70 = arith.constant 0 : index
    %c0_71 = arith.constant 0 : index
    %74 = vector.load %arg7[%c2_69, %c0_70, %c0_71] : memref<20x20x8xf32, #tpu.memory_space<vmem>>, vector<16x20x8xf32>
    %75 = arith.maximumf %73, %74 : vector<16x20x8xf32>
    %c3_72 = arith.constant 3 : index
    %c0_73 = arith.constant 0 : index
    %c0_74 = arith.constant 0 : index
    %76 = vector.load %arg7[%c3_72, %c0_73, %c0_74] : memref<20x20x8xf32, #tpu.memory_space<vmem>>, vector<16x20x8xf32>
    %77 = arith.maximumf %75, %76 : vector<16x20x8xf32>
    %c4_75 = arith.constant 4 : index
    %c0_76 = arith.constant 0 : index
    %c0_77 = arith.constant 0 : index
    %78 = vector.load %arg7[%c4_75, %c0_76, %c0_77] : memref<20x20x8xf32, #tpu.memory_space<vmem>>, vector<16x20x8xf32>
    %79 = arith.maximumf %77, %78 : vector<16x20x8xf32>
    %80 = vector.extract_strided_slice %79 {offsets = [0, 0, 0], sizes = [16, 16, 8], strides = [1, 1, 1]} : vector<16x20x8xf32> to vector<16x16x8xf32>
    %81 = vector.extract_strided_slice %79 {offsets = [0, 1, 0], sizes = [16, 16, 8], strides = [1, 1, 1]} : vector<16x20x8xf32> to vector<16x16x8xf32>
    %82 = arith.maximumf %80, %81 : vector<16x16x8xf32>
    %83 = vector.extract_strided_slice %79 {offsets = [0, 2, 0], sizes = [16, 16, 8], strides = [1, 1, 1]} : vector<16x20x8xf32> to vector<16x16x8xf32>
    %84 = arith.maximumf %82, %83 : vector<16x16x8xf32>
    %85 = vector.extract_strided_slice %79 {offsets = [0, 3, 0], sizes = [16, 16, 8], strides = [1, 1, 1]} : vector<16x20x8xf32> to vector<16x16x8xf32>
    %86 = arith.maximumf %84, %85 : vector<16x16x8xf32>
    %87 = vector.extract_strided_slice %79 {offsets = [0, 4, 0], sizes = [16, 16, 8], strides = [1, 1, 1]} : vector<16x20x8xf32> to vector<16x16x8xf32>
    %88 = arith.maximumf %86, %87 : vector<16x16x8xf32>
    %89 = vector.shape_cast %88 : vector<16x16x8xf32> to vector<256x8xf32>
    %90 = arith.truncf %89 : vector<256x8xf32> to vector<256x8xbf16>
    %c0_78 = arith.constant 0 : index
    %c24 = arith.constant 24 : index
    %91 = vector.load %arg8[%c0_78, %c24] : memref<256x32xbf16, #tpu.memory_space<vmem>>, vector<256x8xbf16>
    tpu.vector_store %arg8[%c0_78, %c24], %90 {strides = array<i32>} : memref<256x32xbf16, #tpu.memory_space<vmem>>, vector<256x8xbf16>,
    %c0_79 = arith.constant 0 : index
    %c0_80 = arith.constant 0 : index
    %92 = vector.load %arg8[%c0_79, %c0_80] : memref<256x32xbf16, #tpu.memory_space<vmem>>, vector<256x32xbf16>
    %c0_81 = arith.constant 0 : index
    %c0_82 = arith.constant 0 : index
    %93 = vector.load %arg4[%c0_81, %c0_82] : memref<32x16xbf16, #tpu.memory_space<vmem>>, vector<32x16xbf16>
    %cst_83 = arith.constant dense<0.000000e+00> : vector<256x16xf32>
    %94 = tpu.matmul %92, %93, %cst_83 {dimension_numbers = #tpu.dot_dimension_numbers<[1], [0], [0], [1], [0, 0, 1, 1], [], []>} : vector<256x32xbf16>, vector<32x16xbf16>, vector<256x16xf32> -> vector<256x16xf32>
    %c0_84 = arith.constant 0 : index
    %c0_85 = arith.constant 0 : index
    %95 = vector.load %arg5[%c0_84, %c0_85] : memref<1x16xf32, #tpu.memory_space<vmem>>, vector<1x16xf32>
    %96 = vector.broadcast %95 : vector<1x16xf32> to vector<256x16xf32>
    %97 = arith.addf %94, %96 : vector<256x16xf32>
    %cst_86 = arith.constant 0.000000e+00 : f32
    %98 = vector.broadcast %cst_86 : f32 to vector<256x16xf32>
    %99 = arith.subf %98, %97 : vector<256x16xf32>
    %100 = math.exp %99 : vector<256x16xf32>
    %cst_87 = arith.constant 1.000000e+00 : f32
    %101 = vector.broadcast %cst_87 : f32 to vector<256x16xf32>
    %102 = arith.addf %101, %100 : vector<256x16xf32>
    %103 = tpu.reciprocal %102 {approx = true} : vector<256x16xf32> -> vector<256x16xf32>
    %104 = arith.mulf %97, %103 : vector<256x16xf32>
    %105 = vector.shape_cast %104 : vector<256x16xf32> to vector<16x16x16xf32>
    %c0_88 = arith.constant 0 : index
    %c0_89 = arith.constant 0 : index
    %c0_90 = arith.constant 0 : index
    %c0_91 = arith.constant 0 : index
    %106 = vector.load %arg6[%c0_88, %c0_89, %c0_90, %c0_91] : memref<1x16x16x16xf32, #tpu.memory_space<vmem>>, vector<1x16x16x16xf32>
    %107 = vector.shape_cast %106 : vector<1x16x16x16xf32> to vector<16x16x16xf32>
    %108 = vector.shape_cast %105 : vector<16x16x16xf32> to vector<1x16x16x16xf32>
    tpu.vector_store %arg6[%c0_88, %c0_89, %c0_90, %c0_91], %108 {strides = array<i32>} : memref<1x16x16x16xf32, #tpu.memory_space<vmem>>, vector<1x16x16x16xf32>,
    return
  }
  func.func @transform_0(%arg0: i32) -> (i32, i32, i32, i32) {
    %c0_i32 = arith.constant 0 : i32
    %c0_i32_0 = arith.constant 0 : i32
    %c0_i32_1 = arith.constant 0 : i32
    %c0_i32_2 = arith.constant 0 : i32
    return %arg0, %c0_i32, %c0_i32_0, %c0_i32_1 : i32, i32, i32, i32
  }
  func.func @transform_1(%arg0: i32) -> (i32, i32) {
    %c0_i32 = arith.constant 0 : i32
    %c0_i32_0 = arith.constant 0 : i32
    %c0_i32_1 = arith.constant 0 : i32
    return %c0_i32, %c0_i32_0 : i32, i32
  }
  func.func @transform_2(%arg0: i32) -> (i32, i32) {
    %c0_i32 = arith.constant 0 : i32
    %c0_i32_0 = arith.constant 0 : i32
    %c0_i32_1 = arith.constant 0 : i32
    return %c0_i32, %c0_i32_0 : i32, i32
  }
  func.func @transform_3(%arg0: i32) -> (i32, i32) {
    %c0_i32 = arith.constant 0 : i32
    %c0_i32_0 = arith.constant 0 : i32
    %c0_i32_1 = arith.constant 0 : i32
    return %c0_i32, %c0_i32_0 : i32, i32
  }
  func.func @transform_4(%arg0: i32) -> (i32, i32) {
    %c0_i32 = arith.constant 0 : i32
    %c0_i32_0 = arith.constant 0 : i32
    %c0_i32_1 = arith.constant 0 : i32
    return %c0_i32, %c0_i32_0 : i32, i32
  }
  func.func @transform_5(%arg0: i32) -> (i32, i32, i32, i32) {
    %c0_i32 = arith.constant 0 : i32
    %c0_i32_0 = arith.constant 0 : i32
    %c0_i32_1 = arith.constant 0 : i32
    %c0_i32_2 = arith.constant 0 : i32
    return %arg0, %c0_i32, %c0_i32_0, %c0_i32_1 : i32, i32, i32, i32
  }
}

</mosaic_0001>

<bundles_post_ra>
// kernel: tpu_custom_call.1
= control target key start
LH: loop header
LB: loop body
LE: loop exit
PB: predicated region body
PF: predicated region fallthrough
CT: control target
= control target key end

     0   :  { %10 = vsyncpa [#allocation5], 0  ;;  %s9065_s0 = inlined_call_operand.hbm [shape: bf16[2,16,16,16], index: 0, kind: input, shape index: {}]   ;;  %s9066_s1 = inlined_call_operand.vmem [shape: bf16[16,8], index: 1, kind: input, shape index: {}]   ;;  %s9067_s2 = inlined_call_operand.vmem [shape: f32[1,8], index: 2, kind: input, shape index: {}]   ;;  %s9068_s3 = inlined_call_operand.vmem [shape: bf16[32,16], index: 3, kind: input, shape index: {}]   ;;  %s9069_s4 = inlined_call_operand.vmem [shape: f32[1,16], index: 4, kind: input, shape index: {}]   ;;  %s9070_s5 = inlined_call_operand.hbm [shape: f32[2,16,16,16], index: 5, kind: output, shape index: {}]  }
   0x1   :  { %12 = vsyncpa [#allocation5 + $0x1], 0 }
   0x2   :  { %13 = vsyncpa [#allocation6], 0 }
   0x3   :  { %15 = vsyncpa [#allocation6 + $0x1], 0  ;;  %s6509_s18 = smov 0   ;;  %s6511_s19 = smov 0  }
   0x4   :  { %s6513_s20 = smov 0   ;;  %s6515_s21 = smov 0  }
   0x5 LB: > { %s6530_s22 = sadd.s32 4294967295, %s6468_s21   ;;  %s5584_s23 = sadd.s32 4294967294, %s6468_s21   ;;  %s6468_s21 = sphi %s6515_s21, %s9085_s21   ;;  %s6464_s20 = sphi %s6513_s20, %s9084_s20   ;;  %s6460_s19 = sphi %s6511_s19, %s9083_s19   ;;  %s6456_s18 = sphi %s6509_s18, %s9082_s18  }
   0x6   : > { %s6534_s24 = sadd.s32 1, %s6468_s21   ;;  %s28_s25 = sadd.s32 1, %s6464_s20 }
   0x7   : > { %s25_s26 = ssub.s32 %s6468_s21, %s6534_s24  ;;  %p35_p0 = scmp.ne.s32.totalorder %s6464_s20, %s6460_s19 }
   0x8   : > { %p26_p1 = scmp.eq.s32.totalorder %s25_s26, 0  ;;  %p36_p2 = scmp.eq.s32.totalorder %s6468_s21, 0 }
   0x9   : > { %p41_p3 = scmp.ne.s32.totalorder %s6460_s19, %s6456_s18  ;;  %p42_p4 = scmp.eq.s32.totalorder %s6530_s22, 0 }
   0xa   : > { %s6546_s27 = scalar_select %p26_p1, %s6464_s20, %s28_s25  }
   0xb   : > { %p6548_p5 = por %p36_p2, %p35_p0  ;;  %p6552_p6 = por %p42_p4, %p41_p3 }
   0xc   : > { %p149_p7 = scmp.eq.s32.totalorder %s6530_s22, 1  ;;  %p155_p8 = scmp.eq.s32.totalorder %s5584_s23, 1 }
   0xd   : > { %s9074_s29 = scalar_select %p6552_p6, 1, 0 }
   0xe   : > { %p6042_p10 = scmp.lt.s32.totalorder %s6468_s21, 2  ;;  %p6559_p11 = por %p149_p7, %p35_p0 }
   0xf   : > { %p6563_p12 = por %p155_p8, %p41_p3  ;;  %s187_s7 = sand.u32 1, %s6464_s20  }
  0x10   : > { %s9075_s30 = scalar_select %p6559_p11, 1, 0 }
  0x11   : > { %s9076_s6 = scalar_select %p6563_p12, 1, 0 }
  0x12   : > { %s5795_s8 = sshll.u32 %s6468_s21, 11  ;;  %s5587_s9 = sshll.u32 %s187_s7, 7 }
  0x13   : > { %s6572_s12 = scalar_lea.hbm %s9065_s0, %s5795_s8  ;;  %s191_s13 = scalar_lea.vmem [#allocation4], %s5587_s9 }
  0x14   : > { %s198_s14 = sshll.u32 %s191_s13, 4  ;;  %p6576_p13 = pnand %p6042_p10, %p6548_p5  ;;  %s6580_s14 = int_to_ptr.vmem [resolvable:$true] %s198_s14 }
  0x15   : > { %s6582_s16 = scalar_lea.sflag [#allocation5], %s187_s7  ;;  %s6376_s17 = scalar_lea.hbm %s6572_s12, 2048 }
  0x16   : > { %p6377_p0 = scmp.ne.s32.totalorder %s6572_s12, %s6376_s17  ;;  %p6378_p1 = pneg %p6576_p13 }
  0x17   : > { %s6381_s26 = scalar_lea.hbm %s9065_s0, 4096  ;;  %p6382_p4 = scmp.lt.s32.totalorder %s6572_s12, %s9065_s0 }
  0x18   : > { %p6379_p2 = pnand %p6378_p1, %p6377_p0  ;;  %p6383_p5 = scmp.lt.s32.totalorder %s6381_s26, %s6376_s17 }
  0x1a   : > { %p6380_p3 = pneg %p6379_p2  ;;  %p6384_p7 = por %p6383_p5, %p6382_p4 }
  0x1c   : > { %p6385_p8 = pnand %p6384_p7, %p6380_p3 }
  0x1e   : > { %6388 = shalt.err (!%p6385_p8)
}
  0x1f   : > { %s6389_s7 = scalar_lea.vmem %s6580_s14, 2048  ;;  %s6470_s9 = smov [#allocation4]  }
  0x20   : > { %p6390_p10 = scmp.ne.s32.totalorder %s6580_s14, %s6389_s7  ;;  %s6394_s10 = sshll.u32 %s6470_s9, 4  ;;  %s6395_s10 = int_to_ptr.vmem [resolvable:$false] %s6394_s10 }
  0x21   : > { %s6396_s11 = scalar_lea.vmem %s6395_s10, 4096  ;;  %p6397_p2 = scmp.lt.s32.totalorder %s6580_s14, %s6395_s10 }
  0x22   : > { %p6392_p9 = pnand %p6390_p10, %p6378_p1  ;;  %p6398_p12 = scmp.lt.s32.totalorder %s6396_s11, %s6389_s7 }
  0x24   : > { %p6393_p0 = pneg %p6392_p9  ;;  %p6399_p11 = por %p6398_p12, %p6397_p2 }
  0x26   : > { %p6400_p6 = pnand %p6399_p11, %p6393_p0 }
  0x28   : > { %6403 = shalt.err (!%p6400_p6)
}
  0x29   : > { %s6471_s13 = smov 64   ;;  %s6472_s17 = smov 4  }
  0x2a   : > { %6037 = dma.hbm_to_vmem [thread:$0]  (!%p6576_p13), %s6572_s12, 2048, %s6580_s14, %s6582_s16, %s6471_s13, %s6471_s13, %s6472_s17  }
  0x2b   : > { %p5590_p9 = scmp.ge.s32.totalorder %s6468_s21, 1  ;;  %p206_p1 = scmp.lt.s32.totalorder %s6468_s21, 3 }
  0x2d   : > { %p207_p3 = pnand %p5590_p9, %p206_p1 }
  0x2e   : > { %s6606_s23 = sand.u32 (!%p207_p3), 1, %s6460_s19   ;;  %p9078_p6 = scmp.ne.s32.totalorder (!%p207_p3), %s9074_s29, 0 }
  0x2f   : > { %210 = sbr.rel (%p207_p3) target bundleno = 1219 (0x4c3), region = 40  ;;  %s5591_s25 = sshll.u32 (!%p207_p3), %s6606_s23, 7 }
  0x30   : > { %s213_s26 = scalar_lea.sflag (!%p207_p3), [#allocation5], %s6606_s23  ;;  %s6610_s28 = scalar_lea.vmem (!%p207_p3), [#allocation4], %s5591_s25 }
  0x34   : > { %6447 = dma.done.wait (%p9078_p6), %s213_s26, 2048  }
  0x35   : > { %6449 = vsyncadd (%p9078_p6), %s213_s26, 4294965248  ;;  %v6083_v0 = vld [vmem:[%s9066_s1] sm:$0xff]   ;;  %vm371_vm0 = vcmask 130048   ;;  %v6085_v2 = vld [vmem:[%s6610_s28 + $0x8] sm:$0xff]   ;;  %vm934_vm1 = vcmask 64512   ;;  %vm949_vm2 = vcmask 58368  }
  0x36   : > { %v6084_v1 = vld [vmem:[%s6610_s28] sm:$0xff]   ;;  %5960 = vmatprep.subr.bf16.mxu0 %v6083_v0  ;;  %v6086_v3 = vld [vmem:[%s6610_s28 + $0x10] sm:$0xff]   ;;  %v6087_v4 = vld [vmem:[%s6610_s28 + $0x18] sm:$0xff]   ;;  %v6473_v17 = vmov -inf   ;;  %vm901_vm3 = vcmask 60416   ;;  %vm1497_vm4 = vcmask 1046528  }
  0x37   : > { %5961 = vmatpush3.bf16.msra.mxu0 %v6083_v0  ;;  %5962 = vmatprep.mubr.msk.bf16.mxu0 %vm371_vm0, %v6084_v1  ;;  %v6088_v5 = vld [vmem:[%s6610_s28 + $0x20] sm:$0xff]   ;;  %v6089_v6 = vld [vmem:[%s6610_s28 + $0x28] sm:$0xff]   ;;  %v6090_v7 = vld [vmem:[%s6610_s28 + $0x30] sm:$0xff]   ;;  %935 = vst.msk [vmem:[#allocation2] sm:$0xff] %vm934_vm1, %v6473_v17  ;;  %vm1642_vm5 = vcmask 1045504   ;;  %vm1787_vm6 = vcmask 1044480  }
  0x38   : > { %v6091_v8 = vld [vmem:[%s6610_s28 + $0x38] sm:$0xff]   ;;  %v6092_v9 = vld [vmem:[%s6610_s28 + $0x40] sm:$0xff]   ;;  %v6093_v10 = vld [vmem:[%s6610_s28 + $0x48] sm:$0xff]   ;;  %936 = vst.msk [vmem:[#allocation2 + $0x8] sm:$0xff] %vm934_vm1, %v6473_v17  ;;  %vm1932_vm7 = vcmask 1043456   ;;  %s6474_s16 = smov 8  }
  0x39   : > { %v6094_v11 = vld [vmem:[%s6610_s28 + $0x50] sm:$0xff]   ;;  %v6095_v12 = vld [vmem:[%s6610_s28 + $0x58] sm:$0xff]   ;;  %v6096_v13 = vld [vmem:[%s6610_s28 + $0x60] sm:$0xff]   ;;  %938 = vst.msk [vmem:[#allocation2 + $0x18] sm:$0xff] %vm934_vm1, %v6473_v17  ;;  %s6475_s8 = smov 16   ;;  %s6476_s7 = smov 24  }
  0x3a   : > { %5963 = vmatmul.mubr.msk.bf16.vlgmr.msra.gmra.mxu0 %vm371_vm0, %v6085_v2  ;;  %v6097_v14 = vld [vmem:[%s6610_s28 + $0x68] sm:$0xff]   ;;  %v6098_v15 = vld [vmem:[%s6610_s28 + $0x70] sm:$0xff]   ;;  %v6099_v16 = vld [vmem:[%s6610_s28 + $0x78] sm:$0xff]   ;;  %939 = vst.msk [vmem:[#allocation2 + $0x20] sm:$0xff] %vm934_vm1, %v6473_v17  ;;  %vm2269_vm8 = vcmask 126016   ;;  %vm3582_vm9 = vcmask 191616  }
  0x3b   : > { %5966 = vmatprep.mubr.msk.bf16.mxu0 %vm371_vm0, %v6086_v3  ;;  %950 = vst.msk [vmem:[#allocation2 + $0x30] sm:$0x3] %vm949_vm2, %v6473_v17  ;;  %951 = vst.msk [vmem:[#allocation2 + $0x48] sm:$0x3] %vm949_vm2, %v6473_v17  ;;  %v6698_v18 = vld [vmem:[%s9067_s2] ss:$0 sm:$0xff] }
  0x3c   : > { %952 = vst.msk [vmem:[#allocation2 + $0x60] sm:$0x3] %vm949_vm2, %v6473_v17  ;;  %953 = vst.msk [vmem:[#allocation2 + $0x78] sm:$0x3] %vm949_vm2, %v6473_v17  ;;  %vm4895_vm10 = vcmask 257216   ;;  %vm5063_vm11 = vcmask 261120  }
  0x3d   : > { %942 = vst.msk [vmem:[#allocation2 + $0x1b0] sm:$0xff] %vm934_vm1, %v6473_v17  ;;  %943 = vst.msk [vmem:[#allocation2 + $0x1b8] sm:$0xff] %vm934_vm1, %v6473_v17  ;;  %s5592_s26 = sshll.u32 %s6606_s23, 8  ;;  %s5924_s12 = sshll.u32 %s6530_s22, 12 }
  0x3e   : > { %945 = vst.msk [vmem:[#allocation2 + $0x1c8] sm:$0xff] %vm934_vm1, %v6473_v17  ;;  %946 = vst.msk [vmem:[#allocation2 + $0x1d0] sm:$0xff] %vm934_vm1, %v6473_v17  ;;  %s8861_s28 = scalar_lea.vmem [#allocation7], %s5592_s26  ;;  %s5498_s22 = scalar_lea.sflag [#allocation6], %s6606_s23 }
  0x3f   : > { %954 = vst.msk [vmem:[#allocation2 + $0x90] sm:$0x3] %vm949_vm2, %v6473_v17  ;;  %955 = vst.msk [vmem:[#allocation2 + $0xa8] sm:$0x3] %vm949_vm2, %v6473_v17  ;;  %s5511_s14 = sshll.u32 %s8861_s28, 4  ;;  %p9079_p12 = scmp.ne.s32.totalorder %s9075_s30, 0  ;;  %s9019_s14 = int_to_ptr.vmem [resolvable:$true] %s5511_s14 }
  0x40   : > { %956 = vst.msk [vmem:[#allocation2 + $0xc0] sm:$0x3] %vm949_vm2, %v6473_v17  ;;  %957 = vst.msk [vmem:[#allocation2 + $0xd8] sm:$0x3] %vm949_vm2, %v6473_v17  ;;  %s6477_s9 = smov [#allocation7]  }
  0x41   : > { %958 = vst.msk [vmem:[#allocation2 + $0xf0] sm:$0x3] %vm949_vm2, %v6473_v17  ;;  %959 = vst.msk [vmem:[#allocation2 + $0x108] sm:$0x3] %vm949_vm2, %v6473_v17  ;;  %s6408_s10 = sshll.u32 %s6477_s9, 4  ;;  %s6409_s10 = int_to_ptr.vmem [resolvable:$false] %s6408_s10 }
  0x42   : > { %5967 = vmatmul.mubr.msk.bf16.gmra.mxu0 %vm371_vm0, %v6087_v4  ;;  %960 = vst.msk [vmem:[#allocation2 + $0x120] sm:$0x3] %vm949_vm2, %v6473_v17  ;;  %961 = vst.msk [vmem:[#allocation2 + $0x138] sm:$0x3] %vm949_vm2, %v6473_v17  ;;  %s6410_s11 = scalar_lea.vmem %s6409_s10, 8192  ;;  %p6411_p5 = scmp.lt.s32.totalorder %s9019_s14, %s6409_s10 }
  0x43   : > { %5970 = vmatprep.mubr.msk.bf16.mxu0 %vm371_vm0, %v6088_v5  ;;  %962 = vst.msk [vmem:[#allocation2 + $0x150] sm:$0x3] %vm949_vm2, %v6473_v17  ;;  %963 = vst.msk [vmem:[#allocation2 + $0x168] sm:$0x3] %vm949_vm2, %v6473_v17 }
  0x44   : > { %964 = vst.msk [vmem:[#allocation2 + $0x180] sm:$0x3] %vm949_vm2, %v6473_v17  ;;  %965 = vst.msk [vmem:[#allocation2 + $0x198] sm:$0x3] %vm949_vm2, %v6473_v17 }
  0x45   : > { %966 = vst.msk [vmem:[#allocation2 + $0x42] sm:$0x3] %vm949_vm2, %v6473_v17  ;;  %967 = vst.msk [vmem:[#allocation2 + $0x5a] sm:$0x3] %vm949_vm2, %v6473_v17 }
  0x46   : > { %968 = vst.msk [vmem:[#allocation2 + $0x72] sm:$0x3] %vm949_vm2, %v6473_v17  ;;  %969 = vst.msk [vmem:[#allocation2 + $0x8a] sm:$0x3] %vm949_vm2, %v6473_v17 }
  0x47   : > { %970 = vst.msk [vmem:[#allocation2 + $0xa2] sm:$0x3] %vm949_vm2, %v6473_v17  ;;  %971 = vst.msk [vmem:[#allocation2 + $0xba] sm:$0x3] %vm949_vm2, %v6473_v17 }
  0x48   : > { %972 = vst.msk [vmem:[#allocation2 + $0xd2] sm:$0x3] %vm949_vm2, %v6473_v17  ;;  %973 = vst.msk [vmem:[#allocation2 + $0xea] sm:$0x3] %vm949_vm2, %v6473_v17 }
  0x49   : > { %974 = vst.msk [vmem:[#allocation2 + $0x102] sm:$0x3] %vm949_vm2, %v6473_v17  ;;  %975 = vst.msk [vmem:[#allocation2 + $0x11a] sm:$0x3] %vm949_vm2, %v6473_v17 }
  0x4a   : > { %5971 = vmatmul.mubr.msk.bf16.gmra.mxu0 %vm371_vm0, %v6089_v6  ;;  %976 = vst.msk [vmem:[#allocation2 + $0x132] sm:$0x3] %vm949_vm2, %v6473_v17  ;;  %977 = vst.msk [vmem:[#allocation2 + $0x14a] sm:$0x3] %vm949_vm2, %v6473_v17 }
  0x4b   : > { %5974 = vmatprep.mubr.msk.bf16.mxu0 %vm371_vm0, %v6090_v7  ;;  %978 = vst.msk [vmem:[#allocation2 + $0x162] sm:$0x3] %vm949_vm2, %v6473_v17  ;;  %979 = vst.msk [vmem:[#allocation2 + $0x17a] sm:$0x3] %vm949_vm2, %v6473_v17 }
  0x4c   : > { %980 = vst.msk [vmem:[#allocation2 + $0x192] sm:$0x3] %vm949_vm2, %v6473_v17  ;;  %981 = vst.msk [vmem:[#allocation2 + $0x1aa] sm:$0x3] %vm949_vm2, %v6473_v17 }
  0x4d   : > { %937 = vst.msk [vmem:[#allocation2 + $0x10] sm:$0xf] %vm901_vm3, %v6473_v17  ;;  %940 = vst.msk [vmem:[#allocation2 + $0x28] sm:$0xf] %vm901_vm3, %v6473_v17 }
  0x4e   : > { %944 = vst.msk [vmem:[#allocation2 + $0x1c0] sm:$0xf] %vm901_vm3, %v6473_v17  ;;  %947 = vst.msk [vmem:[#allocation2 + $0x1d8] sm:$0xf] %vm901_vm3, %v6473_v17 }
  0x52   : > { %5975 = vmatmul.mubr.msk.bf16.gmra.mxu0 %vm371_vm0, %v6091_v8 }
  0x53   : > { %5978 = vmatprep.mubr.msk.bf16.mxu0 %vm371_vm0, %v6092_v9 }
  0x5a   : > { %5979 = vmatmul.mubr.msk.bf16.gmra.mxu0 %vm371_vm0, %v6093_v10 }
  0x5b   : > { %5982 = vmatprep.mubr.msk.bf16.mxu0 %vm371_vm0, %v6094_v11 }
  0x62   : > { %5983 = vmatmul.mubr.msk.bf16.gmra.mxu0 %vm371_vm0, %v6095_v12 }
  0x63   : > { %5986 = vmatprep.mubr.msk.bf16.mxu0 %vm371_vm0, %v6096_v13 }
  0x6a   : > { %5987 = vmatmul.mubr.msk.bf16.gmra.mxu0 %vm371_vm0, %v6097_v14 }
  0x6b   : > { %5990 = vmatprep.mubr.msk.bf16.mxu0 %vm371_vm0, %v6098_v15 }
  0x72   : > { %5991 = vmatmul.mubr.msk.bf16.gmra.mxu0 %vm371_vm0, %v6099_v16 }
  0xfa   : > { %v5964_v19 = vpop.f32.mrf.mxu0 }
  0xfb   : > { %v6701_v20 = vadd.f32 %v5964_v19, %v6698_v18 }
  0xfc   : > { %v454_v21 = vpop.f32.mrf.mxu0 }
  0xfd   : > { %v583_v22 = vsub.f32 0.0, %v6701_v20  ;;  %v6705_v23 = vadd.f32 %v6698_v18, %v454_v21 }
  0xfe   : > { %v5965_v24 = vpop.f32.mrf.mxu0 }
  0xff   : > { %v617_v25 = vmul.f32 1.442695, %v583_v22  ;;  %v581_v26 = vsub.f32 0.0, %v6705_v23  ;;  %v6709_v27 = vadd.f32 %v5965_v24, %v6698_v18 }
 0x100   : > { %v457_v28 = vpop.f32.mrf.mxu0 }
 0x101   : > { %6118 = vpow2.f32 %v617_v25  ;;  %v613_v29 = vmul.f32 1.442695, %v581_v26  ;;  %v584_v30 = vsub.f32 0.0, %v6709_v27  ;;  %v6713_v31 = vadd.f32 %v6698_v18, %v457_v28  ;;  %v6759_v28 = vld [vmem:[#allocation2] sm:$0xff] }
 0x102   : > { %v5968_v32 = vpop.f32.mrf.mxu0 }
 0x103   : > { %6120 = vpow2.f32 %v613_v29  ;;  %v619_v33 = vmul.f32 1.442695, %v584_v30  ;;  %v582_v34 = vsub.f32 0.0, %v6713_v31  ;;  %v6717_v35 = vadd.f32 %v5968_v32, %v6698_v18 }
 0x104   : > { %v470_v36 = vpop.f32.mrf.mxu0 }
 0x105   : > { %6122 = vpow2.f32 %v619_v33  ;;  %v615_v37 = vmul.f32 1.442695, %v582_v34  ;;  %v587_v38 = vsub.f32 0.0, %v6717_v35  ;;  %v6721_v39 = vadd.f32 %v6698_v18, %v470_v36  ;;  %v6765_v33 = vld [vmem:[#allocation2 + $0x8] sm:$0xff]  ;;  %v6767_v34 = vld [vmem:[#allocation2 + $0x18] sm:$0xff]  ;;  %v6769_v36 = vld [vmem:[#allocation2 + $0x20] sm:$0xff] }
 0x106   : > { %v5969_v40 = vpop.f32.mrf.mxu0 }
 0x107   : > { %6124 = vpow2.f32 %v615_v37  ;;  %v625_v41 = vmul.f32 1.442695, %v587_v38  ;;  %v585_v42 = vsub.f32 0.0, %v6721_v39  ;;  %v6725_v43 = vadd.f32 %v5969_v40, %v6698_v18 }
 0x108   : > { %v473_v44 = vpop.f32.mrf.mxu0 }
 0x109   : > { %6126 = vpow2.f32 %v625_v41  ;;  %v621_v45 = vmul.f32 1.442695, %v585_v42  ;;  %v588_v46 = vsub.f32 0.0, %v6725_v43  ;;  %v6729_v47 = vadd.f32 %v6698_v18, %v473_v44  ;;  %v6771_v41 = vld [vmem:[#allocation2 + $0x10] sm:$0xf] }
 0x10a   : > { %v5972_v48 = vpop.f32.mrf.mxu0  ;;  %v6773_v42 = vld [vmem:[#allocation2 + $0x28] sm:$0xf] }
 0x10b   : > { %6128 = vpow2.f32 %v621_v45  ;;  %v627_v49 = vmul.f32 1.442695, %v588_v46  ;;  %v586_v50 = vsub.f32 0.0, %v6729_v47  ;;  %v6733_v51 = vadd.f32 %v5972_v48, %v6698_v18  ;;  %v6776_v48 = vld [vmem:[#allocation2] sm:$0xff] }
 0x10c   : > { %v486_v52 = vpop.f32.mrf.mxu0 }
 0x10d   : > { %6130 = vpow2.f32 %v627_v49  ;;  %v623_v53 = vmul.f32 1.442695, %v586_v50  ;;  %v591_v54 = vsub.f32 0.0, %v6733_v51  ;;  %v6737_v55 = vadd.f32 %v6698_v18, %v486_v52  ;;  %v6778_v49 = vld [vmem:[#allocation2 + $0x18] sm:$0xff] }
 0x10e   : > { %v6119_v56 = vpop.eup %6118  ;;  %v5973_v57 = vpop.f32.mrf.mxu0 }
 0x10f   : > { %v679_v58 = vadd.f32 1.0, %v6119_v56  ;;  %6132 = vpow2.f32 %v623_v53  ;;  %v633_v59 = vmul.f32 1.442695, %v591_v54  ;;  %v589_v60 = vsub.f32 0.0, %v6737_v55 }
 0x110   : > { %v6121_v61 = vpop.eup %6120  ;;  %v6741_v62 = vadd.f32 %v5973_v57, %v6698_v18  ;;  %v489_v63 = vpop.f32.mrf.mxu0  ;;  %v1111_v54 = vmax.f32 %v6759_v28, %v6767_v34  ;;  %v1112_v56 = vmax.f32 %v6765_v33, %v6769_v36 }
 0x111   : > { %6134 = vrcp.f32 %v679_v58  ;;  %v677_v0 = vadd.f32 1.0, %v6121_v61  ;;  %v629_v1 = vmul.f32 1.442695, %v589_v60  ;;  %v6744_v2 = vadd.f32 %v6698_v18, %v489_v63  ;;  %v6790_v60 = vld [vmem:[#allocation2 + $0x8] sm:$0xff]  ;;  %v6792_v61 = vld [vmem:[#allocation2 + $0x20] sm:$0xff] }
 0x112   : > { %v6123_v3 = vpop.eup %6122  ;;  %6136 = vpow2.f32 %v633_v59  ;;  %v592_v4 = vsub.f32 0.0, %v6741_v62  ;;  %v5976_v5 = vpop.f32.mrf.mxu0 }
 0x113   : > { %6138 = vrcp.f32 %v677_v0  ;;  %v680_v6 = vadd.f32 1.0, %v6123_v3  ;;  %v590_v7 = vsub.f32 0.0, %v6744_v2  ;;  %v6749_v8 = vadd.f32 %v5976_v5, %v6698_v18 }
 0x114   : > { %v6125_v9 = vpop.eup %6124  ;;  %6140 = vpow2.f32 %v629_v1  ;;  %v635_v10 = vmul.f32 1.442695, %v592_v4  ;;  %v502_v11 = vpop.f32.mrf.mxu0  ;;  %v1113_v3 = vmax.f32 %v6771_v41, %v6773_v42  ;;  %v2430_v4 = vmax.f32 %v6776_v48, %v6778_v49 }
 0x115   : > { %6142 = vrcp.f32 %v680_v6  ;;  %v678_v12 = vadd.f32 1.0, %v6125_v9  ;;  %v631_v13 = vmul.f32 1.442695, %v590_v7  ;;  %v595_v14 = vsub.f32 0.0, %v6749_v8 }
 0x116   : > { %v6127_v15 = vpop.eup %6126  ;;  %6144 = vpow2.f32 %v635_v10  ;;  %v6753_v16 = vadd.f32 %v6698_v18, %v502_v11  ;;  %v5977_v17 = vpop.f32.mrf.mxu0  ;;  %v6804_v10 = vld [vmem:[#allocation2 + $0x10] sm:$0xf]  ;;  %v6806_v11 = vld [vmem:[#allocation2 + $0x28] sm:$0xf] }
 0x117   : > { %6146 = vrcp.f32 %v678_v12  ;;  %v683_v19 = vadd.f32 1.0, %v6127_v15  ;;  %v641_v21 = vmul.f32 1.442695, %v595_v14  ;;  %v6756_v22 = vadd.f32 %v5977_v17, %v6698_v18 }
 0x118   : > { %v6129_v24 = vpop.eup %6128  ;;  %6148 = vpow2.f32 %v631_v13  ;;  %v593_v25 = vsub.f32 0.0, %v6753_v16  ;;  %v505_v26 = vpop.f32.mrf.mxu0  ;;  %v2431_v17 = vmax.f32 %v6790_v60, %v6792_v61 }
 0x119   : > { %6150 = vrcp.f32 %v683_v19  ;;  %v681_v29 = vadd.f32 1.0, %v6129_v24  ;;  %v596_v30 = vsub.f32 0.0, %v6756_v22  ;;  %v6763_v32 = vadd.f32 %v6698_v18, %v505_v26 }
 0x11a   : > { %v6131_v37 = vpop.eup %6130  ;;  %6152 = vpow2.f32 %v641_v21  ;;  %v637_v38 = vmul.f32 1.442695, %v593_v25  ;;  %v5980_v40 = vpop.f32.mrf.mxu0 }
 0x11b   : > { %6154 = vrcp.f32 %v681_v29  ;;  %v684_v44 = vadd.f32 1.0, %v6131_v37  ;;  %v643_v45 = vmul.f32 1.442695, %v596_v30  ;;  %v594_v46 = vsub.f32 0.0, %v6763_v32 }
 0x11c   : > { %v6133_v50 = vpop.eup %6132  ;;  %6156 = vpow2.f32 %v637_v38  ;;  %v6781_v52 = vadd.f32 %v5980_v40, %v6698_v18  ;;  %v518_v53 = vpop.f32.mrf.mxu0  ;;  %v2432_v38 = vmax.f32 %v6804_v10, %v6806_v11 }
 0x11d   : > { %6158 = vrcp.f32 %v684_v44  ;;  %v682_v57 = vadd.f32 1.0, %v6133_v50  ;;  %v639_v58 = vmul.f32 1.442695, %v594_v46  ;;  %v6788_v59 = vadd.f32 %v6698_v18, %v518_v53 }
 0x11e   : > { %v6135_v63 = vpop.eup %6134  ;;  %6160 = vpow2.f32 %v643_v45  ;;  %v599_v0 = vsub.f32 0.0, %v6781_v52  ;;  %v5981_v1 = vpop.f32.mrf.mxu0 }
 0x11f   : > { %v6137_v5 = vpop.eup %6136  ;;  %v743_v6 = vmul.f32 %v6135_v63, %v6701_v20  ;;  %6162 = vrcp.f32 %v682_v57  ;;  %v597_v7 = vsub.f32 0.0, %v6788_v59  ;;  %v6802_v9 = vadd.f32 %v5981_v1, %v6698_v18 }
 0x120   : > { %v6139_v12 = vpop.eup %6138  ;;  %v687_v13 = vadd.f32 1.0, %v6137_v5  ;;  %6164 = vpow2.f32 %v639_v58  ;;  %v649_v14 = vmul.f32 1.442695, %v599_v0  ;;  %v521_v15 = vpop.f32.mrf.mxu0 }
 0x121   : > { %v6141_v19 = vpop.eup %6140  ;;  %v5798_v20 = vpack.c.bf16 %v743_v6, %v743_v6  ;;  %984 = vst.msk [vmem:[#allocation2 + $0x4a] sm:$0xff] %vm934_vm1, %v743_v6  ;;  %v741_v21 = vmul.f32 %v6139_v12, %v6705_v23  ;;  %v645_v24 = vmul.f32 1.442695, %v597_v7  ;;  %v600_v25 = vsub.f32 0.0, %v6802_v9 }
 0x122   : > { %v6143_v26 = vpop.eup %6142  ;;  %6166 = vrcp.f32 %v687_v13  ;;  %v685_v29 = vadd.f32 1.0, %v6141_v19  ;;  %v6814_v30 = vadd.f32 %v6698_v18, %v521_v15  ;;  %v5984_v37 = vpop.f32.mrf.mxu0 }
 0x123   : > { %v6145_v40 = vpop.eup %6144  ;;  %v5796_v44 = vpack.c.bf16 %v741_v21, %v741_v21  ;;  %982 = vst.msk [vmem:[#allocation2 + $0x32] sm:$0xff] %vm934_vm1, %v741_v21  ;;  %v744_v45 = vmul.f32 %v6143_v26, %v6709_v27  ;;  %6168 = vpow2.f32 %v649_v14  ;;  %v651_v23 = vmul.f32 1.442695, %v600_v25 }
 0x124   : > { %904 = vst.msk [vmem:[#allocation3 + $0x8] sm:$0xf] %vm901_vm3, %v5798_v20  ;;  %v6147_v46 = vpop.eup %6146  ;;  %6170 = vrcp.f32 %v685_v29  ;;  %v688_v50 = vadd.f32 1.0, %v6145_v40  ;;  %v598_v53 = vsub.f32 0.0, %v6814_v30  ;;  %v6823_v57 = vadd.f32 %v5984_v37, %v6698_v18  ;;  %v534_v58 = vpop.f32.mrf.mxu0 }
 0x125   : > { %v6149_v63 = vpop.eup %6148  ;;  %v5799_v0 = vpack.c.bf16 %v744_v45, %v744_v45  ;;  %985 = vst.msk [vmem:[#allocation2 + $0x52] sm:$0xff] %vm934_vm1, %v744_v45  ;;  %v742_v1 = vmul.f32 %v6147_v46, %v6713_v31  ;;  %6172 = vpow2.f32 %v645_v24  ;;  %v6828_v27 = vadd.f32 %v6698_v18, %v534_v58 }
 0x126   : > { %902 = vst.msk [vmem:[#allocation3] sm:$0xf] %vm901_vm3, %v5796_v44  ;;  %v6151_v5 = vpop.eup %6150  ;;  %6174 = vrcp.f32 %v688_v50  ;;  %v686_v6 = vadd.f32 1.0, %v6149_v63  ;;  %v647_v7 = vmul.f32 1.442695, %v598_v53  ;;  %v603_v12 = vsub.f32 0.0, %v6823_v57  ;;  %v5985_v13 = vpop.f32.mrf.mxu0 }
 0x127   : > { %v6153_v14 = vpop.eup %6152  ;;  %v5797_v15 = vpack.c.bf16 %v742_v1, %v742_v1  ;;  %983 = vst.msk [vmem:[#allocation2 + $0x3a] sm:$0xff] %vm934_vm1, %v742_v1  ;;  %v747_v19 = vmul.f32 %v6151_v5, %v6717_v35  ;;  %6176 = vpow2.f32 %v651_v23  ;;  %v601_v31 = vsub.f32 0.0, %v6828_v27 }
 0x128   : > { %905 = vst.msk [vmem:[#allocation3 + $0xc] sm:$0xf] %vm901_vm3, %v5799_v0  ;;  %v6155_v20 = vpop.eup %6154  ;;  %6178 = vrcp.f32 %v686_v6  ;;  %v691_v21 = vadd.f32 1.0, %v6153_v14  ;;  %v657_v24 = vmul.f32 1.442695, %v603_v12  ;;  %v6837_v25 = vadd.f32 %v5985_v13, %v6698_v18  ;;  %v537_v26 = vpop.f32.mrf.mxu0 }
 0x129   : > { %v6157_v29 = vpop.eup %6156  ;;  %v5802_v37 = vpack.c.bf16 %v747_v19, %v747_v19  ;;  %988 = vst.msk [vmem:[#allocation2 + $0x7a] sm:$0xff] %vm934_vm1, %v747_v19  ;;  %v745_v40 = vmul.f32 %v6155_v20, %v6721_v39  ;;  %6180 = vpow2.f32 %v647_v7  ;;  %v653_v35 = vmul.f32 1.442695, %v601_v31 }
 0x12a   : > { %903 = vst.msk [vmem:[#allocation3 + $0x4] sm:$0xf] %vm901_vm3, %v5797_v15  ;;  %v6159_v44 = vpop.eup %6158  ;;  %6182 = vrcp.f32 %v691_v21  ;;  %v689_v45 = vadd.f32 1.0, %v6157_v29  ;;  %v604_v23 = vsub.f32 0.0, %v6837_v25  ;;  %v6844_v46 = vadd.f32 %v6698_v18, %v537_v26  ;;  %v5988_v50 = vpop.f32.mrf.mxu0  ;;  %v6856_v15 = vld [vmem:[#allocation2 + $0x30] sm:$0xff] }
 0x12b   : > { %v6161_v53 = vpop.eup %6160  ;;  %v5800_v58 = vpack.c.bf16 %v745_v40, %v745_v40  ;;  %986 = vst.msk [vmem:[#allocation2 + $0x62] sm:$0xff] %vm934_vm1, %v745_v40  ;;  %v748_v63 = vmul.f32 %v6159_v44, %v6725_v43  ;;  %6184 = vpow2.f32 %v657_v24  ;;  %v6849_v39 = vadd.f32 %v5988_v50, %v6698_v18 }
 0x12c   : > { %908 = vst.msk [vmem:[#allocation3 + $0x18] sm:$0xf] %vm901_vm3, %v5802_v37  ;;  %v6163_v0 = vpop.eup %6162  ;;  %6186 = vrcp.f32 %v689_v45  ;;  %v692_v1 = vadd.f32 1.0, %v6161_v53  ;;  %v659_v5 = vmul.f32 1.442695, %v604_v23  ;;  %v602_v6 = vsub.f32 0.0, %v6844_v46  ;;  %v550_v7 = vpop.f32.mrf.mxu0 }
 0x12d   : > { %v6165_v12 = vpop.eup %6164  ;;  %v5803_v13 = vpack.c.bf16 %v748_v63, %v748_v63  ;;  %989 = vst.msk [vmem:[#allocation2 + $0x82] sm:$0xff] %vm934_vm1, %v748_v63  ;;  %v746_v14 = vmul.f32 %v6163_v0, %v6729_v47  ;;  %6188 = vpow2.f32 %v653_v35  ;;  %v607_v43 = vsub.f32 0.0, %v6849_v39 }
 0x12e   : > { %906 = vst.msk [vmem:[#allocation3 + $0x10] sm:$0xf] %vm901_vm3, %v5800_v58  ;;  %6190 = vrcp.f32 %v692_v1  ;;  %v690_v19 = vadd.f32 1.0, %v6165_v12  ;;  %v655_v31 = vmul.f32 1.442695, %v602_v6  ;;  %v6860_v20 = vadd.f32 %v6698_v18, %v550_v7  ;;  %v5989_v21 = vpop.f32.mrf.mxu0 }
 0x12f   : > { %v6167_v24 = vpop.eup %6166  ;;  %v5801_v26 = vpack.c.bf16 %v746_v14, %v746_v14  ;;  %987 = vst.msk [vmem:[#allocation2 + $0x6a] sm:$0xff] %vm934_vm1, %v746_v14  ;;  %6192 = vpow2.f32 %v659_v5  ;;  %v665_v47 = vmul.f32 1.442695, %v607_v43  ;;  %v6864_v29 = vadd.f32 %v5989_v21, %v6698_v18 }
 0x130   : > { %909 = vst.msk [vmem:[#allocation3 + $0x1c] sm:$0xf] %vm901_vm3, %v5803_v13  ;;  %v6169_v37 = vpop.eup %6168  ;;  %v751_v40 = vmul.f32 %v6167_v24, %v6733_v51  ;;  %6194 = vrcp.f32 %v690_v19  ;;  %v605_v35 = vsub.f32 0.0, %v6860_v20  ;;  %v553_v44 = vpop.f32.mrf.mxu0  ;;  %v6873_v45 = vmax.f32 %v1111_v54, %v6856_v15 }
 0x131   : > { %v6171_v23 = vpop.eup %6170  ;;  %v695_v50 = vadd.f32 1.0, %v6169_v37  ;;  %6196 = vpow2.f32 %v655_v31  ;;  %v608_v53 = vsub.f32 0.0, %v6864_v29  ;;  %v6877_v58 = vadd.f32 %v6698_v18, %v553_v44  ;;  %907 = vst.msk [vmem:[#allocation3 + $0x14] sm:$0xf] %vm901_vm3, %v5801_v26 }
 0x132   : > { %v6173_v51 = vpop.eup %6172  ;;  %v5806_v63 = vpack.c.bf16 %v751_v40, %v751_v40  ;;  %992 = vst.msk [vmem:[#allocation2 + $0xaa] sm:$0xff] %vm934_vm1, %v751_v40  ;;  %v749_v0 = vmul.f32 %v6171_v23, %v6737_v55  ;;  %6198 = vpow2.f32 %v665_v47  ;;  %v661_v28 = vmul.f32 1.442695, %v605_v35  ;;  %v5992_v54 = vpop.f32.mrf.mxu0 }
 0x133   : > { %v6175_v1 = vpop.eup %6174  ;;  %6200 = vrcp.f32 %v695_v50  ;;  %v693_v5 = vadd.f32 1.0, %v6173_v51  ;;  %v667_v6 = vmul.f32 1.442695, %v608_v53  ;;  %v606_v7 = vsub.f32 0.0, %v6877_v58 }
 0x134   : > { %v6177_v12 = vpop.eup %6176  ;;  %v5804_v13 = vpack.c.bf16 %v749_v0, %v749_v0  ;;  %990 = vst.msk [vmem:[#allocation2 + $0x92] sm:$0xff] %vm934_vm1, %v749_v0  ;;  %v752_v14 = vmul.f32 %v6175_v1, %v6741_v62  ;;  %6202 = vpow2.f32 %v661_v28  ;;  %v6886_v43 = vadd.f32 %v5992_v54, %v6698_v18  ;;  %v566_v55 = vpop.f32.mrf.mxu0  ;;  %v6902_v28 = vld [vmem:[#allocation2 + $0x38] sm:$0xff] }
 0x135   : > { %912 = vst.msk [vmem:[#allocation3 + $0x28] sm:$0xf] %vm901_vm3, %v5806_v63  ;;  %v6179_v19 = vpop.eup %6178  ;;  %6204 = vrcp.f32 %v693_v5  ;;  %v696_v31 = vadd.f32 1.0, %v6177_v12  ;;  %v663_v21 = vmul.f32 1.442695, %v606_v7  ;;  %v6890_v24 = vadd.f32 %v6698_v18, %v566_v55 }
 0x136   : > { %v6181_v26 = vpop.eup %6180  ;;  %v5807_v47 = vpack.c.bf16 %v752_v14, %v752_v14  ;;  %993 = vst.msk [vmem:[#allocation2 + $0xb2] sm:$0xff] %vm934_vm1, %v752_v14  ;;  %v750_v62 = vmul.f32 %v6179_v19, %v6744_v2  ;;  %6206 = vpow2.f32 %v667_v6  ;;  %v611_v37 = vsub.f32 0.0, %v6886_v43  ;;  %v5993_v40 = vpop.f32.mrf.mxu0 }
 0x137   : > { %910 = vst.msk [vmem:[#allocation3 + $0x20] sm:$0xf] %vm901_vm3, %v5804_v13  ;;  %v6183_v35 = vpop.eup %6182  ;;  %6208 = vrcp.f32 %v696_v31  ;;  %v694_v44 = vadd.f32 1.0, %v6181_v26  ;;  %v609_v23 = vsub.f32 0.0, %v6890_v24  ;;  %v6898_v50 = vadd.f32 %v5993_v40, %v6698_v18  ;;  %v6925_v40 = vld [vmem:[#allocation2 + $0x68] sm:$0xff] }
 0x138   : > { %v6185_v53 = vpop.eup %6184  ;;  %v5805_v51 = vpack.c.bf16 %v750_v62, %v750_v62  ;;  %991 = vst.msk [vmem:[#allocation2 + $0x9a] sm:$0xff] %vm934_vm1, %v750_v62  ;;  %v755_v2 = vmul.f32 %v6183_v35, %v6749_v8  ;;  %6210 = vpow2.f32 %v663_v21  ;;  %v673_v63 = vmul.f32 1.442695, %v611_v37  ;;  %v569_v0 = vpop.f32.mrf.mxu0  ;;  %v6916_v21 = vld [vmem:[#allocation2 + $0x48] sm:$0xff]  ;;  %v6921_v62 = vld [vmem:[#allocation2 + $0x50] sm:$0xff]  ;;  %v6923_v37 = vld [vmem:[#allocation2 + $0x60] sm:$0xff] }
 0x139   : > { %913 = vst.msk [vmem:[#allocation3 + $0x2c] sm:$0xf] %vm901_vm3, %v5807_v47  ;;  %v6187_v54 = vpop.eup %6186  ;;  %6212 = vrcp.f32 %v694_v44  ;;  %v699_v1 = vadd.f32 1.0, %v6185_v53  ;;  %v669_v5 = vmul.f32 1.442695, %v609_v23  ;;  %v612_v6 = vsub.f32 0.0, %v6898_v50 }
 0x13a   : > { %v6189_v7 = vpop.eup %6188  ;;  %v5810_v12 = vpack.c.bf16 %v755_v2, %v755_v2  ;;  %996 = vst.msk [vmem:[#allocation2 + $0xda] sm:$0xff] %vm934_vm1, %v755_v2  ;;  %v753_v8 = vmul.f32 %v6187_v54, %v6753_v16  ;;  %6214 = vpow2.f32 %v673_v63  ;;  %v6909_v13 = vadd.f32 %v6698_v18, %v569_v0 }
 0x13b   : > { %911 = vst.msk [vmem:[#allocation3 + $0x24] sm:$0xf] %vm901_vm3, %v5805_v51  ;;  %v6191_v14 = vpop.eup %6190  ;;  %6216 = vrcp.f32 %v699_v1  ;;  %v697_v55 = vadd.f32 1.0, %v6189_v7  ;;  %v675_v19 = vmul.f32 1.442695, %v612_v6  ;;  %v1208_v31 = vmax.f32 %v1112_v56, %v6902_v28 }
 0x13c   : > { %v6193_v26 = vpop.eup %6192  ;;  %v5808_v47 = vpack.c.bf16 %v753_v8, %v753_v8  ;;  %994 = vst.msk [vmem:[#allocation2 + $0xc2] sm:$0xff] %vm934_vm1, %v753_v8  ;;  %v756_v18 = vmul.f32 %v6191_v14, %v6756_v22  ;;  %6218 = vpow2.f32 %v669_v5  ;;  %v610_v16 = vsub.f32 0.0, %v6909_v13 }
 0x13d   : > { %916 = vst.msk [vmem:[#allocation3 + $0x38] sm:$0xf] %vm901_vm3, %v5810_v12  ;;  %v6195_v33 = vpop.eup %6194  ;;  %6220 = vrcp.f32 %v697_v55  ;;  %v700_v56 = vadd.f32 1.0, %v6193_v26  ;;  %v1304_v35 = vmax.f32 %v6873_v45, %v6916_v21  ;;  %v1305_v22 = vmax.f32 %v1208_v31, %v6921_v62 }
 0x13e   : > { %v6197_v44 = vpop.eup %6196  ;;  %v5811_v23 = vpack.c.bf16 %v756_v18, %v756_v18  ;;  %997 = vst.msk [vmem:[#allocation2 + $0xe2] sm:$0xff] %vm934_vm1, %v756_v18  ;;  %v754_v53 = vmul.f32 %v6195_v33, %v6763_v32  ;;  %6222 = vpow2.f32 %v675_v19  ;;  %v671_v51 = vmul.f32 1.442695, %v610_v16 }
 0x13f   : > { %914 = vst.msk [vmem:[#allocation3 + $0x30] sm:$0xf] %vm901_vm3, %v5808_v47  ;;  %v6199_v2 = vpop.eup %6198  ;;  %6224 = vrcp.f32 %v700_v56  ;;  %v698_v63 = vadd.f32 1.0, %v6197_v44  ;;  %v1401_v0 = vmax.f32 %v1304_v35, %v6923_v37  ;;  %v6936_v45 = vmax.f32 %v1305_v22, %v6925_v40 }
 0x140   : > { %v6201_v54 = vpop.eup %6200  ;;  %v5809_v1 = vpack.c.bf16 %v754_v53, %v754_v53  ;;  %995 = vst.msk [vmem:[#allocation2 + $0xca] sm:$0xff] %vm934_vm1, %v754_v53  ;;  %v703_v5 = vadd.f32 1.0, %v6199_v2  ;;  %6226 = vpow2.f32 %v671_v51  ;;  %v1114_v32 = vmax.f32 %v6767_v34, %v6856_v15 }
 0x141   : > { %917 = vst.msk [vmem:[#allocation3 + $0x3c] sm:$0xf] %vm901_vm3, %v5811_v23  ;;  %v6203_v6 = vpop.eup %6202  ;;  %v759_v7 = vmul.f32 %v6201_v54, %v6781_v52  ;;  %6228 = vrcp.f32 %v698_v63  ;;  %v1498_v12 = vrot.slane %v1401_v0, 1  ;;  %v1499_v8 = vrot.slane %v6936_v45, 1 }
 0x142   : > { %v6205_v14 = vpop.eup %6204  ;;  %6230 = vrcp.f32 %v703_v5  ;;  %v701_v55 = vadd.f32 1.0, %v6203_v6  ;;  %v1643_v19 = vrot.slane %v1401_v0, 2  ;;  %v1644_v31 = vrot.slane %v6936_v45, 2  ;;  %915 = vst.msk [vmem:[#allocation3 + $0x34] sm:$0xf] %vm901_vm3, %v5809_v1 }
 0x143   : > { %v6207_v26 = vpop.eup %6206  ;;  %v5814_v47 = vpack.c.bf16 %v759_v7, %v759_v7  ;;  %1000 = vst.msk [vmem:[#allocation2 + $0x10a] sm:$0xff] %vm934_vm1, %v759_v7  ;;  %v757_v34 = vmul.f32 %v6205_v14, %v6788_v59  ;;  %v1500_v52 = vsel %vm1497_vm4, %v1498_v12, %v1499_v8  ;;  %v1788_v18 = vrot.slane %v1401_v0, 3  ;;  %v1161_v7 = vld [vmem:[#allocation2 + $0x40] sm:$0xf] }
 0x144   : > { %v6209_v16 = vpop.eup %6208  ;;  %6232 = vrcp.f32 %v701_v55  ;;  %v704_v33 = vadd.f32 1.0, %v6207_v26  ;;  %v1610_v56 = vmax.f32 %v1401_v0, %v1500_v52  ;;  %v1645_v35 = vsel %vm1642_vm5, %v1643_v19, %v1644_v31 }
 0x145   : > { %v6211_v22 = vpop.eup %6210  ;;  %v5812_v44 = vpack.c.bf16 %v757_v34, %v757_v34  ;;  %998 = vst.msk [vmem:[#allocation2 + $0xf2] sm:$0xff] %vm934_vm1, %v757_v34  ;;  %v760_v23 = vmul.f32 %v6209_v16, %v6802_v9  ;;  %v1789_v59 = vrot.slane %v6936_v45, 3  ;;  %v1933_v53 = vrot.slane %v1401_v0, 4 }
 0x146   : > { %920 = vst.msk [vmem:[#allocation3 + $0x48] sm:$0xf] %vm901_vm3, %v5814_v47  ;;  %v6213_v51 = vpop.eup %6212  ;;  %6234 = vrcp.f32 %v704_v33  ;;  %v702_v2 = vadd.f32 1.0, %v6211_v22  ;;  %v1755_v63 = vmax.f32 %v1610_v56, %v1645_v35  ;;  %v1934_v54 = vrot.slane %v6936_v45, 4  ;;  %v6978_v56 = vld [vmem:[#allocation2 + $0x28] sm:$0xf] }
 0x147   : > { %v6215_v1 = vpop.eup %6214  ;;  %v5815_v5 = vpack.c.bf16 %v760_v23, %v760_v23  ;;  %1001 = vst.msk [vmem:[#allocation2 + $0x112] sm:$0xff] %vm934_vm1, %v760_v23  ;;  %v758_v6 = vmul.f32 %v6213_v51, %v6814_v30  ;;  %v1790_v9 = vsel %vm1787_vm6, %v1788_v18, %v1789_v59  ;;  %v1115_v0 = vmax.f32 %v6769_v36, %v6902_v28  ;;  %v1258_v23 = vld [vmem:[#allocation2 + $0x58] sm:$0xf]  ;;  %v6985_v51 = vld [vmem:[#allocation2 + $0x40] sm:$0xf] }
 0x148   : > { %918 = vst.msk [vmem:[#allocation3 + $0x40] sm:$0xf] %vm901_vm3, %v5812_v44  ;;  %v6217_v12 = vpop.eup %6216  ;;  %6236 = vrcp.f32 %v702_v2  ;;  %v707_v14 = vadd.f32 1.0, %v6215_v1  ;;  %v1900_v55 = vmax.f32 %v1755_v63, %v1790_v9  ;;  %v1935_v19 = vsel %vm1932_vm7, %v1933_v53, %v1934_v54  ;;  %v1355_v53 = vld [vmem:[#allocation2 + $0x70] sm:$0xf]  ;;  %v6987_v2 = vld [vmem:[#allocation2 + $0x78] sm:$0xff] }
 0x149   : > { %v6219_v26 = vpop.eup %6218  ;;  %v5813_v30 = vpack.c.bf16 %v758_v6, %v758_v6  ;;  %999 = vst.msk [vmem:[#allocation2 + $0xfa] sm:$0xff] %vm934_vm1, %v758_v6  ;;  %v763_v47 = vmul.f32 %v6217_v12, %v6823_v57  ;;  %v1210_v34 = vmax.f32 %v1114_v32, %v6916_v21  ;;  %v1211_v36 = vmax.f32 %v1115_v0, %v6921_v62  ;;  %v6989_v63 = vld [vmem:[#allocation2 + $0x80] sm:$0xff] }
 0x14a   : > { %921 = vst.msk [vmem:[#allocation3 + $0x4c] sm:$0xf] %vm901_vm3, %v5815_v5  ;;  %v6221_v52 = vpop.eup %6220  ;;  %6238 = vrcp.f32 %v707_v14  ;;  %v705_v18 = vadd.f32 1.0, %v6219_v26  ;;  %v2045_v16 = vmax.f32 %v1900_v55, %v1935_v19  ;;  %v1209_v33 = vmax.f32 %v1113_v3, %v1161_v7 }
 0x14b   : > { %v6223_v35 = vpop.eup %6222  ;;  %v5818_v22 = vpack.c.bf16 %v763_v47, %v763_v47  ;;  %1004 = vst.msk [vmem:[#allocation2 + $0x13a] sm:$0xff] %vm934_vm1, %v763_v47  ;;  %v761_v57 = vmul.f32 %v6221_v52, %v6828_v27  ;;  %v1307_v32 = vmax.f32 %v1210_v34, %v6923_v37  ;;  %v1308_v44 = vmax.f32 %v1211_v36, %v6925_v40 }
 0x14c   : > { %919 = vst.msk [vmem:[#allocation3 + $0x44] sm:$0xf] %vm901_vm3, %v5813_v30  ;;  %v6225_v41 = vpop.eup %6224  ;;  %6240 = vrcp.f32 %v705_v18  ;;  %v708_v42 = vadd.f32 1.0, %v6223_v35  ;;  %v5828_v3 = vpack.c.bf16 %v2045_v16, %v2045_v16  ;;  %v1306_v1 = vmax.f32 %v1209_v33, %v1258_v23 }
 0x14d   : > { %2302 = vst.msk [vmem:[#allocation2 + $0x32] sm:$0xff] %vm934_vm1, %v2045_v16  ;;  %v6227_v27 = vpop.eup %6226  ;;  %v5816_v5 = vpack.c.bf16 %v761_v57, %v761_v57  ;;  %1002 = vst.msk [vmem:[#allocation2 + $0x122] sm:$0xff] %vm934_vm1, %v761_v57  ;;  %v764_v6 = vmul.f32 %v6225_v41, %v6837_v25  ;;  %v1404_v9 = vmax.f32 %v1307_v32, %v6987_v2 }
 0x14e   : > { %v6996_v0 = vmax.f32 %v1308_v44, %v6989_v63  ;;  %924 = vst.msk [vmem:[#allocation3 + $0x58] sm:$0xf] %vm901_vm3, %v5818_v22  ;;  %v6229_v7 = vpop.eup %6228  ;;  %6242 = vrcp.f32 %v708_v42  ;;  %v706_v12 = vadd.f32 1.0, %v6227_v27  ;;  %2173 = vrot.lane.b32.xlu0 %v5828_v3, %s6474_s16  ;;  %v1403_v14 = vmax.f32 %v1306_v1, %v1355_v53 }
 0x14f   : > { %v1116_v55 = vmax.f32 %v6978_v56, %v6985_v51  ;;  %v6231_v19 = vpop.eup %6230  ;;  %v5819_v26 = vpack.c.bf16 %v764_v6, %v764_v6  ;;  %1005 = vst.msk [vmem:[#allocation2 + $0x142] sm:$0xff] %vm934_vm1, %v764_v6  ;;  %v762_v25 = vmul.f32 %v6229_v7, %v6844_v46  ;;  %v1503_v30 = vrot.slane %v1404_v9, 1 }
 0x150   : > { %v1504_v47 = vrot.slane %v6996_v0, 1  ;;  %922 = vst.msk [vmem:[#allocation3 + $0x50] sm:$0xf] %vm901_vm3, %v5816_v5  ;;  %v767_v34 = vmul.f32 %v6231_v19, %v6849_v39  ;;  %6244 = vrcp.f32 %v706_v12  ;;  %v1648_v36 = vrot.slane %v1404_v9, 2 }
 0x151   : > { %v1649_v52 = vrot.slane %v6996_v0, 2  ;;  %v6233_v18 = vpop.eup %6232  ;;  %v5817_v16 = vpack.c.bf16 %v762_v25, %v762_v25  ;;  %1003 = vst.msk [vmem:[#allocation2 + $0x12a] sm:$0xff] %vm934_vm1, %v762_v25  ;;  %v1793_v46 = vrot.slane %v1404_v9, 3  ;;  %v1794_v56 = vrot.slane %v6996_v0, 3  ;;  %v1261_v25 = vld [vmem:[#allocation2 + $0x70] sm:$0xf] }
 0x152   : > { %v1505_v33 = vsel %vm1497_vm4, %v1503_v30, %v1504_v47  ;;  %925 = vst.msk [vmem:[#allocation3 + $0x5c] sm:$0xf] %vm901_vm3, %v5819_v26  ;;  %v5822_v35 = vpack.c.bf16 %v767_v34, %v767_v34  ;;  %v765_v39 = vmul.f32 %v6233_v18, %v6860_v20  ;;  %v1938_v23 = vrot.slane %v1404_v9, 4  ;;  %v1164_v26 = vld [vmem:[#allocation2 + $0x58] sm:$0xf] }
 0x153   : > { %1008 = vst.msk [vmem:[#allocation2 + $0x16a] sm:$0xff] %vm934_vm1, %v767_v34  ;;  %v1612_v22 = vmax.f32 %v1404_v9, %v1505_v33  ;;  %v1650_v57 = vsel %vm1642_vm5, %v1648_v36, %v1649_v52  ;;  %v6235_v32 = vpop.eup %6234  ;;  %v1795_v44 = vsel %vm1787_vm6, %v1793_v46, %v1794_v56  ;;  %v1939_v53 = vrot.slane %v6996_v0, 4  ;;  %v1022_v30 = vld [vmem:[#allocation2 + $0x40] sm:$0xf] }
 0x154   : > { %v1501_v51 = vrot.slane %v1403_v14, 1  ;;  %923 = vst.msk [vmem:[#allocation3 + $0x54] sm:$0xf] %vm901_vm3, %v5817_v16  ;;  %v5820_v41 = vpack.c.bf16 %v765_v39, %v765_v39  ;;  %v768_v20 = vmul.f32 %v6235_v32, %v6864_v29  ;;  %v1646_v3 = vrot.slane %v1403_v14, 2  ;;  %928 = vst.msk [vmem:[#allocation3 + $0x68] sm:$0xf] %vm901_vm3, %v5822_v35 }
 0x155   : > { %1006 = vst.msk [vmem:[#allocation2 + $0x152] sm:$0xff] %vm934_vm1, %v765_v39  ;;  %v1757_v42 = vmax.f32 %v1612_v22, %v1650_v57  ;;  %v6237_v1 = vpop.eup %6236  ;;  %v1940_v27 = vsel %vm1932_vm7, %v1938_v23, %v1939_v53  ;;  %v1791_v6 = vrot.slane %v1403_v14, 3  ;;  %v1936_v9 = vrot.slane %v1403_v14, 4  ;;  %v1071_v35 = vld [vmem:[#allocation2 + $0x58] sm:$0xf] }
 0x156   : > { %v1502_v5 = vsel %vm1497_vm4, %v1499_v8, %v1501_v51  ;;  %v5823_v7 = vpack.c.bf16 %v768_v20, %v768_v20  ;;  %1009 = vst.msk [vmem:[#allocation2 + $0x172] sm:$0xff] %vm934_vm1, %v768_v20  ;;  %v766_v29 = vmul.f32 %v6237_v1, %v6877_v58  ;;  %v1647_v8 = vsel %vm1642_vm5, %v1644_v31, %v1646_v3  ;;  %v1167_v31 = vld [vmem:[#allocation2 + $0x70] sm:$0xf] }
 0x157   : > { %v1902_v12 = vmax.f32 %v1757_v42, %v1795_v44  ;;  %v1611_v19 = vmax.f32 %v6936_v45, %v1502_v5  ;;  %926 = vst.msk [vmem:[#allocation3 + $0x60] sm:$0xf] %vm901_vm3, %v5820_v41  ;;  %v6239_v34 = vpop.eup %6238  ;;  %v1792_v14 = vsel %vm1787_vm6, %v1789_v59, %v1791_v6  ;;  %v1937_v58 = vsel %vm1932_vm7, %v1934_v54, %v1936_v9  ;;  %v1358_v44 = vld [vmem:[#allocation2 + $0x88] sm:$0xf] }
 0x158   : > { %v1212_v36 = vmax.f32 %v1116_v55, %v1164_v26  ;;  %v5821_v18 = vpack.c.bf16 %v766_v29, %v766_v29  ;;  %1007 = vst.msk [vmem:[#allocation2 + $0x15a] sm:$0xff] %vm934_vm1, %v766_v29  ;;  %v771_v16 = vmul.f32 %v6239_v34, %v6886_v43  ;;  %v1117_v59 = vmax.f32 %v6856_v15, %v6916_v21  ;;  %v7084_v34 = vld [vmem:[#allocation2 + $0x98] sm:$0xff] }
 0x159   : > { %v2047_v33 = vmax.f32 %v1902_v12, %v1940_v27  ;;  %v1756_v46 = vmax.f32 %v1611_v19, %v1647_v8  ;;  %929 = vst.msk [vmem:[#allocation3 + $0x6c] sm:$0xf] %vm901_vm3, %v5823_v7  ;;  %v6241_v39 = vpop.eup %6240  ;;  %v1118_v45 = vmax.f32 %v6902_v28, %v6921_v62  ;;  %v1119_v54 = vmax.f32 %v1022_v30, %v1071_v35  ;;  %v7065_v7 = vld [vmem:[#allocation2 + $0x90] sm:$0xff] }
 0x15a   : > { %v1309_v22 = vmax.f32 %v1212_v36, %v1261_v25  ;;  %v5826_v55 = vpack.c.bf16 %v771_v16, %v771_v16  ;;  %1012 = vst.msk [vmem:[#allocation2 + $0x19a] sm:$0xff] %vm934_vm1, %v771_v16  ;;  %v769_v43 = vmul.f32 %v6241_v39, %v6890_v24  ;;  %v1213_v15 = vmax.f32 %v1117_v59, %v6923_v37  ;;  %v1025_v36 = vld [vmem:[#allocation2 + $0x58] sm:$0xf] }
 0x15b   : > { %v5830_v57 = vpack.c.bf16 %v2047_v33, %v2047_v33  ;;  %v1901_v32 = vmax.f32 %v1756_v46, %v1792_v14  ;;  %927 = vst.msk [vmem:[#allocation3 + $0x64] sm:$0xf] %vm901_vm3, %v5821_v18  ;;  %v6243_v23 = vpop.eup %6242  ;;  %v1214_v41 = vmax.f32 %v1118_v45, %v6925_v40  ;;  %v1215_v28 = vmax.f32 %v1119_v54, %v1167_v31 }
 0x15c   : > { %2304 = vst.msk [vmem:[#allocation2 + $0x4a] sm:$0xff] %vm934_vm1, %v2047_v33  ;;  %v1406_v51 = vmax.f32 %v1309_v22, %v1358_v44  ;;  %v5824_v20 = vpack.c.bf16 %v769_v43, %v769_v43  ;;  %1010 = vst.msk [vmem:[#allocation2 + $0x182] sm:$0xff] %vm934_vm1, %v769_v43  ;;  %v772_v42 = vmul.f32 %v6243_v23, %v6898_v50 }
 0x15d   : > { %2177 = vrot.lane.b32.xlu1 %v5830_v57, %s6474_s16  ;;  %v2046_v24 = vmax.f32 %v1901_v32, %v1937_v58  ;;  %932 = vst.msk [vmem:[#allocation3 + $0x78] sm:$0xf] %vm901_vm3, %v5826_v55  ;;  %v1120_v3 = vmax.f32 %v6916_v21, %v6923_v37  ;;  %v6245_v1 = vpop.eup %6244  ;;  %v1310_v19 = vmax.f32 %v1213_v15, %v6987_v2  ;;  %v1074_v21 = vld [vmem:[#allocation2 + $0x70] sm:$0xf]  ;;  %v1361_v58 = vld [vmem:[#allocation2 + $0xa0] sm:$0xf] }
 0x15e   : > { %v1506_v27 = vrot.slane %v1406_v51, 1  ;;  %v1651_v5 = vrot.slane %v1406_v51, 2  ;;  %v1796_v6 = vrot.slane %v1406_v51, 3  ;;  %v1941_v9 = vrot.slane %v1406_v51, 4  ;;  %1013 = vst.msk [vmem:[#allocation2 + $0x1a2] sm:$0xff] %vm934_vm1, %v772_v42 }
 0x15f   : > { %v5827_v29 = vpack.c.bf16 %v772_v42, %v772_v42  ;;  %v770_v50 = vmul.f32 %v6245_v1, %v6909_v13  ;;  %v5829_v12 = vpack.c.bf16 %v2046_v24, %v2046_v24  ;;  %930 = vst.msk [vmem:[#allocation3 + $0x70] sm:$0xf] %vm901_vm3, %v5824_v20  ;;  %v1407_v14 = vmax.f32 %v1310_v19, %v7065_v7 }
 0x160   : > { %2303 = vst.msk [vmem:[#allocation2 + $0x3a] sm:$0xff] %vm934_vm1, %v2046_v24  ;;  %v1507_v26 = vsel %vm1497_vm4, %v1504_v47, %v1506_v27  ;;  %v1652_v25 = vsel %vm1642_vm5, %v1649_v52, %v1651_v5  ;;  %v1797_v13 = vsel %vm1787_vm6, %v1794_v56, %v1796_v6  ;;  %v1942_v30 = vsel %vm1932_vm7, %v1939_v53, %v1941_v9  ;;  %v1264_v56 = vld [vmem:[#allocation2 + $0x88] sm:$0xf] }
 0x161   : > { %v5825_v8 = vpack.c.bf16 %v770_v50, %v770_v50  ;;  %1011 = vst.msk [vmem:[#allocation2 + $0x18a] sm:$0xff] %vm934_vm1, %v770_v50  ;;  %2175 = vrot.lane.b32.xlu0 %v5829_v12, %s6474_s16  ;;  %v1613_v47 = vmax.f32 %v6996_v0, %v1507_v26  ;;  %v1311_v52 = vmax.f32 %v1214_v41, %v6989_v63  ;;  %v1508_v0 = vrot.slane %v1407_v14, 1  ;;  %v1170_v9 = vld [vmem:[#allocation2 + $0x88] sm:$0xf]  ;;  %v1028_v26 = vld [vmem:[#allocation2 + $0x70] sm:$0xf] }
 0x162   : > { %933 = vst.msk [vmem:[#allocation3 + $0x7c] sm:$0xf] %vm901_vm3, %v5827_v29  ;;  %v1312_v18 = vmax.f32 %v1215_v28, %v1264_v56  ;;  %v1121_v53 = vmax.f32 %v6921_v62, %v6925_v40  ;;  %v1216_v16 = vmax.f32 %v1120_v3, %v6987_v2  ;;  %v1122_v33 = vmax.f32 %v1025_v36, %v1074_v21  ;;  %v1267_v29 = vld [vmem:[#allocation2 + $0xa0] sm:$0xf] }
 0x163   : > { %931 = vst.msk [vmem:[#allocation3 + $0x74] sm:$0xf] %vm901_vm3, %v5825_v8  ;;  %v1758_v46 = vmax.f32 %v1613_v47, %v1652_v25  ;;  %v1408_v35 = vmax.f32 %v1311_v52, %v7084_v34  ;;  %v1653_v31 = vrot.slane %v1407_v14, 2  ;;  %v1798_v39 = vrot.slane %v1407_v14, 3  ;;  %v7112_v8 = vld [vmem:[#allocation2 + $0xb0] sm:$0xff] }
 0x164   : > { %v1943_v22 = vrot.slane %v1407_v14, 4  ;;  %v1409_v59 = vmax.f32 %v1312_v18, %v1361_v58  ;;  %v1217_v45 = vmax.f32 %v1121_v53, %v6989_v63  ;;  %v1313_v12 = vmax.f32 %v1216_v16, %v7065_v7  ;;  %v1077_v18 = vld [vmem:[#allocation2 + $0x88] sm:$0xf] }
 0x165   : > { %v1903_v54 = vmax.f32 %v1758_v46, %v1797_v13  ;;  %v1509_v55 = vrot.slane %v1408_v35, 1  ;;  %v1654_v43 = vrot.slane %v1408_v35, 2  ;;  %v1799_v57 = vrot.slane %v1408_v35, 3 }
 0x166   : > { %v1944_v62 = vrot.slane %v1408_v35, 4  ;;  %v1511_v32 = vrot.slane %v1409_v59, 1  ;;  %v1656_v44 = vrot.slane %v1409_v59, 2  ;;  %v1801_v23 = vrot.slane %v1409_v59, 3 }
 0x167   : > { %v2048_v51 = vmax.f32 %v1903_v54, %v1942_v30  ;;  %v1510_v15 = vsel %vm1497_vm4, %v1508_v0, %v1509_v55  ;;  %v1655_v41 = vsel %vm1642_vm5, %v1653_v31, %v1654_v43  ;;  %v1800_v28 = vsel %vm1787_vm6, %v1798_v39, %v1799_v57  ;;  %v7110_v30 = vld [vmem:[#allocation2 + $0xa8] sm:$0xff] }
 0x168   : > { %v1614_v20 = vmax.f32 %v1407_v14, %v1510_v15  ;;  %v1945_v42 = vsel %vm1932_vm7, %v1943_v22, %v1944_v62  ;;  %v1512_v24 = vsel %vm1497_vm4, %v1509_v55, %v1511_v32  ;;  %v1657_v3 = vsel %vm1642_vm5, %v1654_v43, %v1656_v44 }
 0x169   : > { %v5831_v1 = vpack.c.bf16 %v2048_v51, %v2048_v51  ;;  %v1615_v27 = vmax.f32 %v1408_v35, %v1512_v24  ;;  %v1802_v5 = vsel %vm1787_vm6, %v1799_v57, %v1801_v23  ;;  %v1946_v6 = vrot.slane %v1409_v59, 4  ;;  %2305 = vst.msk [vmem:[#allocation2 + $0x52] sm:$0xff] %vm934_vm1, %v2048_v51  ;;  %v1173_v57 = vld [vmem:[#allocation2 + $0xa0] sm:$0xf]  ;;  %v1364_v51 = vld [vmem:[#allocation2 + $0xb8] sm:$0xf] }
 0x16a   : > { %v1759_v50 = vmax.f32 %v1614_v20, %v1655_v41  ;;  %v1314_v19 = vmax.f32 %v1217_v45, %v7084_v34  ;;  %v1218_v21 = vmax.f32 %v1122_v33, %v1170_v9  ;;  %v1123_v47 = vmax.f32 %v6923_v37, %v6987_v2  ;;  %v7139_v24 = vld [vmem:[#allocation2 + $0xc8] sm:$0xff] }
 0x16b   : > { %2179 = vrot.lane.b32.xlu1 %v5831_v1, %s6474_s16  ;;  %v1760_v25 = vmax.f32 %v1615_v27, %v1657_v3  ;;  %v1947_v13 = vsel %vm1932_vm7, %v1944_v62, %v1946_v6  ;;  %v1124_v52 = vmax.f32 %v6925_v40, %v6989_v63  ;;  %v1410_v56 = vmax.f32 %v1313_v12, %v7110_v30  ;;  %v1270_v12 = vld [vmem:[#allocation2 + $0xb8] sm:$0xf] }
 0x16c   : > { %v1904_v14 = vmax.f32 %v1759_v50, %v1800_v28  ;;  %v7120_v58 = vmax.f32 %v1314_v19, %v7112_v8  ;;  %v1315_v36 = vmax.f32 %v1218_v21, %v1267_v29  ;;  %v1219_v16 = vmax.f32 %v1123_v47, %v7065_v7 }
 0x16d   : > { %v1905_v53 = vmax.f32 %v1760_v25, %v1802_v5  ;;  %v1220_v33 = vmax.f32 %v1124_v52, %v7084_v34  ;;  %v1125_v46 = vmax.f32 %v1028_v26, %v1077_v18  ;;  %v1513_v0 = vrot.slane %v1410_v56, 1 }
 0x16e   : > { %v2049_v35 = vmax.f32 %v1904_v14, %v1945_v42  ;;  %v1514_v37 = vrot.slane %v7120_v58, 1  ;;  %v1658_v31 = vrot.slane %v1410_v56, 2  ;;  %v1659_v39 = vrot.slane %v7120_v58, 2  ;;  %v7137_v42 = vld [vmem:[#allocation2 + $0xc0] sm:$0xff] }
 0x16f   : > { %v2050_v40 = vmax.f32 %v1905_v53, %v1947_v13  ;;  %v1803_v22 = vrot.slane %v1410_v56, 3  ;;  %v1804_v59 = vrot.slane %v7120_v58, 3  ;;  %v1948_v55 = vrot.slane %v1410_v56, 4 }
 0x170   : > { %v5832_v45 = vpack.c.bf16 %v2049_v35, %v2049_v35  ;;  %v1515_v54 = vsel %vm1497_vm4, %v1513_v0, %v1514_v37  ;;  %v1949_v43 = vrot.slane %v7120_v58, 4  ;;  %2306 = vst.msk [vmem:[#allocation2 + $0x62] sm:$0xff] %vm934_vm1, %v2049_v35  ;;  %v1660_v44 = vsel %vm1642_vm5, %v1658_v31, %v1659_v39 }
 0x171   : > { %v5833_v62 = vpack.c.bf16 %v2050_v40, %v2050_v40  ;;  %v1616_v32 = vmax.f32 %v1410_v56, %v1515_v54  ;;  %v1805_v23 = vsel %vm1787_vm6, %v1803_v22, %v1804_v59  ;;  %2307 = vst.msk [vmem:[#allocation2 + $0x6a] sm:$0xff] %vm934_vm1, %v2050_v40  ;;  %v1412_v41 = vmax.f32 %v1315_v36, %v1364_v51  ;;  %v1080_v40 = vld [vmem:[#allocation2 + $0xa0] sm:$0xf] }
 0x172   : > { %2181 = vrot.lane.b32.xlu0 %v5832_v45, %s6474_s16  ;;  %v1950_v15 = vsel %vm1932_vm7, %v1948_v55, %v1949_v43  ;;  %v1316_v28 = vmax.f32 %v1219_v16, %v7110_v30  ;;  %v1317_v20 = vmax.f32 %v1220_v33, %v7112_v8  ;;  %v1221_v1 = vmax.f32 %v1125_v46, %v1173_v57  ;;  %v1367_v46 = vld [vmem:[#allocation2 + $0xd0] sm:$0xf]  ;;  %v1031_v57 = vld [vmem:[#allocation2 + $0x88] sm:$0xf] }
 0x173   : > { %2183 = vrot.lane.b32.xlu1 %v5833_v62, %s6474_s16  ;;  %v1761_v3 = vmax.f32 %v1616_v32, %v1660_v44  ;;  %v1126_v27 = vmax.f32 %v6987_v2, %v7065_v7  ;;  %v1127_v5 = vmax.f32 %v6989_v63, %v7084_v34  ;;  %v1516_v6 = vrot.slane %v1412_v41, 1 }
 0x174   : > { %v1661_v9 = vrot.slane %v1412_v41, 2  ;;  %v1806_v29 = vrot.slane %v1412_v41, 3  ;;  %v1951_v50 = vrot.slane %v1412_v41, 4  ;;  %v1413_v21 = vmax.f32 %v1316_v28, %v7137_v42 }
 0x175   : > { %v1906_v19 = vmax.f32 %v1761_v3, %v1805_v23  ;;  %v7148_v26 = vmax.f32 %v1317_v20, %v7139_v24  ;;  %v1318_v25 = vmax.f32 %v1221_v1, %v1270_v12  ;;  %v1517_v13 = vsel %vm1497_vm4, %v1514_v37, %v1516_v6 }
 0x176   : > { %v1662_v47 = vsel %vm1642_vm5, %v1659_v39, %v1661_v9  ;;  %v1807_v2 = vsel %vm1787_vm6, %v1804_v59, %v1806_v29  ;;  %v1952_v63 = vsel %vm1932_vm7, %v1949_v43, %v1951_v50  ;;  %v1617_v14 = vmax.f32 %v7120_v58, %v1517_v13  ;;  %v7174_v50 = vld [vmem:[#allocation2 + $0xd8] sm:$0xff] }
 0x177   : > { %v2051_v52 = vmax.f32 %v1906_v19, %v1950_v15  ;;  %v1518_v56 = vrot.slane %v1413_v21, 1  ;;  %v1519_v36 = vrot.slane %v7148_v26, 1  ;;  %v1663_v18 = vrot.slane %v1413_v21, 2  ;;  %v1176_v13 = vld [vmem:[#allocation2 + $0xb8] sm:$0xf] }
 0x178   : > { %v1664_v53 = vrot.slane %v7148_v26, 2  ;;  %v1808_v16 = vrot.slane %v1413_v21, 3  ;;  %v1809_v33 = vrot.slane %v7148_v26, 3  ;;  %v1762_v0 = vmax.f32 %v1617_v14, %v1662_v47 }
 0x179   : > { %v5834_v35 = vpack.c.bf16 %v2051_v52, %v2051_v52  ;;  %v1520_v37 = vsel %vm1497_vm4, %v1518_v56, %v1519_v36  ;;  %v1953_v31 = vrot.slane %v1413_v21, 4  ;;  %2308 = vst.msk [vmem:[#allocation2 + $0x7a] sm:$0xff] %vm934_vm1, %v2051_v52  ;;  %v1954_v59 = vrot.slane %v7148_v26, 4 }
 0x17a   : > { %v1618_v39 = vmax.f32 %v1413_v21, %v1520_v37  ;;  %v1665_v58 = vsel %vm1642_vm5, %v1663_v18, %v1664_v53  ;;  %v1810_v22 = vsel %vm1787_vm6, %v1808_v16, %v1809_v33  ;;  %v1907_v45 = vmax.f32 %v1762_v0, %v1807_v2  ;;  %v7179_v21 = vld [vmem:[#allocation2 + $0xe0] sm:$0xff] }
 0x17b   : > { %2185 = vrot.lane.b32.xlu0 %v5834_v35, %s6474_s16  ;;  %v1415_v54 = vmax.f32 %v1318_v25, %v1367_v46  ;;  %v1222_v55 = vmax.f32 %v1126_v27, %v7110_v30  ;;  %v1223_v43 = vmax.f32 %v1127_v5, %v7112_v8  ;;  %v1955_v32 = vsel %vm1932_vm7, %v1953_v31, %v1954_v59 }
 0x17c   : > { %v1763_v62 = vmax.f32 %v1618_v39, %v1665_v58  ;;  %v1128_v44 = vmax.f32 %v1031_v57, %v1080_v40  ;;  %v1129_v23 = vmax.f32 %v7065_v7, %v7110_v30  ;;  %v2052_v51 = vmax.f32 %v1907_v45, %v1952_v63  ;;  %v1273_v63 = vld [vmem:[#allocation2 + $0xd0] sm:$0xf]  ;;  %v1034_v40 = vld [vmem:[#allocation2 + $0xa0] sm:$0xf] }
 0x17d   : > { %v1521_v15 = vrot.slane %v1415_v54, 1  ;;  %v1666_v41 = vrot.slane %v1415_v54, 2  ;;  %v1811_v28 = vrot.slane %v1415_v54, 3  ;;  %v1956_v3 = vrot.slane %v1415_v54, 4  ;;  %v7194_v57 = vld [vmem:[#allocation2 + $0xf0] sm:$0xff] }
 0x17e   : > { %v1908_v20 = vmax.f32 %v1763_v62, %v1810_v22  ;;  %v1319_v1 = vmax.f32 %v1222_v55, %v7137_v42  ;;  %v1320_v27 = vmax.f32 %v1223_v43, %v7139_v24  ;;  %v5835_v6 = vpack.c.bf16 %v2052_v51, %v2052_v51  ;;  %2309 = vst.msk [vmem:[#allocation2 + $0x82] sm:$0xff] %vm934_vm1, %v2052_v51  ;;  %v1370_v22 = vld [vmem:[#allocation2 + $0xe8] sm:$0xf]  ;;  %v7196_v62 = vld [vmem:[#allocation2 + $0xf8] sm:$0xff] }
 0x17f   : > { %v1522_v5 = vsel %vm1497_vm4, %v1519_v36, %v1521_v15  ;;  %v1667_v9 = vsel %vm1642_vm5, %v1664_v53, %v1666_v41  ;;  %v1812_v29 = vsel %vm1787_vm6, %v1809_v33, %v1811_v28  ;;  %v1957_v19 = vsel %vm1932_vm7, %v1954_v59, %v1956_v3  ;;  %v1179_v15 = vld [vmem:[#allocation2 + $0xd0] sm:$0xf] }
 0x180   : > { %v2053_v7 = vmax.f32 %v1908_v20, %v1955_v32  ;;  %v1619_v12 = vmax.f32 %v7148_v26, %v1522_v5  ;;  %v1416_v25 = vmax.f32 %v1319_v1, %v7174_v50  ;;  %2187 = vrot.lane.b32.xlu1 %v5835_v6, %s6474_s16  ;;  %v1417_v47 = vmax.f32 %v1320_v27, %v7179_v21  ;;  %v1083_v32 = vld [vmem:[#allocation2 + $0xb8] sm:$0xf] }
 0x181   : > { %v1224_v2 = vmax.f32 %v1128_v44, %v1176_v13  ;;  %v1130_v52 = vmax.f32 %v7084_v34, %v7112_v8  ;;  %v1225_v14 = vmax.f32 %v1129_v23, %v7137_v42  ;;  %v1131_v51 = vmax.f32 %v1034_v40, %v1083_v32 }
 0x182   : > { %v5836_v56 = vpack.c.bf16 %v2053_v7, %v2053_v7  ;;  %v1764_v26 = vmax.f32 %v1619_v12, %v1667_v9  ;;  %v1523_v36 = vrot.slane %v1416_v25, 1  ;;  %v1668_v18 = vrot.slane %v1416_v25, 2  ;;  %2310 = vst.msk [vmem:[#allocation2 + $0x92] sm:$0xff] %vm934_vm1, %v2053_v7 }
 0x183   : > { %v1524_v53 = vrot.slane %v1417_v47, 1  ;;  %v1669_v16 = vrot.slane %v1417_v47, 2  ;;  %v1813_v33 = vrot.slane %v1416_v25, 3  ;;  %v1814_v46 = vrot.slane %v1417_v47, 3 }
 0x184   : > { %2189 = vrot.lane.b32.xlu0 %v5836_v56, %s6474_s16  ;;  %v1909_v35 = vmax.f32 %v1764_v26, %v1812_v29  ;;  %v1958_v0 = vrot.slane %v1416_v25, 4  ;;  %v1959_v37 = vrot.slane %v1417_v47, 4  ;;  %v1321_v31 = vmax.f32 %v1224_v2, %v1273_v63 }
 0x185   : > { %v1525_v34 = vsel %vm1497_vm4, %v1523_v36, %v1524_v53  ;;  %v1670_v39 = vsel %vm1642_vm5, %v1668_v18, %v1669_v16  ;;  %v1815_v58 = vsel %vm1787_vm6, %v1813_v33, %v1814_v46  ;;  %v1226_v59 = vmax.f32 %v1130_v52, %v7139_v24  ;;  %v1086_v33 = vld [vmem:[#allocation2 + $0xd0] sm:$0xf] }
 0x186   : > { %v2054_v45 = vmax.f32 %v1909_v35, %v1957_v19  ;;  %v1620_v54 = vmax.f32 %v1416_v25, %v1525_v34  ;;  %v1960_v55 = vsel %vm1932_vm7, %v1958_v0, %v1959_v37  ;;  %v1418_v43 = vmax.f32 %v1321_v31, %v1370_v22  ;;  %v1276_v0 = vld [vmem:[#allocation2 + $0xe8] sm:$0xf]  ;;  %v7219_v31 = vld [vmem:[#allocation2 + $0x30] sm:$0xff]  ;;  %v1037_v22 = vld [vmem:[#allocation2 + $0xb8] sm:$0xf] }
 0x187   : > { %v1322_v44 = vmax.f32 %v1225_v14, %v7174_v50  ;;  %v1323_v23 = vmax.f32 %v1226_v59, %v7179_v21  ;;  %v1132_v41 = vmax.f32 %v7110_v30, %v7137_v42  ;;  %v1227_v12 = vmax.f32 %v1131_v51, %v1179_v15  ;;  %v7222_v59 = vld [vmem:[#allocation2 + $0x38] sm:$0xff]  ;;  %v1182_v51 = vld [vmem:[#allocation2 + $0xe8] sm:$0xf] }
 0x188   : > { %v5837_v28 = vpack.c.bf16 %v2054_v45, %v2054_v45  ;;  %v1765_v20 = vmax.f32 %v1620_v54, %v1670_v39  ;;  %v1526_v3 = vrot.slane %v1418_v43, 1  ;;  %v1671_v1 = vrot.slane %v1418_v43, 2  ;;  %2311 = vst.msk [vmem:[#allocation2 + $0x9a] sm:$0xff] %vm934_vm1, %v2054_v45 }
 0x189   : > { %v1816_v27 = vrot.slane %v1418_v43, 3  ;;  %v1961_v6 = vrot.slane %v1418_v43, 4  ;;  %v1419_v5 = vmax.f32 %v1322_v44, %v7194_v57  ;;  %v7205_v9 = vmax.f32 %v1323_v23, %v7196_v62 }
 0x18a   : > { %2191 = vrot.lane.b32.xlu1 %v5837_v28, %s6474_s16  ;;  %v1910_v29 = vmax.f32 %v1765_v20, %v1815_v58  ;;  %v1527_v7 = vsel %vm1497_vm4, %v1524_v53, %v1526_v3  ;;  %v1672_v30 = vsel %vm1642_vm5, %v1669_v16, %v1671_v1  ;;  %v1324_v58 = vmax.f32 %v1227_v12, %v1276_v0  ;;  %v1279_v1 = vld [vmem:[#allocation2 + $0x100] sm:$0xf] }
 0x18b   : > { %v1621_v19 = vmax.f32 %v1417_v47, %v1527_v7  ;;  %v1817_v25 = vsel %vm1787_vm6, %v1814_v46, %v1816_v27  ;;  %v1962_v13 = vsel %vm1932_vm7, %v1959_v37, %v1961_v6  ;;  %v1528_v2 = vrot.slane %v1419_v5, 1  ;;  %v1373_v37 = vld [vmem:[#allocation2 + $0x100] sm:$0xf] }
 0x18c   : > { %v2055_v63 = vmax.f32 %v1910_v29, %v1960_v55  ;;  %v1529_v52 = vrot.slane %v7205_v9, 1  ;;  %v1673_v14 = vrot.slane %v1419_v5, 2  ;;  %v1674_v56 = vrot.slane %v7205_v9, 2  ;;  %v7241_v29 = vld [vmem:[#allocation2 + $0x108] sm:$0xff] }
 0x18d   : > { %v1766_v26 = vmax.f32 %v1621_v19, %v1672_v30  ;;  %v1818_v36 = vrot.slane %v1419_v5, 3  ;;  %v1819_v18 = vrot.slane %v7205_v9, 3  ;;  %v1963_v53 = vrot.slane %v1419_v5, 4 }
 0x18e   : > { %v5838_v16 = vpack.c.bf16 %v2055_v63, %v2055_v63  ;;  %v1530_v47 = vsel %vm1497_vm4, %v1528_v2, %v1529_v52  ;;  %v1675_v46 = vsel %vm1642_vm5, %v1673_v14, %v1674_v56  ;;  %v1964_v35 = vrot.slane %v7205_v9, 4  ;;  %2312 = vst.msk [vmem:[#allocation2 + $0xaa] sm:$0xff] %vm934_vm1, %v2055_v63  ;;  %v7255_v63 = vld [vmem:[#allocation2 + $0x48] sm:$0xff] }
 0x18f   : > { %v1911_v40 = vmax.f32 %v1766_v26, %v1817_v25  ;;  %v1622_v34 = vmax.f32 %v1419_v5, %v1530_v47  ;;  %v1820_v39 = vsel %vm1787_vm6, %v1818_v36, %v1819_v18  ;;  %v1133_v54 = vmax.f32 %v7112_v8, %v7139_v24  ;;  %v1376_v47 = vld [vmem:[#allocation2 + $0x118] sm:$0xf] }
 0x190   : > { %2193 = vrot.lane.b32.xlu0 %v5838_v16, %s6474_s16  ;;  %v1965_v45 = vsel %vm1932_vm7, %v1963_v53, %v1964_v35  ;;  %v1228_v55 = vmax.f32 %v1132_v41, %v7174_v50  ;;  %v1134_v43 = vmax.f32 %v1037_v22, %v1086_v33  ;;  %v1421_v23 = vmax.f32 %v1324_v58, %v1373_v37  ;;  %v7265_v58 = vld [vmem:[#allocation2 + $0x60] sm:$0xff] }
 0x191   : > { %v2056_v32 = vmax.f32 %v1911_v40, %v1962_v13  ;;  %v1767_v44 = vmax.f32 %v1622_v34, %v1675_v46  ;;  %v2526_v15 = vmax.f32 %v2430_v4, %v7219_v31  ;;  %v1229_v28 = vmax.f32 %v1133_v54, %v7179_v21 }
 0x192   : > { %v1325_v20 = vmax.f32 %v1228_v55, %v7194_v57  ;;  %v1230_v3 = vmax.f32 %v1134_v43, %v1182_v51  ;;  %v7239_v8 = vmax.f32 %v2431_v17, %v7222_v59  ;;  %v1531_v6 = vrot.slane %v1421_v23, 1  ;;  %v7249_v17 = vld [vmem:[#allocation2 + $0x110] sm:$0xff]  ;;  %v7270_v51 = vld [vmem:[#allocation2 + $0x68] sm:$0xff] }
 0x193   : > { %v5839_v41 = vpack.c.bf16 %v2056_v32, %v2056_v32  ;;  %v1912_v27 = vmax.f32 %v1767_v44, %v1820_v39  ;;  %v1676_v5 = vrot.slane %v1421_v23, 2  ;;  %2313 = vst.msk [vmem:[#allocation2 + $0xb2] sm:$0xff] %vm934_vm1, %v2056_v32  ;;  %v1821_v48 = vrot.slane %v1421_v23, 3 }
 0x194   : > { %v1966_v49 = vrot.slane %v1421_v23, 4  ;;  %v1326_v4 = vmax.f32 %v1229_v28, %v7196_v62  ;;  %v1422_v7 = vmax.f32 %v1325_v20, %v7241_v29  ;;  %v1532_v60 = vsel %vm1497_vm4, %v1529_v52, %v1531_v6 }
 0x195   : > { %2195 = vrot.lane.b32.xlu1 %v5839_v41, %s6474_s16  ;;  %v2057_v30 = vmax.f32 %v1912_v27, %v1965_v45  ;;  %v1677_v61 = vsel %vm1642_vm5, %v1674_v56, %v1676_v5  ;;  %v1327_v12 = vmax.f32 %v1230_v3, %v1279_v1  ;;  %v1623_v19 = vmax.f32 %v7205_v9, %v1532_v60  ;;  %v2480_v1 = vld [vmem:[#allocation2 + $0x40] sm:$0xf]  ;;  %v7275_v41 = vld [vmem:[#allocation2 + $0xd0] sm:$0xf] }
 0x196   : > { %v1822_v25 = vsel %vm1787_vm6, %v1819_v18, %v1821_v48  ;;  %v1967_v13 = vsel %vm1932_vm7, %v1964_v35, %v1966_v49  ;;  %v1423_v2 = vmax.f32 %v1326_v4, %v7249_v17  ;;  %v1533_v26 = vrot.slane %v1422_v7, 1  ;;  %v7259_v35 = vld [vmem:[#allocation2 + $0x50] sm:$0xff] }
 0x197   : > { %v5840_v14 = vpack.c.bf16 %v2057_v30, %v2057_v30  ;;  %v1678_v36 = vrot.slane %v1422_v7, 2  ;;  %v1823_v53 = vrot.slane %v1422_v7, 3  ;;  %2314 = vst.msk [vmem:[#allocation2 + $0xc2] sm:$0xff] %vm934_vm1, %v2057_v30  ;;  %v1768_v52 = vmax.f32 %v1623_v19, %v1677_v61  ;;  %v2576_v30 = vld [vmem:[#allocation2 + $0x58] sm:$0xf] }
 0x198   : > { %v1534_v56 = vrot.slane %v1423_v2, 1  ;;  %v1679_v33 = vrot.slane %v1423_v2, 2  ;;  %v1824_v16 = vrot.slane %v1423_v2, 3  ;;  %v1968_v9 = vrot.slane %v1422_v7, 4 }
 0x199   : > { %2197 = vrot.lane.b32.xlu0 %v5840_v14, %s6474_s16  ;;  %v1969_v18 = vrot.slane %v1423_v2, 4  ;;  %v1424_v46 = vmax.f32 %v1327_v12, %v1376_v47  ;;  %v2622_v0 = vmax.f32 %v2526_v15, %v7255_v63  ;;  %v1913_v37 = vmax.f32 %v1768_v52, %v1822_v25  ;;  %v2387_v47 = vld [vmem:[#allocation2 + $0x40] sm:$0xf] }
 0x19a   : > { %v1535_v40 = vsel %vm1497_vm4, %v1533_v26, %v1534_v56  ;;  %v1680_v34 = vsel %vm1642_vm5, %v1678_v36, %v1679_v33  ;;  %v1825_v39 = vsel %vm1787_vm6, %v1823_v53, %v1824_v16  ;;  %v2623_v23 = vmax.f32 %v7239_v8, %v7259_v35  ;;  %v2672_v26 = vld [vmem:[#allocation2 + $0x70] sm:$0xf] }
 0x19b   : > { %v1624_v22 = vmax.f32 %v1422_v7, %v1535_v40  ;;  %v1970_v45 = vsel %vm1932_vm7, %v1968_v9, %v1969_v18  ;;  %v1536_v54 = vrot.slane %v1424_v46, 1  ;;  %v1681_v55 = vrot.slane %v1424_v46, 2  ;;  %v6375_v40 = vld [vmem:[#allocation2 + $0x20] sm:$0xff] }
 0x19c   : > { %v2058_v43 = vmax.f32 %v1913_v37, %v1967_v13  ;;  %v1826_v32 = vrot.slane %v1424_v46, 3  ;;  %v1971_v44 = vrot.slane %v1424_v46, 4  ;;  %v2718_v3 = vmax.f32 %v2622_v0, %v7265_v58 }
 0x19d   : > { %v1769_v15 = vmax.f32 %v1624_v22, %v1680_v34  ;;  %v1537_v28 = vsel %vm1497_vm4, %v1534_v56, %v1536_v54  ;;  %v1682_v20 = vsel %vm1642_vm5, %v1679_v33, %v1681_v55  ;;  %v7281_v49 = vmax.f32 %v2623_v23, %v7270_v51  ;;  %v6374_v56 = vld [vmem:[#allocation2 + $0x18] sm:$0xff]  ;;  %v7302_v55 = vld [vmem:[#allocation2 + $0xe8] sm:$0xf] }
 0x19e   : > { %v5841_v27 = vpack.c.bf16 %v2058_v43, %v2058_v43  ;;  %v1625_v6 = vmax.f32 %v1423_v2, %v1537_v28  ;;  %v1827_v5 = vsel %vm1787_vm6, %v1824_v16, %v1826_v32  ;;  %v1972_v48 = vsel %vm1932_vm7, %v1969_v18, %v1971_v44  ;;  %2315 = vst.msk [vmem:[#allocation2 + $0xca] sm:$0xff] %vm934_vm1, %v2058_v43  ;;  %v2339_v16 = vld [vmem:[#allocation2 + $0x28] sm:$0xf] }
 0x19f   : > { %v1914_v8 = vmax.f32 %v1769_v15, %v1825_v39  ;;  %v2814_v4 = vrot.slane %v2718_v3, 1  ;;  %v2958_v7 = vrot.slane %v2718_v3, 2  ;;  %v3102_v61 = vrot.slane %v2718_v3, 3  ;;  %v7304_v43 = vld [vmem:[#allocation2 + $0xe8] sm:$0xf] }
 0x1a0   : > { %2199 = vrot.lane.b32.xlu1 %v5841_v27, %s6474_s16  ;;  %v1770_v60 = vmax.f32 %v1625_v6, %v1682_v20  ;;  %v3246_v12 = vrot.slane %v2718_v3, 4  ;;  %v2528_v19 = vmax.f32 %v2432_v38, %v2480_v1  ;;  %v2815_v13 = vrot.slane %v7281_v49, 1  ;;  %v7309_v27 = vld [vmem:[#allocation2 + $0x78] sm:$0xff]  ;;  %v2579_v6 = vld [vmem:[#allocation2 + $0x70] sm:$0xf] }
 0x1a1   : > { %v2059_v25 = vmax.f32 %v1914_v8, %v1970_v45  ;;  %v2959_v2 = vrot.slane %v7281_v49, 2  ;;  %v3103_v14 = vrot.slane %v7281_v49, 3  ;;  %v3247_v53 = vrot.slane %v7281_v49, 4  ;;  %v2483_v45 = vld [vmem:[#allocation2 + $0x58] sm:$0xf]  ;;  %v7314_v8 = vld [vmem:[#allocation2 + $0x80] sm:$0xff] }
 0x1a2   : > { %v1915_v36 = vmax.f32 %v1770_v60, %v1827_v5  ;;  %v2624_v52 = vmax.f32 %v2528_v19, %v2576_v30  ;;  %v2433_v33 = vmax.f32 %v6374_v56, %v7219_v31  ;;  %v2816_v10 = vsel %vm1497_vm4, %v2814_v4, %v2815_v13 }
 0x1a3   : > { %v5842_v9 = vpack.c.bf16 %v2059_v25, %v2059_v25  ;;  %v2960_v11 = vsel %vm1642_vm5, %v2958_v7, %v2959_v2  ;;  %v3104_v38 = vsel %vm1787_vm6, %v3102_v61, %v3103_v14  ;;  %2316 = vst.msk [vmem:[#allocation2 + $0xda] sm:$0xff] %vm934_vm1, %v2059_v25  ;;  %v2926_v46 = vmax.f32 %v2718_v3, %v2816_v10 }
 0x1a4   : > { %v2060_v18 = vmax.f32 %v1915_v36, %v1972_v48  ;;  %v3248_v0 = vsel %vm1932_vm7, %v3246_v12, %v3247_v53  ;;  %v2720_v37 = vmax.f32 %v2624_v52, %v2672_v26  ;;  %v2434_v34 = vmax.f32 %v6375_v40, %v7222_v59  ;;  %v2675_v36 = vld [vmem:[#allocation2 + $0x88] sm:$0xf] }
 0x1a5   : > { %2201 = vrot.lane.b32.xlu0 %v5842_v9, %s6474_s16  ;;  %v2529_v39 = vmax.f32 %v2433_v33, %v7255_v63  ;;  %v2435_v22 = vmax.f32 %v2339_v16, %v2387_v47  ;;  %v1135_v54 = vmax.f32 %v7137_v42, %v7174_v50  ;;  %v3070_v44 = vmax.f32 %v2926_v46, %v2960_v11 }
 0x1a6   : > { %v5843_v32 = vpack.c.bf16 %v2060_v18, %v2060_v18  ;;  %v2817_v23 = vrot.slane %v2720_v37, 1  ;;  %v2961_v15 = vrot.slane %v2720_v37, 2  ;;  %2317 = vst.msk [vmem:[#allocation2 + $0xe2] sm:$0xff] %vm934_vm1, %v2060_v18  ;;  %v3105_v28 = vrot.slane %v2720_v37, 3 }
 0x1a7   : > { %v3249_v20 = vrot.slane %v2720_v37, 4  ;;  %v2530_v3 = vmax.f32 %v2434_v34, %v7259_v35  ;;  %v2625_v1 = vmax.f32 %v2529_v39, %v7265_v58  ;;  %v3214_v42 = vmax.f32 %v3070_v44, %v3104_v38 }
 0x1a8   : > { %2203 = vrot.lane.b32.xlu1 %v5843_v32, %s6474_s16  ;;  %v2818_v5 = vsel %vm1497_vm4, %v2815_v13, %v2817_v23  ;;  %v2962_v48 = vsel %vm1642_vm5, %v2959_v2, %v2961_v15  ;;  %v2531_v4 = vmax.f32 %v2435_v22, %v2483_v45  ;;  %v3106_v30 = vsel %vm1787_vm6, %v3103_v14, %v3105_v28  ;;  %v7334_v45 = vld [vmem:[#allocation2 + $0x120] sm:$0xff]  ;;  %v7339_v15 = vld [vmem:[#allocation2 + $0x128] sm:$0xff] }
 0x1a9   : > { %v2927_v7 = vmax.f32 %v7281_v49, %v2818_v5  ;;  %v3250_v60 = vsel %vm1932_vm7, %v3247_v53, %v3249_v20  ;;  %v2626_v61 = vmax.f32 %v2530_v3, %v7270_v51  ;;  %v3358_v12 = vmax.f32 %v3214_v42, %v3248_v0  ;;  %v1185_v28 = vld [vmem:[#allocation2 + $0x100] sm:$0xf] }
 0x1aa   : > { %v2721_v19 = vmax.f32 %v2625_v1, %v7309_v27  ;;  %v2627_v25 = vmax.f32 %v2531_v4, %v2579_v6  ;;  %v1136_v13 = vmax.f32 %v7139_v24, %v7179_v21  ;;  %v1231_v52 = vmax.f32 %v1135_v54, %v7194_v57  ;;  %v7336_v54 = vld [vmem:[#allocation2 + $0x40] sm:$0xf] }
 0x1ab   : > { %v3071_v26 = vmax.f32 %v2927_v7, %v2962_v48  ;;  %v2722_v2 = vmax.f32 %v2626_v61, %v7314_v8  ;;  %v1137_v49 = vmax.f32 %v7275_v41, %v7302_v55  ;;  %v5860_v14 = vpack.c.bf16 %v3358_v12, %v3358_v12  ;;  %3615 = vst.msk [vmem:[#allocation2 + $0x32] sm:$0xff] %vm934_vm1, %v3358_v12 }
 0x1ac   : > { %v2819_v53 = vrot.slane %v2721_v19, 1  ;;  %v2963_v56 = vrot.slane %v2721_v19, 2  ;;  %v3107_v33 = vrot.slane %v2721_v19, 3  ;;  %v3251_v24 = vrot.slane %v2721_v19, 4 }
 0x1ad   : > { %v3215_v16 = vmax.f32 %v3071_v26, %v3106_v30  ;;  %v2820_v47 = vrot.slane %v2722_v2, 1  ;;  %v2964_v9 = vrot.slane %v2722_v2, 2  ;;  %v3108_v10 = vrot.slane %v2722_v2, 3  ;;  %3486 = vrot.lane.b32.xlu0 %v5860_v14, %s6475_s8  ;;  %v1282_v26 = vld [vmem:[#allocation2 + $0x118] sm:$0xf] }
 0x1ae   : > { %v3252_v11 = vrot.slane %v2722_v2, 4  ;;  %v2723_v38 = vmax.f32 %v2627_v25, %v2675_v36  ;;  %v1232_v18 = vmax.f32 %v1136_v13, %v7196_v62  ;;  %v1328_v23 = vmax.f32 %v1231_v52, %v7241_v29 }
 0x1af   : > { %v3359_v46 = vmax.f32 %v3215_v16, %v3250_v60  ;;  %v2821_v41 = vsel %vm1497_vm4, %v2819_v53, %v2820_v47  ;;  %v2965_v0 = vsel %vm1642_vm5, %v2963_v56, %v2964_v9  ;;  %v3109_v37 = vsel %vm1787_vm6, %v3107_v33, %v3108_v10  ;;  %v1379_v53 = vld [vmem:[#allocation2 + $0x130] sm:$0xf] }
 0x1b0   : > { %v2928_v40 = vmax.f32 %v2721_v19, %v2821_v41  ;;  %v3253_v34 = vsel %vm1932_vm7, %v3251_v24, %v3252_v11  ;;  %v2822_v39 = vrot.slane %v2723_v38, 1  ;;  %v2966_v22 = vrot.slane %v2723_v38, 2 }
 0x1b1   : > { %v5861_v55 = vpack.c.bf16 %v3359_v46, %v3359_v46  ;;  %v3110_v32 = vrot.slane %v2723_v38, 3  ;;  %v3254_v44 = vrot.slane %v2723_v38, 4  ;;  %3616 = vst.msk [vmem:[#allocation2 + $0x3a] sm:$0xff] %vm934_vm1, %v3359_v46  ;;  %v1329_v6 = vmax.f32 %v1232_v18, %v7249_v17 }
 0x1b2   : > { %v3072_v20 = vmax.f32 %v2928_v40, %v2965_v0  ;;  %v2823_v3 = vsel %vm1497_vm4, %v2820_v47, %v2822_v39  ;;  %v2967_v1 = vsel %vm1642_vm5, %v2964_v9, %v2966_v22  ;;  %v1425_v4 = vmax.f32 %v1328_v23, %v7334_v45  ;;  %v1092_v9 = vld [vmem:[#allocation2 + $0x100] sm:$0xf]  ;;  %v7366_v39 = vld [vmem:[#allocation2 + $0x58] sm:$0xf] }
 0x1b3   : > { %3488 = vrot.lane.b32.xlu1 %v5861_v55, %s6475_s8  ;;  %v2929_v42 = vmax.f32 %v2722_v2, %v2823_v3  ;;  %v3111_v5 = vsel %vm1787_vm6, %v3108_v10, %v3110_v32  ;;  %v3255_v48 = vsel %vm1932_vm7, %v3252_v11, %v3254_v44  ;;  %v1426_v30 = vmax.f32 %v1329_v6, %v7339_v15  ;;  %v1285_v3 = vld [vmem:[#allocation2 + $0x130] sm:$0xf] }
 0x1b4   : > { %v3216_v7 = vmax.f32 %v3072_v20, %v3109_v37  ;;  %v1233_v60 = vmax.f32 %v1137_v49, %v1185_v28  ;;  %v1138_v61 = vmax.f32 %v7174_v50, %v7194_v57  ;;  %v1538_v19 = vrot.slane %v1425_v4, 1 }
 0x1b5   : > { %v3073_v12 = vmax.f32 %v2929_v42, %v2967_v1  ;;  %v1683_v25 = vrot.slane %v1425_v4, 2  ;;  %v1828_v13 = vrot.slane %v1425_v4, 3  ;;  %v1539_v2 = vrot.slane %v1426_v30, 1 }
 0x1b6   : > { %v3360_v36 = vmax.f32 %v3216_v7, %v3253_v34  ;;  %v1684_v52 = vrot.slane %v1426_v30, 2  ;;  %v1829_v14 = vrot.slane %v1426_v30, 3  ;;  %v1973_v33 = vrot.slane %v1425_v4, 4  ;;  %v7364_v34 = vld [vmem:[#allocation2 + $0x58] sm:$0xf] }
 0x1b7   : > { %v3217_v56 = vmax.f32 %v3073_v12, %v3111_v5  ;;  %v1974_v16 = vrot.slane %v1426_v30, 4  ;;  %v1330_v47 = vmax.f32 %v1233_v60, %v1282_v26  ;;  %v1540_v49 = vsel %vm1497_vm4, %v1538_v19, %v1539_v2  ;;  %v7377_v60 = vld [vmem:[#allocation2 + $0x138] sm:$0xff]  ;;  %v7379_v12 = vld [vmem:[#allocation2 + $0x140] sm:$0xff] }
 0x1b8   : > { %v5862_v10 = vpack.c.bf16 %v3360_v36, %v3360_v36  ;;  %v1685_v50 = vsel %vm1642_vm5, %v1683_v25, %v1684_v52  ;;  %v1830_v24 = vsel %vm1787_vm6, %v1828_v13, %v1829_v14  ;;  %3617 = vst.msk [vmem:[#allocation2 + $0x4a] sm:$0xff] %vm934_vm1, %v3360_v36  ;;  %v1626_v38 = vmax.f32 %v1425_v4, %v1540_v49 }
 0x1b9   : > { %v3361_v11 = vmax.f32 %v3217_v56, %v3255_v48  ;;  %v1975_v18 = vsel %vm1932_vm7, %v1973_v33, %v1974_v16  ;;  %v1427_v46 = vmax.f32 %v1330_v47, %v1379_v53  ;;  %v1139_v41 = vmax.f32 %v7179_v21, %v7196_v62 }
 0x1ba   : > { %3490 = vrot.lane.b32.xlu0 %v5862_v10, %s6475_s8  ;;  %v1234_v0 = vmax.f32 %v1138_v61, %v7241_v29  ;;  %v1140_v37 = vmax.f32 %v7304_v43, %v1092_v9  ;;  %v2436_v40 = vmax.f32 %v7219_v31, %v7255_v63  ;;  %v1771_v55 = vmax.f32 %v1626_v38, %v1685_v50  ;;  %v1188_v43 = vld [vmem:[#allocation2 + $0x118] sm:$0xf]  ;;  %v1382_v10 = vld [vmem:[#allocation2 + $0x148] sm:$0xf] }
 0x1bb   : > { %v5863_v22 = vpack.c.bf16 %v3361_v11, %v3361_v11  ;;  %v1541_v32 = vrot.slane %v1427_v46, 1  ;;  %v1686_v44 = vrot.slane %v1427_v46, 2  ;;  %3618 = vst.msk [vmem:[#allocation2 + $0x52] sm:$0xff] %vm934_vm1, %v3361_v11  ;;  %v1831_v23 = vrot.slane %v1427_v46, 3 }
 0x1bc   : > { %v1976_v28 = vrot.slane %v1427_v46, 4  ;;  %v1235_v21 = vmax.f32 %v1139_v41, %v7249_v17  ;;  %v1331_v20 = vmax.f32 %v1234_v0, %v7334_v45  ;;  %v1916_v31 = vmax.f32 %v1771_v55, %v1830_v24 }
 0x1bd   : > { %3492 = vrot.lane.b32.xlu1 %v5863_v22, %s6475_s8  ;;  %v1542_v1 = vsel %vm1497_vm4, %v1539_v2, %v1541_v32  ;;  %v1687_v6 = vsel %vm1642_vm5, %v1684_v52, %v1686_v44  ;;  %v1236_v42 = vmax.f32 %v1140_v37, %v1188_v43  ;;  %v1832_v48 = vsel %vm1787_vm6, %v1829_v14, %v1831_v23  ;;  %v7400_v23 = vld [vmem:[#allocation2 + $0x98] sm:$0xff] }
 0x1be   : > { %v1627_v5 = vmax.f32 %v1426_v30, %v1542_v1  ;;  %v1977_v4 = vsel %vm1932_vm7, %v1974_v16, %v1976_v28  ;;  %v1332_v7 = vmax.f32 %v1235_v21, %v7339_v15  ;;  %v2061_v61 = vmax.f32 %v1916_v31, %v1975_v18  ;;  %v2486_v28 = vld [vmem:[#allocation2 + $0x70] sm:$0xf] }
 0x1bf   : > { %v1428_v19 = vmax.f32 %v1331_v20, %v7377_v60  ;;  %v1333_v25 = vmax.f32 %v1236_v42, %v1285_v3  ;;  %v2437_v13 = vmax.f32 %v7222_v59, %v7259_v35  ;;  %v2532_v36 = vmax.f32 %v2436_v40, %v7265_v58  ;;  %v7395_v40 = vld [vmem:[#allocation2 + $0x90] sm:$0xff] }
 0x1c0   : > { %v1772_v26 = vmax.f32 %v1627_v5, %v1687_v6  ;;  %v1429_v30 = vmax.f32 %v1332_v7, %v7379_v12  ;;  %v2438_v2 = vmax.f32 %v7336_v54, %v7364_v34  ;;  %v5844_v52 = vpack.c.bf16 %v2061_v61, %v2061_v61  ;;  %2318 = vst.msk [vmem:[#allocation2 + $0xf2] sm:$0xff] %vm934_vm1, %v2061_v61  ;;  %v7397_v34 = vld [vmem:[#allocation2 + $0x100] sm:$0xf]  ;;  %v2582_v7 = vld [vmem:[#allocation2 + $0x88] sm:$0xf] }
 0x1c1   : > { %v1543_v14 = vrot.slane %v1428_v19, 1  ;;  %v1688_v53 = vrot.slane %v1428_v19, 2  ;;  %v1833_v56 = vrot.slane %v1428_v19, 3  ;;  %v1978_v59 = vrot.slane %v1428_v19, 4 }
 0x1c2   : > { %v1917_v33 = vmax.f32 %v1772_v26, %v1832_v48  ;;  %v1544_v16 = vrot.slane %v1429_v30, 1  ;;  %v1689_v47 = vrot.slane %v1429_v30, 2  ;;  %v1834_v9 = vrot.slane %v1429_v30, 3  ;;  %2205 = vrot.lane.b32.xlu0 %v5844_v52, %s6474_s16 }
 0x1c3   : > { %v1979_v49 = vrot.slane %v1429_v30, 4  ;;  %v1430_v50 = vmax.f32 %v1333_v25, %v1382_v10  ;;  %v2533_v24 = vmax.f32 %v2437_v13, %v7270_v51  ;;  %v2628_v44 = vmax.f32 %v2532_v36, %v7309_v27 }
 0x1c4   : > { %v2062_v11 = vmax.f32 %v1917_v33, %v1977_v4  ;;  %v1545_v54 = vsel %vm1497_vm4, %v1543_v14, %v1544_v16  ;;  %v1690_v38 = vsel %vm1642_vm5, %v1688_v53, %v1689_v47  ;;  %v1835_v18 = vsel %vm1787_vm6, %v1833_v56, %v1834_v9  ;;  %v2678_v53 = vld [vmem:[#allocation2 + $0xa0] sm:$0xf] }
 0x1c5   : > { %v1628_v46 = vmax.f32 %v1428_v19, %v1545_v54  ;;  %v1980_v41 = vsel %vm1932_vm7, %v1978_v59, %v1979_v49  ;;  %v1546_v0 = vrot.slane %v1430_v50, 1  ;;  %v1691_v37 = vrot.slane %v1430_v50, 2 }
 0x1c6   : > { %v5845_v22 = vpack.c.bf16 %v2062_v11, %v2062_v11  ;;  %v1836_v55 = vrot.slane %v1430_v50, 3  ;;  %v1981_v32 = vrot.slane %v1430_v50, 4  ;;  %2319 = vst.msk [vmem:[#allocation2 + $0xfa] sm:$0xff] %vm934_vm1, %v2062_v11  ;;  %v2629_v3 = vmax.f32 %v2533_v24, %v7314_v8 }
 0x1c7   : > { %v1773_v21 = vmax.f32 %v1628_v46, %v1690_v38  ;;  %v1547_v20 = vsel %vm1497_vm4, %v1544_v16, %v1546_v0  ;;  %v1692_v43 = vsel %vm1642_vm5, %v1689_v47, %v1691_v37  ;;  %v2724_v42 = vmax.f32 %v2628_v44, %v7395_v40  ;;  %v2489_v46 = vld [vmem:[#allocation2 + $0x88] sm:$0xf]  ;;  %v7425_v0 = vld [vmem:[#allocation2 + $0x118] sm:$0xf] }
 0x1c8   : > { %2207 = vrot.lane.b32.xlu1 %v5845_v22, %s6474_s16  ;;  %v1629_v31 = vmax.f32 %v1429_v30, %v1547_v20  ;;  %v1837_v1 = vsel %vm1787_vm6, %v1834_v9, %v1836_v55  ;;  %v1982_v6 = vsel %vm1932_vm7, %v1979_v49, %v1981_v32  ;;  %v2725_v48 = vmax.f32 %v2629_v3, %v7400_v23  ;;  %v2393_v9 = vld [vmem:[#allocation2 + $0x70] sm:$0xf]  ;;  %v7427_v37 = vld [vmem:[#allocation2 + $0x118] sm:$0xf]  ;;  %v7432_v20 = vld [vmem:[#allocation2 + $0xa8] sm:$0xff] }
 0x1c9   : > { %v1918_v5 = vmax.f32 %v1773_v21, %v1835_v18  ;;  %v2534_v4 = vmax.f32 %v2438_v2, %v2486_v28  ;;  %v2439_v61 = vmax.f32 %v7255_v63, %v7265_v58  ;;  %v2824_v25 = vrot.slane %v2724_v42, 1 }
 0x1ca   : > { %v1774_v19 = vmax.f32 %v1629_v31, %v1692_v43  ;;  %v2968_v13 = vrot.slane %v2724_v42, 2  ;;  %v3112_v26 = vrot.slane %v2724_v42, 3  ;;  %v2825_v30 = vrot.slane %v2725_v48, 1  ;;  %v2585_v43 = vld [vmem:[#allocation2 + $0xa0] sm:$0xf] }
 0x1cb   : > { %v2063_v36 = vmax.f32 %v1918_v5, %v1980_v41  ;;  %v2969_v52 = vrot.slane %v2725_v48, 2  ;;  %v3113_v14 = vrot.slane %v2725_v48, 3  ;;  %v3256_v33 = vrot.slane %v2724_v42, 4 }
 0x1cc   : > { %v1919_v56 = vmax.f32 %v1774_v19, %v1837_v1  ;;  %v3257_v16 = vrot.slane %v2725_v48, 4  ;;  %v2630_v47 = vmax.f32 %v2534_v4, %v2582_v7  ;;  %v2826_v2 = vsel %vm1497_vm4, %v2824_v25, %v2825_v30  ;;  %v7437_v1 = vld [vmem:[#allocation2 + $0xb0] sm:$0xff] }
 0x1cd   : > { %v5846_v10 = vpack.c.bf16 %v2063_v36, %v2063_v36  ;;  %v2970_v59 = vsel %vm1642_vm5, %v2968_v13, %v2969_v52  ;;  %v3114_v63 = vsel %vm1787_vm6, %v3112_v26, %v3113_v14  ;;  %2320 = vst.msk [vmem:[#allocation2 + $0x10a] sm:$0xff] %vm934_vm1, %v2063_v36  ;;  %v2930_v50 = vmax.f32 %v2724_v42, %v2826_v2 }
 0x1ce   : > { %v2064_v49 = vmax.f32 %v1919_v56, %v1982_v6  ;;  %v3258_v24 = vsel %vm1932_vm7, %v3256_v33, %v3257_v16  ;;  %v2726_v11 = vmax.f32 %v2630_v47, %v2678_v53  ;;  %v2440_v54 = vmax.f32 %v7259_v35, %v7270_v51 }
 0x1cf   : > { %2209 = vrot.lane.b32.xlu0 %v5846_v10, %s6474_s16  ;;  %v2535_v38 = vmax.f32 %v2439_v61, %v7309_v27  ;;  %v2441_v18 = vmax.f32 %v7366_v39, %v2393_v9  ;;  %v1141_v41 = vmax.f32 %v7194_v57, %v7241_v29  ;;  %v3074_v55 = vmax.f32 %v2930_v50, %v2970_v59 }
 0x1d0   : > { %v5847_v22 = vpack.c.bf16 %v2064_v49, %v2064_v49  ;;  %v2827_v32 = vrot.slane %v2726_v11, 1  ;;  %v2971_v44 = vrot.slane %v2726_v11, 2  ;;  %2321 = vst.msk [vmem:[#allocation2 + $0x112] sm:$0xff] %vm934_vm1, %v2064_v49  ;;  %v3115_v28 = vrot.slane %v2726_v11, 3 }
 0x1d1   : > { %v3259_v35 = vrot.slane %v2726_v11, 4  ;;  %v2536_v21 = vmax.f32 %v2440_v54, %v7314_v8  ;;  %v2631_v39 = vmax.f32 %v2535_v38, %v7395_v40  ;;  %v3218_v57 = vmax.f32 %v3074_v55, %v3114_v63 }
 0x1d2   : > { %2211 = vrot.lane.b32.xlu1 %v5847_v22, %s6474_s16  ;;  %v2828_v3 = vsel %vm1497_vm4, %v2825_v30, %v2827_v32  ;;  %v2972_v31 = vsel %vm1642_vm5, %v2969_v52, %v2971_v44  ;;  %v2537_v6 = vmax.f32 %v2441_v18, %v2489_v46  ;;  %v3116_v5 = vsel %vm1787_vm6, %v3113_v14, %v3115_v28  ;;  %v2681_v30 = vld [vmem:[#allocation2 + $0xb8] sm:$0xf]  ;;  %v7456_v46 = vld [vmem:[#allocation2 + $0x150] sm:$0xff] }
 0x1d3   : > { %v2931_v42 = vmax.f32 %v2725_v48, %v2828_v3  ;;  %v3260_v4 = vsel %vm1932_vm7, %v3257_v16, %v3259_v35  ;;  %v2632_v7 = vmax.f32 %v2536_v21, %v7400_v23  ;;  %v3362_v61 = vmax.f32 %v3218_v57, %v3258_v24  ;;  %v7461_v44 = vld [vmem:[#allocation2 + $0x158] sm:$0xff]  ;;  %v1191_v28 = vld [vmem:[#allocation2 + $0x130] sm:$0xf] }
 0x1d4   : > { %v2727_v19 = vmax.f32 %v2631_v39, %v7432_v20  ;;  %v2633_v25 = vmax.f32 %v2537_v6, %v2585_v43  ;;  %v1142_v13 = vmax.f32 %v7196_v62, %v7249_v17  ;;  %v1237_v52 = vmax.f32 %v1141_v41, %v7334_v45  ;;  %v7458_v41 = vld [vmem:[#allocation2 + $0x70] sm:$0xf] }
 0x1d5   : > { %v3075_v26 = vmax.f32 %v2931_v42, %v2972_v31  ;;  %v2728_v36 = vmax.f32 %v2632_v7, %v7437_v1  ;;  %v1143_v48 = vmax.f32 %v7397_v34, %v7425_v0  ;;  %v5864_v14 = vpack.c.bf16 %v3362_v61, %v3362_v61  ;;  %3619 = vst.msk [vmem:[#allocation2 + $0x62] sm:$0xff] %vm934_vm1, %v3362_v61 }
 0x1d6   : > { %v2829_v53 = vrot.slane %v2727_v19, 1  ;;  %v2973_v56 = vrot.slane %v2727_v19, 2  ;;  %v3117_v33 = vrot.slane %v2727_v19, 3  ;;  %v3261_v62 = vrot.slane %v2727_v19, 4 }
 0x1d7   : > { %v3219_v16 = vmax.f32 %v3075_v26, %v3116_v5  ;;  %v2830_v47 = vrot.slane %v2728_v36, 1  ;;  %v2974_v9 = vrot.slane %v2728_v36, 2  ;;  %v3118_v10 = vrot.slane %v2728_v36, 3  ;;  %3494 = vrot.lane.b32.xlu0 %v5864_v14, %s6475_s8  ;;  %v1288_v26 = vld [vmem:[#allocation2 + $0x148] sm:$0xf] }
 0x1d8   : > { %v3262_v2 = vrot.slane %v2728_v36, 4  ;;  %v2729_v59 = vmax.f32 %v2633_v25, %v2681_v30  ;;  %v1238_v63 = vmax.f32 %v1142_v13, %v7339_v15  ;;  %v1334_v32 = vmax.f32 %v1237_v52, %v7377_v60 }
 0x1d9   : > { %v3363_v49 = vmax.f32 %v3219_v16, %v3260_v4  ;;  %v2831_v34 = vsel %vm1497_vm4, %v2829_v53, %v2830_v47  ;;  %v2975_v50 = vsel %vm1642_vm5, %v2973_v56, %v2974_v9  ;;  %v3119_v24 = vsel %vm1787_vm6, %v3117_v33, %v3118_v10  ;;  %v1385_v53 = vld [vmem:[#allocation2 + $0x160] sm:$0xf] }
 0x1da   : > { %v2932_v11 = vmax.f32 %v2727_v19, %v2831_v34  ;;  %v3263_v54 = vsel %vm1932_vm7, %v3261_v62, %v3262_v2  ;;  %v2832_v38 = vrot.slane %v2729_v59, 1  ;;  %v2976_v18 = vrot.slane %v2729_v59, 2 }
 0x1db   : > { %v5865_v0 = vpack.c.bf16 %v3363_v49, %v3363_v49  ;;  %v3120_v22 = vrot.slane %v2729_v59, 3  ;;  %v3264_v55 = vrot.slane %v2729_v59, 4  ;;  %3620 = vst.msk [vmem:[#allocation2 + $0x6a] sm:$0xff] %vm934_vm1, %v3363_v49  ;;  %v1335_v43 = vmax.f32 %v1238_v63, %v7379_v12 }
 0x1dc   : > { %v3076_v35 = vmax.f32 %v2932_v11, %v2975_v50  ;;  %v2833_v21 = vsel %vm1497_vm4, %v2830_v47, %v2832_v38  ;;  %v2977_v39 = vsel %vm1642_vm5, %v2974_v9, %v2976_v18  ;;  %v1431_v6 = vmax.f32 %v1334_v32, %v7456_v46  ;;  %v1098_v9 = vld [vmem:[#allocation2 + $0x130] sm:$0xf]  ;;  %v7488_v38 = vld [vmem:[#allocation2 + $0x88] sm:$0xf] }
 0x1dd   : > { %3496 = vrot.lane.b32.xlu1 %v5865_v0, %s6475_s8  ;;  %v2933_v57 = vmax.f32 %v2728_v36, %v2833_v21  ;;  %v3121_v3 = vsel %vm1787_vm6, %v3118_v10, %v3120_v22  ;;  %v3265_v31 = vsel %vm1932_vm7, %v3262_v2, %v3264_v55  ;;  %v1432_v5 = vmax.f32 %v1335_v43, %v7461_v44  ;;  %v1291_v21 = vld [vmem:[#allocation2 + $0x160] sm:$0xf] }
 0x1de   : > { %v3220_v42 = vmax.f32 %v3076_v35, %v3119_v24  ;;  %v1239_v4 = vmax.f32 %v1143_v48, %v1191_v28  ;;  %v1144_v7 = vmax.f32 %v7241_v29, %v7334_v45  ;;  %v1548_v19 = vrot.slane %v1431_v6, 1 }
 0x1df   : > { %v3077_v61 = vmax.f32 %v2933_v57, %v2977_v39  ;;  %v1693_v25 = vrot.slane %v1431_v6, 2  ;;  %v1838_v13 = vrot.slane %v1431_v6, 3  ;;  %v1549_v36 = vrot.slane %v1432_v5, 1 }
 0x1e0   : > { %v3364_v30 = vmax.f32 %v3220_v42, %v3263_v54  ;;  %v1694_v52 = vrot.slane %v1432_v5, 2  ;;  %v1839_v14 = vrot.slane %v1432_v5, 3  ;;  %v1983_v33 = vrot.slane %v1431_v6, 4  ;;  %v7486_v54 = vld [vmem:[#allocation2 + $0x88] sm:$0xf] }
 0x1e1   : > { %v3221_v56 = vmax.f32 %v3077_v61, %v3121_v3  ;;  %v1984_v16 = vrot.slane %v1432_v5, 4  ;;  %v1336_v47 = vmax.f32 %v1239_v4, %v1288_v26  ;;  %v1550_v48 = vsel %vm1497_vm4, %v1548_v19, %v1549_v36  ;;  %v7499_v4 = vld [vmem:[#allocation2 + $0x168] sm:$0xff]  ;;  %v7501_v61 = vld [vmem:[#allocation2 + $0x170] sm:$0xff] }
 0x1e2   : > { %v5866_v10 = vpack.c.bf16 %v3364_v30, %v3364_v30  ;;  %v1695_v29 = vsel %vm1642_vm5, %v1693_v25, %v1694_v52  ;;  %v1840_v62 = vsel %vm1787_vm6, %v1838_v13, %v1839_v14  ;;  %3621 = vst.msk [vmem:[#allocation2 + $0x7a] sm:$0xff] %vm934_vm1, %v3364_v30  ;;  %v1630_v59 = vmax.f32 %v1431_v6, %v1550_v48 }
 0x1e3   : > { %v3365_v2 = vmax.f32 %v3221_v56, %v3265_v31  ;;  %v1985_v63 = vsel %vm1932_vm7, %v1983_v33, %v1984_v16  ;;  %v1433_v49 = vmax.f32 %v1336_v47, %v1385_v53  ;;  %v1145_v34 = vmax.f32 %v7249_v17, %v7339_v15 }
 0x1e4   : > { %3498 = vrot.lane.b32.xlu0 %v5866_v10, %s6475_s8  ;;  %v1240_v50 = vmax.f32 %v1144_v7, %v7377_v60  ;;  %v1146_v24 = vmax.f32 %v7427_v37, %v1098_v9  ;;  %v2442_v11 = vmax.f32 %v7265_v58, %v7309_v27  ;;  %v1775_v0 = vmax.f32 %v1630_v59, %v1695_v29  ;;  %v1194_v37 = vld [vmem:[#allocation2 + $0x148] sm:$0xf]  ;;  %v1388_v10 = vld [vmem:[#allocation2 + $0x178] sm:$0xf] }
 0x1e5   : > { %v5867_v18 = vpack.c.bf16 %v3365_v2, %v3365_v2  ;;  %v1551_v22 = vrot.slane %v1433_v49, 1  ;;  %v1696_v55 = vrot.slane %v1433_v49, 2  ;;  %3622 = vst.msk [vmem:[#allocation2 + $0x82] sm:$0xff] %vm934_vm1, %v3365_v2  ;;  %v1841_v32 = vrot.slane %v1433_v49, 3 }
 0x1e6   : > { %v1986_v28 = vrot.slane %v1433_v49, 4  ;;  %v1241_v17 = vmax.f32 %v1145_v34, %v7379_v12  ;;  %v1337_v35 = vmax.f32 %v1240_v50, %v7456_v46  ;;  %v1920_v58 = vmax.f32 %v1775_v0, %v1840_v62 }
 0x1e7   : > { %3500 = vrot.lane.b32.xlu1 %v5867_v18, %s6475_s8  ;;  %v1552_v39 = vsel %vm1497_vm4, %v1549_v36, %v1551_v22  ;;  %v1697_v43 = vsel %vm1642_vm5, %v1694_v52, %v1696_v55  ;;  %v1242_v57 = vmax.f32 %v1146_v24, %v1194_v37  ;;  %v1842_v31 = vsel %vm1787_vm6, %v1839_v14, %v1841_v32  ;;  %v7522_v32 = vld [vmem:[#allocation2 + $0xc8] sm:$0xff] }
 0x1e8   : > { %v1631_v3 = vmax.f32 %v1432_v5, %v1552_v39  ;;  %v1987_v6 = vsel %vm1932_vm7, %v1984_v16, %v1986_v28  ;;  %v1338_v42 = vmax.f32 %v1241_v17, %v7461_v44  ;;  %v2065_v7 = vmax.f32 %v1920_v58, %v1985_v63  ;;  %v2492_v28 = vld [vmem:[#allocation2 + $0xa0] sm:$0xf] }
 0x1e9   : > { %v1434_v19 = vmax.f32 %v1337_v35, %v7499_v4  ;;  %v1339_v25 = vmax.f32 %v1242_v57, %v1291_v21  ;;  %v2443_v13 = vmax.f32 %v7270_v51, %v7314_v8  ;;  %v2538_v30 = vmax.f32 %v2442_v11, %v7395_v40  ;;  %v7517_v11 = vld [vmem:[#allocation2 + $0xc0] sm:$0xff] }
 0x1ea   : > { %v1776_v26 = vmax.f32 %v1631_v3, %v1697_v43  ;;  %v1435_v5 = vmax.f32 %v1338_v42, %v7501_v61  ;;  %v2444_v36 = vmax.f32 %v7458_v41, %v7486_v54  ;;  %v5848_v52 = vpack.c.bf16 %v2065_v7, %v2065_v7  ;;  %2322 = vst.msk [vmem:[#allocation2 + $0x122] sm:$0xff] %vm934_vm1, %v2065_v7  ;;  %v7519_v54 = vld [vmem:[#allocation2 + $0x130] sm:$0xf]  ;;  %v2588_v42 = vld [vmem:[#allocation2 + $0xb8] sm:$0xf] }
 0x1eb   : > { %v1553_v14 = vrot.slane %v1434_v19, 1  ;;  %v1698_v53 = vrot.slane %v1434_v19, 2  ;;  %v1843_v56 = vrot.slane %v1434_v19, 3  ;;  %v1988_v51 = vrot.slane %v1434_v19, 4 }
 0x1ec   : > { %v1921_v33 = vmax.f32 %v1776_v26, %v1842_v31  ;;  %v1554_v16 = vrot.slane %v1435_v5, 1  ;;  %v1699_v47 = vrot.slane %v1435_v5, 2  ;;  %v1844_v9 = vrot.slane %v1435_v5, 3  ;;  %2213 = vrot.lane.b32.xlu0 %v5848_v52, %s6474_s16 }
 0x1ed   : > { %v1989_v48 = vrot.slane %v1435_v5, 4  ;;  %v1436_v29 = vmax.f32 %v1339_v25, %v1388_v10  ;;  %v2539_v62 = vmax.f32 %v2443_v13, %v7400_v23  ;;  %v2634_v55 = vmax.f32 %v2538_v30, %v7432_v20 }
 0x1ee   : > { %v2066_v2 = vmax.f32 %v1921_v33, %v1987_v6  ;;  %v1555_v41 = vsel %vm1497_vm4, %v1553_v14, %v1554_v16  ;;  %v1700_v59 = vsel %vm1642_vm5, %v1698_v53, %v1699_v47  ;;  %v1845_v63 = vsel %vm1787_vm6, %v1843_v56, %v1844_v9  ;;  %v2684_v53 = vld [vmem:[#allocation2 + $0xd0] sm:$0xf] }
 0x1ef   : > { %v1632_v49 = vmax.f32 %v1434_v19, %v1555_v41  ;;  %v1990_v34 = vsel %vm1932_vm7, %v1988_v51, %v1989_v48  ;;  %v1556_v50 = vrot.slane %v1436_v29, 1  ;;  %v1701_v24 = vrot.slane %v1436_v29, 2 }
 0x1f0   : > { %v5849_v18 = vpack.c.bf16 %v2066_v2, %v2066_v2  ;;  %v1846_v0 = vrot.slane %v1436_v29, 3  ;;  %v1991_v22 = vrot.slane %v1436_v29, 4  ;;  %2323 = vst.msk [vmem:[#allocation2 + $0x12a] sm:$0xff] %vm934_vm1, %v2066_v2  ;;  %v2635_v21 = vmax.f32 %v2539_v62, %v7437_v1 }
 0x1f1   : > { %v1777_v17 = vmax.f32 %v1632_v49, %v1700_v59  ;;  %v1557_v35 = vsel %vm1497_vm4, %v1554_v16, %v1556_v50  ;;  %v1702_v37 = vsel %vm1642_vm5, %v1699_v47, %v1701_v24  ;;  %v2730_v57 = vmax.f32 %v2634_v55, %v7517_v11  ;;  %v7549_v50 = vld [vmem:[#allocation2 + $0x148] sm:$0xf] }
 0x1f2   : > { %2215 = vrot.lane.b32.xlu1 %v5849_v18, %s6474_s16  ;;  %v1633_v58 = vmax.f32 %v1435_v5, %v1557_v35  ;;  %v1847_v39 = vsel %vm1787_vm6, %v1844_v9, %v1846_v0  ;;  %v1992_v43 = vsel %vm1932_vm7, %v1989_v48, %v1991_v22  ;;  %v2731_v31 = vmax.f32 %v2635_v21, %v7522_v32  ;;  %v2399_v9 = vld [vmem:[#allocation2 + $0xa0] sm:$0xf] }
 0x1f3   : > { %v1922_v3 = vmax.f32 %v1777_v17, %v1845_v63  ;;  %v2540_v6 = vmax.f32 %v2444_v36, %v2492_v28  ;;  %v2445_v7 = vmax.f32 %v7309_v27, %v7395_v40  ;;  %v2834_v25 = vrot.slane %v2730_v57, 1  ;;  %v2495_v63 = vld [vmem:[#allocation2 + $0xb8] sm:$0xf]  ;;  %v2591_v17 = vld [vmem:[#allocation2 + $0xd0] sm:$0xf]  ;;  %v7559_v21 = vld [vmem:[#allocation2 + $0xe0] sm:$0xff] }
 0x1f4   : > { %v1778_v19 = vmax.f32 %v1633_v58, %v1702_v37  ;;  %v2978_v13 = vrot.slane %v2730_v57, 2  ;;  %v3122_v26 = vrot.slane %v2730_v57, 3  ;;  %v2835_v5 = vrot.slane %v2731_v31, 1  ;;  %v7554_v28 = vld [vmem:[#allocation2 + $0xd8] sm:$0xff] }
 0x1f5   : > { %v2067_v30 = vmax.f32 %v1922_v3, %v1990_v34  ;;  %v2979_v52 = vrot.slane %v2731_v31, 2  ;;  %v3123_v14 = vrot.slane %v2731_v31, 3  ;;  %v3266_v33 = vrot.slane %v2730_v57, 4  ;;  %v7547_v34 = vld [vmem:[#allocation2 + $0x148] sm:$0xf] }
 0x1f6   : > { %v1923_v56 = vmax.f32 %v1778_v19, %v1847_v39  ;;  %v3267_v16 = vrot.slane %v2731_v31, 4  ;;  %v2636_v47 = vmax.f32 %v2540_v6, %v2588_v42  ;;  %v2836_v36 = vsel %vm1497_vm4, %v2834_v25, %v2835_v5 }
 0x1f7   : > { %v5850_v10 = vpack.c.bf16 %v2067_v30, %v2067_v30  ;;  %v2980_v51 = vsel %vm1642_vm5, %v2978_v13, %v2979_v52  ;;  %v3124_v27 = vsel %vm1787_vm6, %v3122_v26, %v3123_v14  ;;  %2324 = vst.msk [vmem:[#allocation2 + $0x13a] sm:$0xff] %vm934_vm1, %v2067_v30  ;;  %v2934_v48 = vmax.f32 %v2730_v57, %v2836_v36  ;;  %v2687_v26 = vld [vmem:[#allocation2 + $0xe8] sm:$0xf] }
 0x1f8   : > { %v2068_v40 = vmax.f32 %v1923_v56, %v1992_v43  ;;  %v3268_v29 = vsel %vm1932_vm7, %v3266_v33, %v3267_v16  ;;  %v2732_v62 = vmax.f32 %v2636_v47, %v2684_v53  ;;  %v2446_v2 = vmax.f32 %v7314_v8, %v7400_v23 }
 0x1f9   : > { %2217 = vrot.lane.b32.xlu0 %v5850_v10, %s6474_s16  ;;  %v2541_v41 = vmax.f32 %v2445_v7, %v7432_v20  ;;  %v2447_v59 = vmax.f32 %v7488_v38, %v2399_v9  ;;  %v1147_v49 = vmax.f32 %v7334_v45, %v7377_v60  ;;  %v3078_v18 = vmax.f32 %v2934_v48, %v2980_v51 }
 0x1fa   : > { %v5851_v24 = vpack.c.bf16 %v2068_v40, %v2068_v40  ;;  %v2837_v0 = vrot.slane %v2732_v62, 1  ;;  %v2981_v22 = vrot.slane %v2732_v62, 2  ;;  %2325 = vst.msk [vmem:[#allocation2 + $0x142] sm:$0xff] %vm934_vm1, %v2068_v40  ;;  %v3125_v55 = vrot.slane %v2732_v62, 3 }
 0x1fb   : > { %v3269_v8 = vrot.slane %v2732_v62, 4  ;;  %v2542_v23 = vmax.f32 %v2446_v2, %v7437_v1  ;;  %v2637_v38 = vmax.f32 %v2541_v41, %v7517_v11  ;;  %v3222_v45 = vmax.f32 %v3078_v18, %v3124_v27 }
 0x1fc   : > { %2219 = vrot.lane.b32.xlu1 %v5851_v24, %s6474_s16  ;;  %v2838_v35 = vsel %vm1497_vm4, %v2835_v5, %v2837_v0  ;;  %v2982_v37 = vsel %vm1642_vm5, %v2979_v52, %v2981_v22  ;;  %v2543_v58 = vmax.f32 %v2447_v59, %v2495_v63  ;;  %v3126_v43 = vsel %vm1787_vm6, %v3123_v14, %v3125_v55  ;;  %v7571_v5 = vld [vmem:[#allocation2 + $0x90] sm:$0xff]  ;;  %v7573_v52 = vld [vmem:[#allocation2 + $0x98] sm:$0xff]  ;;  %v7582_v63 = vld [vmem:[#allocation2 + $0x180] sm:$0xff] }
 0x1fd   : > { %v2935_v39 = vmax.f32 %v2731_v31, %v2838_v35  ;;  %v3270_v57 = vsel %vm1932_vm7, %v3267_v16, %v3269_v8  ;;  %v2638_v3 = vmax.f32 %v2542_v23, %v7522_v32  ;;  %v3366_v6 = vmax.f32 %v3222_v45, %v3268_v29  ;;  %v7587_v22 = vld [vmem:[#allocation2 + $0x188] sm:$0xff]  ;;  %v1197_v55 = vld [vmem:[#allocation2 + $0x160] sm:$0xf] }
 0x1fe   : > { %v2733_v42 = vmax.f32 %v2637_v38, %v7554_v28  ;;  %v2639_v7 = vmax.f32 %v2543_v58, %v2591_v17  ;;  %v1148_v19 = vmax.f32 %v7339_v15, %v7379_v12  ;;  %v1243_v30 = vmax.f32 %v1147_v49, %v7456_v46  ;;  %v7584_v49 = vld [vmem:[#allocation2 + $0xa0] sm:$0xf] }
 0x1ff   : > { %v3079_v25 = vmax.f32 %v2935_v39, %v2982_v37  ;;  %v2734_v13 = vmax.f32 %v2638_v3, %v7559_v21  ;;  %v1149_v31 = vmax.f32 %v7519_v54, %v7547_v34  ;;  %v5868_v14 = vpack.c.bf16 %v3366_v6, %v3366_v6  ;;  %3623 = vst.msk [vmem:[#allocation2 + $0x92] sm:$0xff] %vm934_vm1, %v3366_v6 }
 0x200   : > { %v2839_v53 = vrot.slane %v2733_v42, 1  ;;  %v2983_v56 = vrot.slane %v2733_v42, 2  ;;  %v3127_v33 = vrot.slane %v2733_v42, 3  ;;  %v3271_v10 = vrot.slane %v2733_v42, 4 }
 0x201   : > { %v3223_v15 = vmax.f32 %v3079_v25, %v3126_v43  ;;  %v2840_v16 = vrot.slane %v2734_v13, 1  ;;  %v2984_v47 = vrot.slane %v2734_v13, 2  ;;  %v3128_v9 = vrot.slane %v2734_v13, 3  ;;  %3502 = vrot.lane.b32.xlu0 %v5868_v14, %s6475_s8  ;;  %v1294_v25 = vld [vmem:[#allocation2 + $0x178] sm:$0xf] }
 0x202   : > { %v3272_v36 = vrot.slane %v2734_v13, 4  ;;  %v2735_v51 = vmax.f32 %v2639_v7, %v2687_v26  ;;  %v1244_v54 = vmax.f32 %v1148_v19, %v7461_v44  ;;  %v1340_v0 = vmax.f32 %v1243_v30, %v7499_v4 }
 0x203   : > { %v3367_v27 = vmax.f32 %v3223_v15, %v3270_v57  ;;  %v2841_v40 = vsel %vm1497_vm4, %v2839_v53, %v2840_v16  ;;  %v2985_v48 = vsel %vm1642_vm5, %v2983_v56, %v2984_v47  ;;  %v3129_v29 = vsel %vm1787_vm6, %v3127_v33, %v3128_v9  ;;  %v1391_v53 = vld [vmem:[#allocation2 + $0x190] sm:$0xf] }
 0x204   : > { %v2936_v62 = vmax.f32 %v2733_v42, %v2841_v40  ;;  %v3273_v2 = vsel %vm1932_vm7, %v3271_v10, %v3272_v36  ;;  %v2842_v41 = vrot.slane %v2735_v51, 1  ;;  %v2986_v59 = vrot.slane %v2735_v51, 2 }
 0x205   : > { %v5869_v34 = vpack.c.bf16 %v3367_v27, %v3367_v27  ;;  %v3130_v24 = vrot.slane %v2735_v51, 3  ;;  %v3274_v18 = vrot.slane %v2735_v51, 4  ;;  %3624 = vst.msk [vmem:[#allocation2 + $0x9a] sm:$0xff] %vm934_vm1, %v3367_v27  ;;  %v1341_v17 = vmax.f32 %v1244_v54, %v7501_v61 }
 0x206   : > { %v3080_v8 = vmax.f32 %v2936_v62, %v2985_v48  ;;  %v2843_v23 = vsel %vm1497_vm4, %v2840_v16, %v2842_v41  ;;  %v2987_v38 = vsel %vm1642_vm5, %v2984_v47, %v2986_v59  ;;  %v1437_v58 = vmax.f32 %v1340_v0, %v7582_v63  ;;  %v1104_v16 = vld [vmem:[#allocation2 + $0x160] sm:$0xf]  ;;  %v7608_v47 = vld [vmem:[#allocation2 + $0xb0] sm:$0xff]  ;;  %v7622_v59 = vld [vmem:[#allocation2 + $0xb8] sm:$0xf] }
 0x207   : > { %3504 = vrot.lane.b32.xlu1 %v5869_v34, %s6475_s8  ;;  %v2937_v45 = vmax.f32 %v2734_v13, %v2843_v23  ;;  %v3131_v35 = vsel %vm1787_vm6, %v3128_v9, %v3130_v24  ;;  %v3275_v37 = vsel %vm1932_vm7, %v3272_v36, %v3274_v18  ;;  %v7598_v43 = vmax.f32 %v1341_v17, %v7587_v22  ;;  %v7624_v34 = vld [vmem:[#allocation2 + $0xb8] sm:$0xf]  ;;  %v1297_v17 = vld [vmem:[#allocation2 + $0x190] sm:$0xf] }
 0x208   : > { %v3224_v39 = vmax.f32 %v3080_v8, %v3129_v29  ;;  %v1245_v57 = vmax.f32 %v1149_v31, %v1197_v55  ;;  %v1150_v3 = vmax.f32 %v7377_v60, %v7456_v46  ;;  %v1558_v42 = vrot.slane %v1437_v58, 1  ;;  %v7606_v60 = vld [vmem:[#allocation2 + $0xa8] sm:$0xff] }
 0x209   : > { %v3081_v6 = vmax.f32 %v2937_v45, %v2987_v38  ;;  %v1703_v7 = vrot.slane %v1437_v58, 2  ;;  %v1848_v19 = vrot.slane %v1437_v58, 3  ;;  %v1559_v26 = vrot.slane %v7598_v43, 1 }
 0x20a   : > { %v3368_v13 = vmax.f32 %v3224_v39, %v3273_v2  ;;  %v1704_v30 = vrot.slane %v7598_v43, 2  ;;  %v1849_v14 = vrot.slane %v7598_v43, 3  ;;  %v1993_v33 = vrot.slane %v1437_v58, 4 }
 0x20b   : > { %v3225_v56 = vmax.f32 %v3081_v6, %v3131_v35  ;;  %v1994_v31 = vrot.slane %v7598_v43, 4  ;;  %v1342_v15 = vmax.f32 %v1245_v57, %v1294_v25  ;;  %v1560_v10 = vsel %vm1497_vm4, %v1558_v42, %v1559_v26  ;;  %v7636_v42 = vld [vmem:[#allocation2 + $0x198] sm:$0xff] }
 0x20c   : > { %v5870_v9 = vpack.c.bf16 %v3368_v13, %v3368_v13  ;;  %v1705_v36 = vsel %vm1642_vm5, %v1703_v7, %v1704_v30  ;;  %v1850_v51 = vsel %vm1787_vm6, %v1848_v19, %v1849_v14  ;;  %3625 = vst.msk [vmem:[#allocation2 + $0xaa] sm:$0xff] %vm934_vm1, %v3368_v13  ;;  %v1634_v27 = vmax.f32 %v1437_v58, %v1560_v10  ;;  %v1058_v58 = vld [vmem:[#allocation2 + $0x160] sm:$0xf] }
 0x20d   : > { %v3369_v54 = vmax.f32 %v3225_v56, %v3275_v37  ;;  %v1995_v40 = vsel %vm1932_vm7, %v1993_v33, %v1994_v31  ;;  %v1439_v48 = vmax.f32 %v1342_v15, %v1391_v53  ;;  %v1151_v29 = vmax.f32 %v7379_v12, %v7461_v44  ;;  %v7638_v19 = vld [vmem:[#allocation2 + $0x1a0] sm:$0xff] }
 0x20e   : > { %3506 = vrot.lane.b32.xlu0 %v5870_v9, %s6475_s8  ;;  %v1246_v62 = vmax.f32 %v1150_v3, %v7499_v4  ;;  %v1152_v2 = vmax.f32 %v7549_v50, %v1104_v16  ;;  %v1153_v41 = vmax.f32 %v7456_v46, %v7499_v4  ;;  %v1779_v18 = vmax.f32 %v1634_v27, %v1705_v36  ;;  %v1200_v50 = vld [vmem:[#allocation2 + $0x178] sm:$0xf] }
 0x20f   : > { %v5871_v24 = vpack.c.bf16 %v3369_v54, %v3369_v54  ;;  %v1561_v0 = vrot.slane %v1439_v48, 1  ;;  %v1706_v55 = vrot.slane %v1439_v48, 2  ;;  %3626 = vst.msk [vmem:[#allocation2 + $0xb2] sm:$0xff] %vm934_vm1, %v3369_v54  ;;  %v1851_v8 = vrot.slane %v1439_v48, 3  ;;  %v1394_v54 = vld [vmem:[#allocation2 + $0x1a8] sm:$0xf] }
 0x210   : > { %v1996_v23 = vrot.slane %v1439_v48, 4  ;;  %v1247_v12 = vmax.f32 %v1151_v29, %v7501_v61  ;;  %v1343_v38 = vmax.f32 %v1246_v62, %v7582_v63  ;;  %v1924_v46 = vmax.f32 %v1779_v18, %v1850_v51 }
 0x211   : > { %3508 = vrot.lane.b32.xlu1 %v5871_v24, %s6475_s8  ;;  %v1562_v45 = vsel %vm1497_vm4, %v1559_v26, %v1561_v0  ;;  %v1707_v35 = vsel %vm1642_vm5, %v1704_v30, %v1706_v55  ;;  %v1248_v37 = vmax.f32 %v1152_v2, %v1200_v50  ;;  %v1852_v57 = vsel %vm1787_vm6, %v1849_v14, %v1851_v8  ;;  %v1107_v30 = vld [vmem:[#allocation2 + $0x178] sm:$0xf]  ;;  %v7652_v8 = vld [vmem:[#allocation2 + $0x1b0] sm:$0xff] }
 0x212   : > { %v1635_v39 = vmax.f32 %v7598_v43, %v1562_v45  ;;  %v1997_v3 = vsel %vm1932_vm7, %v1994_v31, %v1996_v23  ;;  %v1344_v6 = vmax.f32 %v1247_v12, %v7587_v22  ;;  %v2069_v7 = vmax.f32 %v1924_v46, %v1995_v40  ;;  %v1203_v46 = vld [vmem:[#allocation2 + $0x190] sm:$0xf] }
 0x213   : > { %v1440_v25 = vmax.f32 %v1343_v38, %v7636_v42  ;;  %v1345_v13 = vmax.f32 %v1248_v37, %v1297_v17  ;;  %v1154_v26 = vmax.f32 %v7461_v44, %v7501_v61  ;;  %v1249_v14 = vmax.f32 %v1153_v41, %v7582_v63  ;;  %v7655_v17 = vld [vmem:[#allocation2 + $0x1b8] sm:$0xff] }
 0x214   : > { %v1780_v53 = vmax.f32 %v1635_v39, %v1707_v35  ;;  %v1441_v43 = vmax.f32 %v1344_v6, %v7638_v19  ;;  %v1155_v56 = vmax.f32 %v1058_v58, %v1107_v30  ;;  %v5852_v33 = vpack.c.bf16 %v2069_v7, %v2069_v7  ;;  %2326 = vst.msk [vmem:[#allocation2 + $0x152] sm:$0xff] %vm934_vm1, %v2069_v7 }
 0x215   : > { %v1563_v31 = vrot.slane %v1440_v25, 1  ;;  %v1708_v15 = vrot.slane %v1440_v25, 2  ;;  %v1853_v16 = vrot.slane %v1440_v25, 3  ;;  %v1998_v44 = vrot.slane %v1440_v25, 4 }
 0x216   : > { %v1925_v9 = vmax.f32 %v1780_v53, %v1852_v57  ;;  %v1564_v10 = vrot.slane %v1441_v43, 1  ;;  %v1709_v36 = vrot.slane %v1441_v43, 2  ;;  %v1854_v51 = vrot.slane %v1441_v43, 3  ;;  %2221 = vrot.lane.b32.xlu0 %v5852_v33, %s6474_s16 }
 0x217   : > { %v1999_v27 = vrot.slane %v1441_v43, 4  ;;  %v1442_v40 = vmax.f32 %v1345_v13, %v1394_v54  ;;  %v1250_v48 = vmax.f32 %v1154_v26, %v7587_v22  ;;  %v1346_v50 = vmax.f32 %v1249_v14, %v7636_v42 }
 0x218   : > { %v2070_v29 = vmax.f32 %v1925_v9, %v1997_v3  ;;  %v1565_v62 = vsel %vm1497_vm4, %v1563_v31, %v1564_v10  ;;  %v1710_v2 = vsel %vm1642_vm5, %v1708_v15, %v1709_v36  ;;  %v1855_v41 = vsel %vm1787_vm6, %v1853_v16, %v1854_v51  ;;  %v1300_v31 = vld [vmem:[#allocation2 + $0x1a8] sm:$0xf] }
 0x219   : > { %v1636_v24 = vmax.f32 %v1440_v25, %v1565_v62  ;;  %v2000_v18 = vsel %vm1932_vm7, %v1998_v44, %v1999_v27  ;;  %v1566_v0 = vrot.slane %v1442_v40, 1  ;;  %v1711_v55 = vrot.slane %v1442_v40, 2 }
 0x21a   : > { %v5853_v23 = vpack.c.bf16 %v2070_v29, %v2070_v29  ;;  %v1856_v12 = vrot.slane %v1442_v40, 3  ;;  %v2001_v38 = vrot.slane %v1442_v40, 4  ;;  %2327 = vst.msk [vmem:[#allocation2 + $0x15a] sm:$0xff] %vm934_vm1, %v2070_v29  ;;  %v1347_v58 = vmax.f32 %v1250_v48, %v7638_v19 }
 0x21b   : > { %v1781_v45 = vmax.f32 %v1636_v24, %v1710_v2  ;;  %v1567_v35 = vsel %vm1497_vm4, %v1564_v10, %v1566_v0  ;;  %v1712_v37 = vsel %vm1642_vm5, %v1709_v36, %v1711_v55  ;;  %v1443_v6 = vmax.f32 %v1346_v50, %v7652_v8  ;;  %v1397_v10 = vld [vmem:[#allocation2 + $0x1c0] sm:$0xf]  ;;  %v7681_v55 = vld [vmem:[#allocation2 + $0x178] sm:$0xf] }
 0x21c   : > { %2223 = vrot.lane.b32.xlu1 %v5853_v23, %s6474_s16  ;;  %v1637_v39 = vmax.f32 %v1441_v43, %v1567_v35  ;;  %v1857_v57 = vsel %vm1787_vm6, %v1854_v51, %v1856_v12  ;;  %v2002_v3 = vsel %vm1932_vm7, %v1999_v27, %v2001_v38  ;;  %v1444_v25 = vmax.f32 %v1347_v58, %v7655_v17  ;;  %v7686_v35 = vld [vmem:[#allocation2 + $0xf0] sm:$0xff] }
 0x21d   : > { %v1926_v7 = vmax.f32 %v1781_v45, %v1855_v41  ;;  %v1251_v13 = vmax.f32 %v1155_v56, %v1203_v46  ;;  %v2448_v26 = vmax.f32 %v7571_v5, %v7432_v20  ;;  %v1568_v53 = vrot.slane %v1443_v6, 1 }
 0x21e   : > { %v1782_v30 = vmax.f32 %v1637_v39, %v1712_v37  ;;  %v1713_v14 = vrot.slane %v1443_v6, 2  ;;  %v1858_v33 = vrot.slane %v1443_v6, 3  ;;  %v1569_v43 = vrot.slane %v1444_v25, 1  ;;  %v7691_v37 = vld [vmem:[#allocation2 + $0xf8] sm:$0xff]  ;;  %v1110_v39 = vld [vmem:[#allocation2 + $0x190] sm:$0xf] }
 0x21f   : > { %v2071_v15 = vmax.f32 %v1926_v7, %v2000_v18  ;;  %v1714_v16 = vrot.slane %v1444_v25, 2  ;;  %v1859_v9 = vrot.slane %v1444_v25, 3  ;;  %v2003_v51 = vrot.slane %v1443_v6, 4  ;;  %v2498_v18 = vld [vmem:[#allocation2 + $0xd0] sm:$0xf] }
 0x220   : > { %v1927_v36 = vmax.f32 %v1782_v30, %v1857_v57  ;;  %v2004_v54 = vrot.slane %v1444_v25, 4  ;;  %v1348_v44 = vmax.f32 %v1251_v13, %v1300_v31  ;;  %v1570_v56 = vsel %vm1497_vm4, %v1568_v53, %v1569_v43  ;;  %v2690_v31 = vld [vmem:[#allocation2 + $0x100] sm:$0xf] }
 0x221   : > { %v5854_v27 = vpack.c.bf16 %v2071_v15, %v2071_v15  ;;  %v1715_v40 = vsel %vm1642_vm5, %v1713_v14, %v1714_v16  ;;  %v1860_v20 = vsel %vm1787_vm6, %v1858_v33, %v1859_v9  ;;  %2328 = vst.msk [vmem:[#allocation2 + $0x16a] sm:$0xff] %vm934_vm1, %v2071_v15  ;;  %v1638_v48 = vmax.f32 %v1443_v6, %v1570_v56 }
 0x222   : > { %v2072_v5 = vmax.f32 %v1927_v36, %v2002_v3  ;;  %v2005_v29 = vsel %vm1932_vm7, %v2003_v51, %v2004_v54  ;;  %v1445_v62 = vmax.f32 %v1348_v44, %v1397_v10  ;;  %v2449_v2 = vmax.f32 %v7573_v52, %v7437_v1 }
 0x223   : > { %2225 = vrot.lane.b32.xlu0 %v5854_v27, %s6474_s16  ;;  %v2544_v41 = vmax.f32 %v2448_v26, %v7517_v11  ;;  %v2450_v24 = vmax.f32 %v7584_v49, %v7622_v59  ;;  %v1156_v0 = vmax.f32 %v7499_v4, %v7582_v63  ;;  %v1783_v12 = vmax.f32 %v1638_v48, %v1715_v40  ;;  %v2594_v49 = vld [vmem:[#allocation2 + $0xe8] sm:$0xf] }
 0x224   : > { %v5855_v23 = vpack.c.bf16 %v2072_v5, %v2072_v5  ;;  %v1571_v38 = vrot.slane %v1445_v62, 1  ;;  %v1716_v50 = vrot.slane %v1445_v62, 2  ;;  %2329 = vst.msk [vmem:[#allocation2 + $0x172] sm:$0xff] %vm934_vm1, %v2072_v5  ;;  %v1861_v46 = vrot.slane %v1445_v62, 3 }
 0x225   : > { %v2006_v45 = vrot.slane %v1445_v62, 4  ;;  %v2545_v1 = vmax.f32 %v2449_v2, %v7522_v32  ;;  %v2640_v52 = vmax.f32 %v2544_v41, %v7554_v28  ;;  %v1928_v4 = vmax.f32 %v1783_v12, %v1860_v20  ;;  %v1398_v41 = vld [vmem:[#allocation2 + $0x1c8] sm:$0xff] }
 0x226   : > { %2227 = vrot.lane.b32.xlu1 %v5855_v23, %s6474_s16  ;;  %v1572_v63 = vsel %vm1497_vm4, %v1569_v43, %v1571_v38  ;;  %v1717_v59 = vsel %vm1642_vm5, %v1714_v16, %v1716_v50  ;;  %v2546_v58 = vmax.f32 %v2450_v24, %v2498_v18  ;;  %v1862_v3 = vsel %vm1787_vm6, %v1859_v9, %v1861_v46  ;;  %v1399_v23 = vld [vmem:[#allocation2 + $0x1d0] sm:$0xff] }
 0x227   : > { %v1639_v57 = vmax.f32 %v1444_v25, %v1572_v63  ;;  %v2007_v6 = vsel %vm1932_vm7, %v2004_v54, %v2006_v45  ;;  %v2641_v7 = vmax.f32 %v2545_v1, %v7559_v21  ;;  %v2073_v13 = vmax.f32 %v1928_v4, %v2005_v29 }
 0x228   : > { %v2736_v26 = vmax.f32 %v2640_v52, %v7686_v35  ;;  %v2642_v30 = vmax.f32 %v2546_v58, %v2594_v49  ;;  %v1157_v53 = vmax.f32 %v7501_v61, %v7587_v22  ;;  %v1252_v15 = vmax.f32 %v1156_v0, %v7636_v42  ;;  %v1206_v49 = vld [vmem:[#allocation2 + $0x1a8] sm:$0xf] }
 0x229   : > { %v1784_v14 = vmax.f32 %v1639_v57, %v1717_v59  ;;  %v2737_v33 = vmax.f32 %v2641_v7, %v7691_v37  ;;  %v1158_v25 = vmax.f32 %v7681_v55, %v1110_v39  ;;  %v5856_v43 = vpack.c.bf16 %v2073_v13, %v2073_v13  ;;  %2330 = vst.msk [vmem:[#allocation2 + $0x182] sm:$0xff] %vm934_vm1, %v2073_v13  ;;  %v1303_v59 = vld [vmem:[#allocation2 + $0x1c0] sm:$0xf]  ;;  %v7721_v7 = vpop.permute.xlu0 %2173  ;;  %v7723_v13 = vpop.permute.xlu1 %2177 }
 0x22a   : > { %v2844_v16 = vrot.slane %v2736_v26, 1  ;;  %v2988_v9 = vrot.slane %v2736_v26, 2  ;;  %v3132_v10 = vrot.slane %v2736_v26, 3  ;;  %v3276_v61 = vrot.slane %v2736_v26, 4  ;;  %2270 = vst.msk [vmem:[#allocation3] sm:$0xf] %vm2269_vm8, %v7721_v7 }
 0x22b   : > { %v1929_v36 = vmax.f32 %v1784_v14, %v1862_v3  ;;  %v2845_v51 = vrot.slane %v2737_v33, 1  ;;  %v2989_v54 = vrot.slane %v2737_v33, 2  ;;  %v3133_v44 = vrot.slane %v2737_v33, 3  ;;  %2229 = vrot.lane.b32.xlu0 %v5856_v43, %s6474_s16  ;;  %v7729_v43 = vld [vmem:[#allocation2 + $0x18] sm:$0xff]  ;;  %2272 = vst.msk [vmem:[#allocation3 + $0x8] sm:$0xf] %vm2269_vm8, %v7723_v13 }
 0x22c   : > { %v3277_v22 = vrot.slane %v2737_v33, 4  ;;  %v2738_v27 = vmax.f32 %v2642_v30, %v2690_v31  ;;  %v1253_v56 = vmax.f32 %v1157_v53, %v7638_v19  ;;  %v1349_v55 = vmax.f32 %v1252_v15, %v7652_v8  ;;  %v3647_v31 = vld [vmem:[#allocation2] sm:$0xff] }
 0x22d   : > { %v2074_v42 = vmax.f32 %v1929_v36, %v2007_v6  ;;  %v2846_v40 = vsel %vm1497_vm4, %v2844_v16, %v2845_v51  ;;  %v2990_v20 = vsel %vm1642_vm5, %v2988_v9, %v2989_v54  ;;  %v3134_v5 = vsel %vm1787_vm6, %v3132_v10, %v3133_v44  ;;  %v1400_v6 = vld [vmem:[#allocation2 + $0x1d8] sm:$0xf]  ;;  %v7731_v16 = vld [vmem:[#allocation2 + $0xc0] sm:$0xff]  ;;  %v7733_v9 = vld [vmem:[#allocation2 + $0xc8] sm:$0xff] }
 0x22e   : > { %v2938_v48 = vmax.f32 %v2736_v26, %v2846_v40  ;;  %v3278_v29 = vsel %vm1932_vm7, %v3276_v61, %v3277_v22  ;;  %v2847_v62 = vrot.slane %v2738_v27, 1  ;;  %v2991_v2 = vrot.slane %v2738_v27, 2 }
 0x22f   : > { %v5857_v24 = vpack.c.bf16 %v2074_v42, %v2074_v42  ;;  %v3135_v18 = vrot.slane %v2738_v27, 3  ;;  %v3279_v0 = vrot.slane %v2738_v27, 4  ;;  %2331 = vst.msk [vmem:[#allocation2 + $0x18a] sm:$0xff] %vm934_vm1, %v2074_v42  ;;  %v1350_v50 = vmax.f32 %v1253_v56, %v7655_v17 }
 0x230   : > { %v3082_v19 = vmax.f32 %v2938_v48, %v2990_v20  ;;  %v2848_v12 = vsel %vm1497_vm4, %v2845_v51, %v2847_v62  ;;  %v2992_v38 = vsel %vm1642_vm5, %v2989_v54, %v2991_v2  ;;  %v1446_v52 = vmax.f32 %v1349_v55, %v1398_v41  ;;  %v2501_v20 = vld [vmem:[#allocation2 + $0xe8] sm:$0xf]  ;;  %v7746_v48 = vld [vmem:[#allocation2 + $0xd0] sm:$0xf] }
 0x231   : > { %2231 = vrot.lane.b32.xlu1 %v5857_v24, %s6474_s16  ;;  %v2939_v46 = vmax.f32 %v2737_v33, %v2848_v12  ;;  %v3136_v45 = vsel %vm1787_vm6, %v3133_v44, %v3135_v18  ;;  %v3280_v1 = vsel %vm1932_vm7, %v3277_v22, %v3279_v0  ;;  %v7717_v4 = vmax.f32 %v1350_v50, %v1399_v23  ;;  %v2405_v33 = vld [vmem:[#allocation2 + $0xd0] sm:$0xf]  ;;  %v3648_v24 = vld [vmem:[#allocation2 + $0x8] sm:$0xff]  ;;  %v7748_v18 = vld [vmem:[#allocation2 + $0x20] sm:$0xff]  ;;  %v7751_v0 = vpop.permute.xlu0 %2175 }
 0x232   : > { %v3226_v8 = vmax.f32 %v3082_v19, %v3134_v5  ;;  %v1254_v63 = vmax.f32 %v1158_v25, %v1206_v49  ;;  %v2451_v58 = vmax.f32 %v7606_v60, %v7517_v11  ;;  %v1573_v57 = vrot.slane %v1446_v52, 1  ;;  %v7757_v23 = vld [vmem:[#allocation2 + $0x108] sm:$0xff]  ;;  %v2597_v19 = vld [vmem:[#allocation2 + $0x100] sm:$0xf]  ;;  %v7759_v12 = vld [vmem:[#allocation2 + $0x30] sm:$0xff] }
 0x233   : > { %v3083_v39 = vmax.f32 %v2939_v46, %v2992_v38  ;;  %v1718_v17 = vrot.slane %v1446_v52, 2  ;;  %v1863_v3 = vrot.slane %v1446_v52, 3  ;;  %v1574_v30 = vrot.slane %v7717_v4, 1  ;;  %2271 = vst.msk [vmem:[#allocation3 + $0x4] sm:$0xf] %vm2269_vm8, %v7751_v0 }
 0x234   : > { %v3370_v26 = vmax.f32 %v3226_v8, %v3278_v29  ;;  %v1719_v53 = vrot.slane %v7717_v4, 2  ;;  %v1864_v14 = vrot.slane %v7717_v4, 3  ;;  %v2008_v11 = vrot.slane %v1446_v52, 4 }
 0x235   : > { %v3227_v15 = vmax.f32 %v3083_v39, %v3136_v45  ;;  %v2009_v60 = vrot.slane %v7717_v4, 4  ;;  %v1351_v25 = vmax.f32 %v1254_v63, %v1303_v59  ;;  %v1575_v36 = vsel %vm1497_vm4, %v1573_v57, %v1574_v30  ;;  %v7764_v45 = vld [vmem:[#allocation2 + $0x110] sm:$0xff] }
 0x236   : > { %v5872_v10 = vpack.c.bf16 %v3370_v26, %v3370_v26  ;;  %v1720_v51 = vsel %vm1642_vm5, %v1718_v17, %v1719_v53  ;;  %v1865_v54 = vsel %vm1787_vm6, %v1863_v3, %v1864_v14  ;;  %3627 = vst.msk [vmem:[#allocation2 + $0xc2] sm:$0xff] %vm934_vm1, %v3370_v26  ;;  %v1640_v61 = vmax.f32 %v1446_v52, %v1575_v36  ;;  %v7766_v52 = vld [vmem:[#allocation2 + $0x10] sm:$0xf]  ;;  %v2693_v26 = vld [vmem:[#allocation2 + $0x118] sm:$0xf] }
 0x237   : > { %v3371_v44 = vmax.f32 %v3227_v15, %v3280_v1  ;;  %v2010_v22 = vsel %vm1932_vm7, %v2008_v11, %v2009_v60  ;;  %v1448_v27 = vmax.f32 %v1351_v25, %v1400_v6  ;;  %v2452_v56 = vmax.f32 %v7608_v47, %v7522_v32  ;;  %v7753_v32 = vpop.permute.xlu1 %2179  ;;  %v7783_v11 = vpop.permute.xlu0 %2181 }
 0x238   : > { %3510 = vrot.lane.b32.xlu0 %v5872_v10, %s6475_s8  ;;  %v2547_v42 = vmax.f32 %v2451_v58, %v7554_v28  ;;  %v2453_v40 = vmax.f32 %v7624_v34, %v2405_v33  ;;  %v3743_v5 = vmax.f32 %v3647_v31, %v7729_v43  ;;  %v1785_v62 = vmax.f32 %v1640_v61, %v1720_v51 }
 0x239   : > { %v5873_v29 = vpack.c.bf16 %v3371_v44, %v3371_v44  ;;  %v1576_v2 = vrot.slane %v1448_v27, 1  ;;  %v1721_v41 = vrot.slane %v1448_v27, 2  ;;  %3628 = vst.msk [vmem:[#allocation2 + $0xca] sm:$0xff] %vm934_vm1, %v3371_v44  ;;  %v1866_v28 = vrot.slane %v1448_v27, 3 }
 0x23a   : > { %v2011_v47 = vrot.slane %v1448_v27, 4  ;;  %v2548_v34 = vmax.f32 %v2452_v56, %v7559_v21  ;;  %v2643_v55 = vmax.f32 %v2547_v42, %v7686_v35  ;;  %v1930_v38 = vmax.f32 %v1785_v62, %v1865_v54  ;;  %v7768_v21 = vld [vmem:[#allocation2 + $0x28] sm:$0xf]  ;;  %2273 = vst.msk [vmem:[#allocation3 + $0xc] sm:$0xf] %vm2269_vm8, %v7753_v32 }
 0x23b   : > { %3512 = vrot.lane.b32.xlu1 %v5873_v29, %s6475_s8  ;;  %v1577_v50 = vsel %vm1497_vm4, %v1574_v30, %v1576_v2  ;;  %v1722_v46 = vsel %vm1642_vm5, %v1719_v53, %v1721_v41  ;;  %v2549_v1 = vmax.f32 %v2453_v40, %v2501_v20  ;;  %v1867_v8 = vsel %vm1787_vm6, %v1864_v14, %v1866_v28  ;;  %v7777_v30 = vld [vmem:[#allocation2 + $0x38] sm:$0xff]  ;;  %v7789_v27 = vld [vmem:[#allocation2 + $0x48] sm:$0xff] }
 0x23c   : > { %v1641_v49 = vmax.f32 %v7717_v4, %v1577_v50  ;;  %v2012_v63 = vsel %vm1932_vm7, %v2009_v60, %v2011_v47  ;;  %v2644_v59 = vmax.f32 %v2548_v34, %v7691_v37  ;;  %v2075_v58 = vmax.f32 %v1930_v38, %v2010_v22  ;;  %v7785_v60 = vpop.permute.xlu1 %2183  ;;  %v3793_v38 = vld [vmem:[#allocation2 + $0x40] sm:$0xf]  ;;  %2274 = vst.msk [vmem:[#allocation3 + $0x10] sm:$0xf] %vm2269_vm8, %v7783_v11 }
 0x23d   : > { %v2739_v39 = vmax.f32 %v2643_v55, %v7757_v23  ;;  %v2645_v57 = vmax.f32 %v2549_v1, %v2597_v19  ;;  %v3744_v17 = vmax.f32 %v3648_v24, %v7748_v18  ;;  %v3839_v4 = vmax.f32 %v3743_v5, %v7759_v12  ;;  %v7794_v5 = vld [vmem:[#allocation2 + $0x50] sm:$0xff]  ;;  %v7797_v24 = vld [vmem:[#allocation2 + $0x60] sm:$0xff]  ;;  %v7801_v19 = vld [vmem:[#allocation2 + $0x68] sm:$0xff]  ;;  %2275 = vst.msk [vmem:[#allocation3 + $0x14] sm:$0xf] %vm2269_vm8, %v7785_v60 }
 0x23e   : > { %v1786_v3 = vmax.f32 %v1641_v49, %v1722_v46  ;;  %v2740_v6 = vmax.f32 %v2644_v59, %v7764_v45  ;;  %v3745_v53 = vmax.f32 %v7766_v52, %v7768_v21  ;;  %v5858_v14 = vpack.c.bf16 %v2075_v58, %v2075_v58  ;;  %2332 = vst.msk [vmem:[#allocation2 + $0x19a] sm:$0xff] %vm934_vm1, %v2075_v58  ;;  %v7806_v21 = vpop.permute.xlu0 %2185 }
 0x23f   : > { %v2849_v33 = vrot.slane %v2739_v39, 1  ;;  %v2993_v31 = vrot.slane %v2739_v39, 2  ;;  %v3137_v15 = vrot.slane %v2739_v39, 3  ;;  %v3281_v54 = vrot.slane %v2739_v39, 4  ;;  %2276 = vst.msk [vmem:[#allocation3 + $0x18] sm:$0xf] %vm2269_vm8, %v7806_v21 }
 0x240   : > { %v1931_v25 = vmax.f32 %v1786_v3, %v1867_v8  ;;  %v2850_v10 = vrot.slane %v2740_v6, 1  ;;  %v2994_v36 = vrot.slane %v2740_v6, 2  ;;  %v3138_v51 = vrot.slane %v2740_v6, 3  ;;  %2233 = vrot.lane.b32.xlu0 %v5858_v14, %s6474_s16  ;;  %v7808_v49 = vpop.permute.xlu1 %2187  ;;  %v3889_v3 = vld [vmem:[#allocation2 + $0x58] sm:$0xf] }
 0x241   : > { %v3282_v44 = vrot.slane %v2740_v6, 4  ;;  %v2741_v61 = vmax.f32 %v2645_v57, %v2693_v26  ;;  %v3840_v22 = vmax.f32 %v3744_v17, %v7777_v30  ;;  %v3935_v55 = vmax.f32 %v3839_v4, %v7789_v27  ;;  %2277 = vst.msk [vmem:[#allocation3 + $0x1c] sm:$0xf] %vm2269_vm8, %v7808_v49 }
 0x242   : > { %v2076_v56 = vmax.f32 %v1931_v25, %v2012_v63  ;;  %v2851_v42 = vsel %vm1497_vm4, %v2849_v33, %v2850_v10  ;;  %v2995_v40 = vsel %vm1642_vm5, %v2993_v31, %v2994_v36  ;;  %v3139_v20 = vsel %vm1787_vm6, %v3137_v15, %v3138_v51 }
 0x243   : > { %v2940_v29 = vmax.f32 %v2739_v39, %v2851_v42  ;;  %v3283_v62 = vsel %vm1932_vm7, %v3281_v54, %v3282_v44  ;;  %v2852_v2 = vrot.slane %v2741_v61, 1  ;;  %v2996_v41 = vrot.slane %v2741_v61, 2  ;;  %v7824_v54 = vld [vmem:[#allocation2 + $0xe0] sm:$0xff] }
 0x244   : > { %v5859_v28 = vpack.c.bf16 %v2076_v56, %v2076_v56  ;;  %2333 = vst.msk [vmem:[#allocation2 + $0x1a2] sm:$0xff] %vm934_vm1, %v2076_v56  ;;  %v3140_v47 = vrot.slane %v2741_v61, 3  ;;  %v3284_v34 = vrot.slane %v2741_v61, 4  ;;  %v3936_v52 = vmax.f32 %v3840_v22, %v7794_v5  ;;  %v3652_v22 = vld [vmem:[#allocation2 + $0x28] sm:$0xf] }
 0x245   : > { %v3084_v50 = vmax.f32 %v2940_v29, %v2995_v40  ;;  %v2853_v46 = vsel %vm1497_vm4, %v2850_v10, %v2852_v2  ;;  %v2997_v1 = vsel %vm1642_vm5, %v2994_v36, %v2996_v41  ;;  %v4031_v58 = vmax.f32 %v3935_v55, %v7797_v24  ;;  %v3700_v56 = vld [vmem:[#allocation2 + $0x40] sm:$0xf]  ;;  %v7833_v2 = vpop.permute.xlu1 %2191 }
 0x246   : > { %2235 = vrot.lane.b32.xlu1 %v5859_v28, %s6474_s16  ;;  %v2941_v8 = vmax.f32 %v2740_v6, %v2853_v46  ;;  %v3141_v63 = vsel %vm1787_vm6, %v3138_v51, %v3140_v47  ;;  %v3285_v59 = vsel %vm1932_vm7, %v3282_v44, %v3284_v34  ;;  %v7815_v57 = vmax.f32 %v3936_v52, %v7801_v19  ;;  %v7819_v6 = vld [vmem:[#allocation2 + $0xd8] sm:$0xff]  ;;  %v3985_v51 = vld [vmem:[#allocation2 + $0x70] sm:$0xf]  ;;  %v7842_v52 = vld [vmem:[#allocation2 + $0xe8] sm:$0xf] }
 0x247   : > { %v3228_v39 = vmax.f32 %v3084_v50, %v3139_v20  ;;  %v3841_v17 = vmax.f32 %v3745_v53, %v3793_v38  ;;  %v3746_v26 = vmax.f32 %v7729_v43, %v7759_v12  ;;  %v4127_v14 = vrot.slane %v4031_v58, 1  ;;  %v3796_v46 = vld [vmem:[#allocation2 + $0x58] sm:$0xf]  ;;  %2279 = vst.msk [vmem:[#allocation3 + $0x24] sm:$0xf] %vm2269_vm8, %v7833_v2 }
 0x248   : > { %v3085_v4 = vmax.f32 %v2941_v8, %v2997_v1  ;;  %v4271_v33 = vrot.slane %v4031_v58, 2  ;;  %v4415_v31 = vrot.slane %v4031_v58, 3  ;;  %v4128_v25 = vrot.slane %v7815_v57, 1  ;;  %v7844_v8 = vld [vmem:[#allocation2 + $0xe8] sm:$0xf] }
 0x249   : > { %v3372_v15 = vmax.f32 %v3228_v39, %v3283_v62  ;;  %v4272_v10 = vrot.slane %v7815_v57, 2  ;;  %v4416_v36 = vrot.slane %v7815_v57, 3  ;;  %v4559_v44 = vrot.slane %v4031_v58, 4  ;;  %v7831_v62 = vpop.permute.xlu0 %2189 }
 0x24a   : > { %v3229_v53 = vmax.f32 %v3085_v4, %v3141_v63  ;;  %v4560_v43 = vrot.slane %v7815_v57, 4  ;;  %v3937_v61 = vmax.f32 %v3841_v17, %v3889_v3  ;;  %v4129_v40 = vsel %vm1497_vm4, %v4127_v14, %v4128_v25  ;;  %v7849_v4 = vld [vmem:[#allocation2 + $0x78] sm:$0xff]  ;;  %v3892_v14 = vld [vmem:[#allocation2 + $0x70] sm:$0xf]  ;;  %2278 = vst.msk [vmem:[#allocation3 + $0x20] sm:$0xf] %vm2269_vm8, %v7831_v62 }
 0x24b   : > { %v5874_v42 = vpack.c.bf16 %v3372_v15, %v3372_v15  ;;  %v4273_v20 = vsel %vm1642_vm5, %v4271_v33, %v4272_v10  ;;  %v4417_v29 = vsel %vm1787_vm6, %v4415_v31, %v4416_v36  ;;  %3629 = vst.msk [vmem:[#allocation2 + $0xda] sm:$0xff] %vm934_vm1, %v3372_v15  ;;  %v4239_v28 = vmax.f32 %v4031_v58, %v4129_v40  ;;  %v7854_v15 = vld [vmem:[#allocation2 + $0x80] sm:$0xff] }
 0x24c   : > { %v3373_v41 = vmax.f32 %v3229_v53, %v3285_v59  ;;  %v4561_v47 = vsel %vm1932_vm7, %v4559_v44, %v4560_v43  ;;  %v4033_v34 = vmax.f32 %v3937_v61, %v3985_v51  ;;  %v3747_v55 = vmax.f32 %v7748_v18, %v7777_v30 }
 0x24d   : > { %3514 = vrot.lane.b32.xlu0 %v5874_v42, %s6475_s8  ;;  %v3842_v38 = vmax.f32 %v3746_v26, %v7789_v27  ;;  %v3748_v50 = vmax.f32 %v3652_v22, %v3700_v56  ;;  %v2454_v1 = vmax.f32 %v7731_v16, %v7819_v6  ;;  %v4383_v59 = vmax.f32 %v4239_v28, %v4273_v20  ;;  %v7860_v56 = vpop.permute.xlu0 %2193  ;;  %v7862_v42 = vpop.permute.xlu1 %2195 }
 0x24e   : > { %v5875_v63 = vpack.c.bf16 %v3373_v41, %v3373_v41  ;;  %v4130_v58 = vrot.slane %v4033_v34, 1  ;;  %v4274_v39 = vrot.slane %v4033_v34, 2  ;;  %3630 = vst.msk [vmem:[#allocation2 + $0xe2] sm:$0xff] %vm934_vm1, %v3373_v41  ;;  %v4418_v17 = vrot.slane %v4033_v34, 3  ;;  %v3988_v41 = vld [vmem:[#allocation2 + $0x88] sm:$0xf] }
 0x24f   : > { %v4562_v3 = vrot.slane %v4033_v34, 4  ;;  %v3843_v18 = vmax.f32 %v3747_v55, %v7794_v5  ;;  %v3938_v26 = vmax.f32 %v3842_v38, %v7797_v24  ;;  %v4527_v16 = vmax.f32 %v4383_v59, %v4417_v29  ;;  %2280 = vst.msk [vmem:[#allocation3 + $0x28] sm:$0xf] %vm2269_vm8, %v7860_v56  ;;  %2281 = vst.msk [vmem:[#allocation3 + $0x2c] sm:$0xf] %vm2269_vm8, %v7862_v42 }
 0x250   : > { %3516 = vrot.lane.b32.xlu1 %v5875_v63, %s6475_s8  ;;  %v4131_v33 = vsel %vm1497_vm4, %v4128_v25, %v4130_v58  ;;  %v4275_v31 = vsel %vm1642_vm5, %v4272_v10, %v4274_v39  ;;  %v3844_v51 = vmax.f32 %v3748_v50, %v3796_v46  ;;  %v4419_v44 = vsel %vm1787_vm6, %v4416_v36, %v4418_v17 }
 0x251   : > { %v4240_v53 = vmax.f32 %v7815_v57, %v4131_v33  ;;  %v4563_v61 = vsel %vm1932_vm7, %v4560_v43, %v4562_v3  ;;  %v3939_v22 = vmax.f32 %v3843_v18, %v7801_v19  ;;  %v4671_v40 = vmax.f32 %v4527_v16, %v4561_v47  ;;  %v7876_v3 = vpop.permute.xlu0 %2197  ;;  %v7878_v18 = vpop.permute.xlu1 %2199 }
 0x252   : > { %v4034_v25 = vmax.f32 %v3938_v26, %v7849_v4  ;;  %v3940_v20 = vmax.f32 %v3844_v51, %v3892_v14  ;;  %v2455_v10 = vmax.f32 %v7733_v9, %v7824_v54  ;;  %v2550_v36 = vmax.f32 %v2454_v1, %v7686_v35  ;;  %2282 = vst.msk [vmem:[#allocation3 + $0x30] sm:$0xf] %vm2269_vm8, %v7876_v3 }
 0x253   : > { %v4384_v29 = vmax.f32 %v4240_v53, %v4275_v31  ;;  %v4035_v57 = vmax.f32 %v3939_v22, %v7854_v15  ;;  %v2456_v43 = vmax.f32 %v7746_v48, %v7842_v52  ;;  %v5892_v28 = vpack.c.bf16 %v4671_v40, %v4671_v40  ;;  %v7881_v31 = vld [vmem:[#allocation2 + $0x120] sm:$0xff]  ;;  %v7884_v22 = vld [vmem:[#allocation2 + $0x128] sm:$0xff]  ;;  %2283 = vst.msk [vmem:[#allocation3 + $0x34] sm:$0xf] %vm2269_vm8, %v7878_v18 }
 0x254   : > { %v4132_v34 = vrot.slane %v4034_v25, 1  ;;  %v4276_v55 = vrot.slane %v4034_v25, 2  ;;  %v4420_v38 = vrot.slane %v4034_v25, 3  ;;  %v4564_v9 = vrot.slane %v4034_v25, 4  ;;  %v2504_v40 = vld [vmem:[#allocation2 + $0x100] sm:$0xf] }
 0x255   : > { %v4528_v47 = vmax.f32 %v4384_v29, %v4419_v44  ;;  %v4133_v50 = vrot.slane %v4035_v57, 1  ;;  %v4277_v46 = vrot.slane %v4035_v57, 2  ;;  %v4421_v63 = vrot.slane %v4035_v57, 3  ;;  %4799 = vrot.lane.b32.xlu0 %v5892_v28, %s6476_s7 }
 0x256   : > { %v4565_v59 = vrot.slane %v4035_v57, 4  ;;  %v4036_v58 = vmax.f32 %v3940_v20, %v3988_v41  ;;  %v2551_v39 = vmax.f32 %v2455_v10, %v7691_v37 }
 0x257   : > { %v4672_v1 = vmax.f32 %v4528_v47, %v4563_v61  ;;  %v4134_v17 = vsel %vm1497_vm4, %v4132_v34, %v4133_v50  ;;  %v4278_v48 = vsel %vm1642_vm5, %v4276_v55, %v4277_v46  ;;  %v4422_v52 = vsel %vm1787_vm6, %v4420_v38, %v4421_v63 }
 0x258   : > { %v4241_v26 = vmax.f32 %v4034_v25, %v4134_v17  ;;  %v4566_v14 = vsel %vm1932_vm7, %v4564_v9, %v4565_v59  ;;  %v4135_v16 = vrot.slane %v4036_v58, 1  ;;  %v4279_v33 = vrot.slane %v4036_v58, 2  ;;  %v2600_v9 = vld [vmem:[#allocation2 + $0x118] sm:$0xf]  ;;  %v7896_v17 = vpop.permute.xlu0 %2201 }
 0x259   : > { %v5893_v51 = vpack.c.bf16 %v4672_v1, %v4672_v1  ;;  %v4423_v53 = vrot.slane %v4036_v58, 3  ;;  %v4567_v44 = vrot.slane %v4036_v58, 4  ;;  %v2646_v61 = vmax.f32 %v2550_v36, %v7757_v23  ;;  %2284 = vst.msk [vmem:[#allocation3 + $0x38] sm:$0xf] %vm2269_vm8, %v7896_v17 }
 0x25a   : > { %v4385_v20 = vmax.f32 %v4241_v26, %v4278_v48  ;;  %v4136_v10 = vsel %vm1497_vm4, %v4133_v50, %v4135_v16  ;;  %v4280_v29 = vsel %vm1642_vm5, %v4277_v46, %v4279_v33  ;;  %v2647_v25 = vmax.f32 %v2551_v39, %v7764_v45 }
 0x25b   : > { %4801 = vrot.lane.b32.xlu1 %v5893_v51, %s6476_s7  ;;  %v4242_v41 = vmax.f32 %v4035_v57, %v4136_v10  ;;  %v4424_v28 = vsel %vm1787_vm6, %v4421_v63, %v4423_v53  ;;  %v4568_v34 = vsel %vm1932_vm7, %v4565_v59, %v4567_v44  ;;  %v2742_v55 = vmax.f32 %v2646_v61, %v7881_v31  ;;  %v7898_v57 = vpop.permute.xlu1 %2203  ;;  %v2411_v53 = vld [vmem:[#allocation2 + $0x100] sm:$0xf] }
 0x25c   : > { %v4529_v36 = vmax.f32 %v4385_v20, %v4422_v52  ;;  %v2743_v38 = vmax.f32 %v2647_v25, %v7884_v22  ;;  %v2552_v47 = vmax.f32 %v2456_v43, %v2504_v40  ;;  %v2457_v50 = vmax.f32 %v7819_v6, %v7686_v35  ;;  %v2696_v52 = vld [vmem:[#allocation2 + $0x130] sm:$0xf]  ;;  %2285 = vst.msk [vmem:[#allocation3 + $0x3c] sm:$0xf] %vm2269_vm8, %v7898_v57 }
 0x25d   : > { %v4386_v46 = vmax.f32 %v4242_v41, %v4280_v29  ;;  %v2854_v58 = vrot.slane %v2742_v55, 1  ;;  %v2998_v39 = vrot.slane %v2742_v55, 2  ;;  %v3142_v1 = vrot.slane %v2742_v55, 3 }
 0x25e   : > { %v4673_v63 = vmax.f32 %v4529_v36, %v4566_v14  ;;  %v2855_v59 = vrot.slane %v2743_v38, 1  ;;  %v2999_v48 = vrot.slane %v2743_v38, 2  ;;  %v3143_v26 = vrot.slane %v2743_v38, 3 }
 0x25f   : > { %v4530_v16 = vmax.f32 %v4386_v46, %v4424_v28  ;;  %v3286_v33 = vrot.slane %v2742_v55, 4  ;;  %v3287_v43 = vrot.slane %v2743_v38, 4  ;;  %v2648_v51 = vmax.f32 %v2552_v47, %v2600_v9  ;;  %v2507_v28 = vld [vmem:[#allocation2 + $0x118] sm:$0xf]  ;;  %v7911_v46 = vpop.permute.xlu0 %3486 }
 0x260   : > { %v5894_v44 = vpack.c.bf16 %v4673_v63, %v4673_v63  ;;  %v2856_v35 = vsel %vm1497_vm4, %v2854_v58, %v2855_v59  ;;  %v3000_v6 = vsel %vm1642_vm5, %v2998_v39, %v2999_v48  ;;  %v3144_v61 = vsel %vm1787_vm6, %v3142_v1, %v3143_v26  ;;  %v7913_v58 = vpop.permute.xlu1 %3488  ;;  %3583 = vst.msk [vmem:[#allocation3] sm:$0xf] %vm3582_vm9, %v7911_v46 }
 0x261   : > { %v4674_v40 = vmax.f32 %v4530_v16, %v4568_v34  ;;  %v2942_v20 = vmax.f32 %v2742_v55, %v2856_v35  ;;  %v3288_v14 = vsel %vm1932_vm7, %v3286_v33, %v3287_v43  ;;  %v2744_v10 = vmax.f32 %v2648_v51, %v2696_v52  ;;  %v7922_v16 = vld [vmem:[#allocation2 + $0x140] sm:$0xff]  ;;  %3584 = vst.msk [vmem:[#allocation3 + $0x4] sm:$0xf] %vm3582_vm9, %v7913_v58 }
 0x262   : > { %4803 = vrot.lane.b32.xlu0 %v5894_v44, %s6476_s7  ;;  %v2458_v29 = vmax.f32 %v7824_v54, %v7691_v37  ;;  %v2553_v25 = vmax.f32 %v2457_v50, %v7757_v23  ;;  %v2459_v41 = vmax.f32 %v7844_v8, %v2411_v53  ;;  %v3749_v36 = vmax.f32 %v7759_v12, %v7789_v27  ;;  %v7917_v50 = vld [vmem:[#allocation2 + $0x138] sm:$0xff]  ;;  %v2603_v8 = vld [vmem:[#allocation2 + $0x130] sm:$0xf] }
 0x263   : > { %v5895_v47 = vpack.c.bf16 %v4674_v40, %v4674_v40  ;;  %v3086_v9 = vmax.f32 %v2942_v20, %v3000_v6  ;;  %v2857_v34 = vrot.slane %v2744_v10, 1  ;;  %v3001_v55 = vrot.slane %v2744_v10, 2  ;;  %v7973_v7 = vpop.permute.xlu0 %3490 }
 0x264   : > { %v3145_v39 = vrot.slane %v2744_v10, 3  ;;  %v3289_v1 = vrot.slane %v2744_v10, 4  ;;  %v2554_v37 = vmax.f32 %v2458_v29, %v7764_v45  ;;  %v2649_v54 = vmax.f32 %v2553_v25, %v7881_v31  ;;  %v2699_v10 = vld [vmem:[#allocation2 + $0x148] sm:$0xf]  ;;  %v7975_v13 = vpop.permute.xlu1 %3492  ;;  %3585 = vst.msk [vmem:[#allocation3 + $0x8] sm:$0xf] %vm3582_vm9, %v7973_v7 }
 0x265   : > { %4805 = vrot.lane.b32.xlu1 %v5895_v47, %s6476_s7  ;;  %v3230_v12 = vmax.f32 %v3086_v9, %v3144_v61  ;;  %v2858_v63 = vsel %vm1497_vm4, %v2855_v59, %v2857_v34  ;;  %v3002_v52 = vsel %vm1642_vm5, %v2999_v48, %v3001_v55  ;;  %v2555_v33 = vmax.f32 %v2459_v41, %v2507_v28  ;;  %v7989_v47 = vld [vmem:[#allocation2 + $0x100] sm:$0xf] }
 0x266   : > { %v2943_v51 = vmax.f32 %v2743_v38, %v2858_v63  ;;  %v3146_v53 = vsel %vm1787_vm6, %v3143_v26, %v3145_v39  ;;  %v3290_v44 = vsel %vm1932_vm7, %v3287_v43, %v3289_v1  ;;  %v2650_v35 = vmax.f32 %v2554_v37, %v7884_v22  ;;  %v7936_v26 = vld [vmem:[#allocation2 + $0xf0] sm:$0xff]  ;;  %v7938_v43 = vld [vmem:[#allocation2 + $0xf8] sm:$0xff]  ;;  %3586 = vst.msk [vmem:[#allocation3 + $0xc] sm:$0xf] %vm3582_vm9, %v7975_v13 }
 0x267   : > { %v3374_v6 = vmax.f32 %v3230_v12, %v3288_v14  ;;  %v2745_v40 = vmax.f32 %v2649_v54, %v7917_v50  ;;  %v2651_v20 = vmax.f32 %v2555_v33, %v2603_v8  ;;  %v3750_v61 = vmax.f32 %v7777_v30, %v7794_v5  ;;  %v7993_v1 = vld [vmem:[#allocation2 + $0x98] sm:$0xff] }
 0x268   : > { %v3087_v59 = vmax.f32 %v2943_v51, %v3002_v52  ;;  %v7931_v48 = vmax.f32 %v2650_v35, %v7922_v16  ;;  %v7934_v38 = vmax.f32 %v3749_v36, %v7797_v24  ;;  %v7987_v36 = vld [vmem:[#allocation2 + $0x90] sm:$0xff]  ;;  %v3703_v37 = vld [vmem:[#allocation2 + $0x58] sm:$0xf]  ;;  %v2206_v52 = vpop.permute.xlu0 %2205  ;;  %v2208_v33 = vpop.permute.xlu1 %2207 }
 0x269   : > { %v5876_v14 = vpack.c.bf16 %v3374_v6, %v3374_v6  ;;  %v2859_v29 = vrot.slane %v2745_v40, 1  ;;  %v3003_v25 = vrot.slane %v2745_v40, 2  ;;  %v3147_v41 = vrot.slane %v2745_v40, 3  ;;  %3631 = vst.msk [vmem:[#allocation2 + $0xf2] sm:$0xff] %vm934_vm1, %v3374_v6  ;;  %v3655_v6 = vld [vmem:[#allocation2 + $0x40] sm:$0xf] }
 0x26a   : > { %v3231_v0 = vmax.f32 %v3087_v59, %v3146_v53  ;;  %v2860_v32 = vrot.slane %v7931_v48, 1  ;;  %v3004_v30 = vrot.slane %v7931_v48, 2  ;;  %v3148_v11 = vrot.slane %v7931_v48, 3  ;;  %2286 = vst.msk [vmem:[#allocation3 + $0x40] sm:$0xf] %vm2269_vm8, %v2206_v52 }
 0x26b   : > { %3518 = vrot.lane.b32.xlu0 %v5876_v14, %s6475_s8  ;;  %v3291_v60 = vrot.slane %v2745_v40, 4  ;;  %v3292_v21 = vrot.slane %v7931_v48, 4  ;;  %v2747_v49 = vmax.f32 %v2651_v20, %v2699_v10  ;;  %v3846_v62 = vmax.f32 %v3750_v61, %v7801_v19  ;;  %2287 = vst.msk [vmem:[#allocation3 + $0x44] sm:$0xf] %vm2269_vm8, %v2208_v33  ;;  %v3799_v59 = vld [vmem:[#allocation2 + $0x70] sm:$0xf] }
 0x26c   : > { %v3375_v2 = vmax.f32 %v3231_v0, %v3290_v44  ;;  %v2861_v56 = vsel %vm1497_vm4, %v2859_v29, %v2860_v32  ;;  %v3005_v42 = vsel %vm1642_vm5, %v3003_v25, %v3004_v30  ;;  %v3149_v3 = vsel %vm1787_vm6, %v3147_v41, %v3148_v11 }
 0x26d   : > { %v2944_v18 = vmax.f32 %v2745_v40, %v2861_v56  ;;  %v3293_v17 = vsel %vm1932_vm7, %v3291_v60, %v3292_v21  ;;  %v2862_v57 = vrot.slane %v2747_v49, 1  ;;  %v3006_v28 = vrot.slane %v2747_v49, 2 }
 0x26e   : > { %v5877_v9 = vpack.c.bf16 %v3375_v2, %v3375_v2  ;;  %v3150_v34 = vrot.slane %v2747_v49, 3  ;;  %v3294_v55 = vrot.slane %v2747_v49, 4  ;;  %v3941_v39 = vmax.f32 %v7934_v38, %v7849_v4  ;;  %3632 = vst.msk [vmem:[#allocation2 + $0xfa] sm:$0xff] %vm934_vm1, %v3375_v2 }
 0x26f   : > { %v3088_v54 = vmax.f32 %v2944_v18, %v3005_v42  ;;  %v2863_v8 = vsel %vm1497_vm4, %v2860_v32, %v2862_v57  ;;  %v3007_v12 = vsel %vm1642_vm5, %v3004_v30, %v3006_v28  ;;  %v3942_v63 = vmax.f32 %v3846_v62, %v7854_v15  ;;  %v3895_v30 = vld [vmem:[#allocation2 + $0x88] sm:$0xf]  ;;  %v3706_v62 = vld [vmem:[#allocation2 + $0x70] sm:$0xf]  ;;  %v3991_v42 = vld [vmem:[#allocation2 + $0xa0] sm:$0xf] }
 0x270   : > { %3520 = vrot.lane.b32.xlu1 %v5877_v9, %s6475_s8  ;;  %v2945_v51 = vmax.f32 %v7931_v48, %v2863_v8  ;;  %v3151_v53 = vsel %vm1787_vm6, %v3148_v11, %v3150_v34  ;;  %v3295_v44 = vsel %vm1932_vm7, %v3292_v21, %v3294_v55  ;;  %v4037_v35 = vmax.f32 %v3941_v39, %v7987_v36  ;;  %v3658_v28 = vld [vmem:[#allocation2 + $0x58] sm:$0xf]  ;;  %v3802_v9 = vld [vmem:[#allocation2 + $0x88] sm:$0xf] }
 0x271   : > { %v3232_v40 = vmax.f32 %v3088_v54, %v3149_v3  ;;  %v8007_v20 = vmax.f32 %v3942_v63, %v7993_v1  ;;  %v3751_v61 = vmax.f32 %v3655_v6, %v3703_v37  ;;  %v3752_v48 = vmax.f32 %v7789_v27, %v7797_v24  ;;  %v8026_v54 = vld [vmem:[#allocation2 + $0x118] sm:$0xf]  ;;  %v2212_v63 = vpop.permute.xlu1 %2211 }
 0x272   : > { %v3089_v10 = vmax.f32 %v2945_v51, %v3007_v12  ;;  %v4137_v38 = vrot.slane %v4037_v35, 1  ;;  %v4281_v14 = vrot.slane %v4037_v35, 2  ;;  %v4425_v29 = vrot.slane %v4037_v35, 3  ;;  %v8028_v8 = vld [vmem:[#allocation2 + $0x118] sm:$0xf]  ;;  %v2210_v12 = vpop.permute.xlu0 %2209 }
 0x273   : > { %v3376_v25 = vmax.f32 %v3232_v40, %v3293_v17  ;;  %v4138_v41 = vrot.slane %v8007_v20, 1  ;;  %v4282_v0 = vrot.slane %v8007_v20, 2  ;;  %v4426_v32 = vrot.slane %v8007_v20, 3  ;;  %2288 = vst.msk [vmem:[#allocation3 + $0x48] sm:$0xf] %vm2269_vm8, %v2210_v12 }
 0x274   : > { %v3233_v11 = vmax.f32 %v3089_v10, %v3151_v53  ;;  %v4569_v60 = vrot.slane %v4037_v35, 4  ;;  %v4570_v21 = vrot.slane %v8007_v20, 4  ;;  %v3847_v49 = vmax.f32 %v3751_v61, %v3799_v59  ;;  %v8030_v53 = vld [vmem:[#allocation2 + $0xa8] sm:$0xff]  ;;  %2289 = vst.msk [vmem:[#allocation3 + $0x4c] sm:$0xf] %vm2269_vm8, %v2212_v63 }
 0x275   : > { %v5878_v2 = vpack.c.bf16 %v3376_v25, %v3376_v25  ;;  %v4139_v27 = vsel %vm1497_vm4, %v4137_v38, %v4138_v41  ;;  %v4283_v24 = vsel %vm1642_vm5, %v4281_v14, %v4282_v0  ;;  %v4427_v56 = vsel %vm1787_vm6, %v4425_v29, %v4426_v32  ;;  %3633 = vst.msk [vmem:[#allocation2 + $0x10a] sm:$0xff] %vm934_vm1, %v3376_v25 }
 0x276   : > { %v3377_v3 = vmax.f32 %v3233_v11, %v3295_v44  ;;  %v4243_v18 = vmax.f32 %v4037_v35, %v4139_v27  ;;  %v4571_v17 = vsel %vm1932_vm7, %v4569_v60, %v4570_v21  ;;  %v3943_v57 = vmax.f32 %v3847_v49, %v3895_v30  ;;  %v3898_v44 = vld [vmem:[#allocation2 + $0xa0] sm:$0xf] }
 0x277   : > { %3522 = vrot.lane.b32.xlu0 %v5878_v2, %s6475_s8  ;;  %v3753_v34 = vmax.f32 %v7794_v5, %v7801_v19  ;;  %v3848_v55 = vmax.f32 %v3752_v48, %v7849_v4  ;;  %v3754_v39 = vmax.f32 %v3658_v28, %v3706_v62  ;;  %v2460_v37 = vmax.f32 %v7936_v26, %v7757_v23 }
 0x278   : > { %v5879_v52 = vpack.c.bf16 %v3377_v3, %v3377_v3  ;;  %v4387_v33 = vmax.f32 %v4243_v18, %v4283_v24  ;;  %v4039_v51 = vmax.f32 %v3943_v57, %v3991_v42  ;;  %v2461_v5 = vmax.f32 %v7938_v43, %v7764_v45  ;;  %3634 = vst.msk [vmem:[#allocation2 + $0x112] sm:$0xff] %vm934_vm1, %v3377_v3  ;;  %v8041_v43 = vld [vmem:[#allocation2 + $0xb0] sm:$0xff]  ;;  %v3994_v24 = vld [vmem:[#allocation2 + $0xb8] sm:$0xf] }
 0x279   : > { %v3849_v19 = vmax.f32 %v3753_v34, %v7854_v15  ;;  %v3944_v26 = vmax.f32 %v3848_v55, %v7987_v36  ;;  %v3850_v35 = vmax.f32 %v3754_v39, %v3802_v9  ;;  %v2556_v6 = vmax.f32 %v2460_v37, %v7881_v31  ;;  %v8057_v37 = vld [vmem:[#allocation2 + $0x150] sm:$0xff] }
 0x27a   : > { %3524 = vrot.lane.b32.xlu1 %v5879_v52, %s6475_s8  ;;  %v4531_v40 = vmax.f32 %v4387_v33, %v4427_v56  ;;  %v4140_v61 = vrot.slane %v4039_v51, 1  ;;  %v4284_v59 = vrot.slane %v4039_v51, 2  ;;  %v4428_v48 = vrot.slane %v4039_v51, 3 }
 0x27b   : > { %v4572_v10 = vrot.slane %v4039_v51, 4  ;;  %v3945_v38 = vmax.f32 %v3849_v19, %v7993_v1  ;;  %v4040_v14 = vmax.f32 %v3944_v26, %v8030_v53  ;;  %v3946_v29 = vmax.f32 %v3850_v35, %v3898_v44  ;;  %v8061_v26 = vld [vmem:[#allocation2 + $0x158] sm:$0xff] }
 0x27c   : > { %v4675_v25 = vmax.f32 %v4531_v40, %v4571_v17  ;;  %v4141_v30 = vsel %vm1497_vm4, %v4138_v41, %v4140_v61  ;;  %v4285_v11 = vsel %vm1642_vm5, %v4282_v0, %v4284_v59  ;;  %v4429_v60 = vsel %vm1787_vm6, %v4426_v32, %v4428_v48 }
 0x27d   : > { %v4244_v49 = vmax.f32 %v8007_v20, %v4141_v30  ;;  %v4573_v62 = vsel %vm1932_vm7, %v4570_v21, %v4572_v10  ;;  %v4041_v2 = vmax.f32 %v3945_v38, %v8041_v43  ;;  %v4142_v27 = vrot.slane %v4040_v14, 1 }
 0x27e   : > { %v5896_v56 = vpack.c.bf16 %v4675_v25, %v4675_v25  ;;  %v4286_v42 = vrot.slane %v4040_v14, 2  ;;  %v4430_v3 = vrot.slane %v4040_v14, 3  ;;  %v4574_v18 = vrot.slane %v4040_v14, 4 }
 0x27f   : > { %v4388_v57 = vmax.f32 %v4244_v49, %v4285_v11  ;;  %v4143_v17 = vrot.slane %v4041_v2, 1  ;;  %v4287_v28 = vrot.slane %v4041_v2, 2  ;;  %v4431_v41 = vrot.slane %v4041_v2, 3  ;;  %v2510_v11 = vld [vmem:[#allocation2 + $0x130] sm:$0xf] }
 0x280   : > { %4807 = vrot.lane.b32.xlu0 %v5896_v56, %s6476_s7  ;;  %v4575_v0 = vrot.slane %v4041_v2, 4  ;;  %v4042_v32 = vmax.f32 %v3946_v29, %v3994_v24  ;;  %v2557_v20 = vmax.f32 %v2461_v5, %v7884_v22  ;;  %v2652_v21 = vmax.f32 %v2556_v6, %v7917_v50 }
 0x281   : > { %v4532_v9 = vmax.f32 %v4388_v57, %v4429_v60  ;;  %v4144_v34 = vsel %vm1497_vm4, %v4142_v27, %v4143_v17  ;;  %v4288_v55 = vsel %vm1642_vm5, %v4286_v42, %v4287_v28  ;;  %v4432_v39 = vsel %vm1787_vm6, %v4430_v3, %v4431_v41  ;;  %v2606_v3 = vld [vmem:[#allocation2 + $0x148] sm:$0xf] }
 0x282   : > { %v4245_v12 = vmax.f32 %v4040_v14, %v4144_v34  ;;  %v4576_v63 = vsel %vm1932_vm7, %v4574_v18, %v4575_v0  ;;  %v4145_v52 = vrot.slane %v4042_v32, 1  ;;  %v4289_v33 = vrot.slane %v4042_v32, 2 }
 0x283   : > { %v4676_v51 = vmax.f32 %v4532_v9, %v4573_v62  ;;  %v4433_v44 = vrot.slane %v4042_v32, 3  ;;  %v4577_v19 = vrot.slane %v4042_v32, 4  ;;  %v2653_v5 = vmax.f32 %v2557_v20, %v7922_v16  ;;  %v2702_v20 = vld [vmem:[#allocation2 + $0x160] sm:$0xf] }
 0x284   : > { %v4389_v35 = vmax.f32 %v4245_v12, %v4288_v55  ;;  %v4146_v6 = vsel %vm1497_vm4, %v4143_v17, %v4145_v52  ;;  %v4290_v40 = vsel %vm1642_vm5, %v4287_v28, %v4289_v33  ;;  %v2748_v61 = vmax.f32 %v2652_v21, %v8057_v37 }
 0x285   : > { %v5897_v59 = vpack.c.bf16 %v4676_v51, %v4676_v51  ;;  %v4246_v48 = vmax.f32 %v4041_v2, %v4146_v6  ;;  %v4434_v10 = vsel %vm1787_vm6, %v4431_v41, %v4433_v44  ;;  %v4578_v38 = vsel %vm1932_vm7, %v4575_v0, %v4577_v19  ;;  %v2417_v41 = vld [vmem:[#allocation2 + $0x130] sm:$0xf]  ;;  %v8091_v19 = vld [vmem:[#allocation2 + $0x168] sm:$0xff] }
 0x286   : > { %v4533_v14 = vmax.f32 %v4389_v35, %v4432_v39  ;;  %v8069_v29 = vmax.f32 %v2653_v5, %v8061_v26  ;;  %v2864_v25 = vrot.slane %v2748_v61, 1  ;;  %v3008_v30 = vrot.slane %v2748_v61, 2  ;;  %v2513_v39 = vld [vmem:[#allocation2 + $0x148] sm:$0xf]  ;;  %v2609_v5 = vld [vmem:[#allocation2 + $0x160] sm:$0xf] }
 0x287   : > { %4809 = vrot.lane.b32.xlu1 %v5897_v59, %s6476_s7  ;;  %v4390_v60 = vmax.f32 %v4246_v48, %v4290_v40  ;;  %v3152_v49 = vrot.slane %v2748_v61, 3  ;;  %v3296_v62 = vrot.slane %v2748_v61, 4  ;;  %v2462_v27 = vmax.f32 %v7989_v47, %v8026_v54 }
 0x288   : > { %v4677_v2 = vmax.f32 %v4533_v14, %v4576_v63  ;;  %v2865_v24 = vrot.slane %v8069_v29, 1  ;;  %v3009_v56 = vrot.slane %v8069_v29, 2  ;;  %v3153_v42 = vrot.slane %v8069_v29, 3  ;;  %v8103_v14 = vpop.permute.xlu1 %3496 }
 0x289   : > { %v4534_v18 = vmax.f32 %v4390_v60, %v4434_v10  ;;  %v3297_v57 = vrot.slane %v8069_v29, 4  ;;  %v2558_v17 = vmax.f32 %v2462_v27, %v2510_v11  ;;  %v2463_v28 = vmax.f32 %v7757_v23, %v7881_v31  ;;  %v8099_v10 = vld [vmem:[#allocation2 + $0x170] sm:$0xff]  ;;  %3588 = vst.msk [vmem:[#allocation3 + $0x14] sm:$0xf] %vm3582_vm9, %v8103_v14 }
 0x28a   : > { %v5898_v0 = vpack.c.bf16 %v4677_v2, %v4677_v2  ;;  %v2866_v32 = vsel %vm1497_vm4, %v2864_v25, %v2865_v24  ;;  %v3010_v47 = vsel %vm1642_vm5, %v3008_v30, %v3009_v56  ;;  %v3154_v54 = vsel %vm1787_vm6, %v3152_v49, %v3153_v42  ;;  %v3665_v14 = vld [vmem:[#allocation2 + $0x90] sm:$0xff] }
 0x28b   : > { %v4678_v21 = vmax.f32 %v4534_v18, %v4578_v38  ;;  %v2946_v9 = vmax.f32 %v2748_v61, %v2866_v32  ;;  %v3298_v34 = vsel %vm1932_vm7, %v3296_v62, %v3297_v57  ;;  %v2654_v55 = vmax.f32 %v2558_v17, %v2606_v3  ;;  %v8101_v38 = vpop.permute.xlu0 %3494 }
 0x28c   : > { %4811 = vrot.lane.b32.xlu0 %v5898_v0, %s6476_s7  ;;  %v2464_v23 = vmax.f32 %v7764_v45, %v7884_v22  ;;  %v2559_v12 = vmax.f32 %v2463_v28, %v7917_v50  ;;  %v2465_v63 = vmax.f32 %v8028_v8, %v2417_v41  ;;  %v2466_v52 = vmax.f32 %v7881_v31, %v7917_v50  ;;  %v2705_v28 = vld [vmem:[#allocation2 + $0x178] sm:$0xf] }
 0x28d   : > { %v5899_v33 = vpack.c.bf16 %v4678_v21, %v4678_v21  ;;  %v3090_v51 = vmax.f32 %v2946_v9, %v3010_v47  ;;  %v2750_v44 = vmax.f32 %v2654_v55, %v2702_v20  ;;  %v2467_v35 = vmax.f32 %v7884_v22, %v7922_v16  ;;  %3587 = vst.msk [vmem:[#allocation3 + $0x10] sm:$0xf] %vm3582_vm9, %v8101_v38  ;;  %v2525_v38 = vld [vmem:[#allocation2 + $0x1a8] sm:$0xf] }
 0x28e   : > { %v2560_v6 = vmax.f32 %v2464_v23, %v7922_v16  ;;  %v2655_v45 = vmax.f32 %v2559_v12, %v8057_v37  ;;  %v2561_v40 = vmax.f32 %v2465_v63, %v2513_v39  ;;  %v2562_v61 = vmax.f32 %v2466_v52, %v8057_v37  ;;  %v8124_v63 = vld [vmem:[#allocation2 + $0x180] sm:$0xff] }
 0x28f   : > { %4813 = vrot.lane.b32.xlu1 %v5899_v33, %s6476_s7  ;;  %v3234_v8 = vmax.f32 %v3090_v51, %v3154_v54  ;;  %v2867_v31 = vrot.slane %v2750_v44, 1  ;;  %v3011_v59 = vrot.slane %v2750_v44, 2  ;;  %v3155_v48 = vrot.slane %v2750_v44, 3  ;;  %v8117_v9 = vpop.permute.xlu0 %3498 }
 0x290   : > { %v3299_v22 = vrot.slane %v2750_v44, 4  ;;  %v2656_v25 = vmax.f32 %v2560_v6, %v8061_v26  ;;  %v2751_v30 = vmax.f32 %v2655_v45, %v8091_v19  ;;  %v2657_v11 = vmax.f32 %v2561_v40, %v2609_v5  ;;  %v8128_v40 = vld [vmem:[#allocation2 + $0x188] sm:$0xff]  ;;  %3589 = vst.msk [vmem:[#allocation3 + $0x18] sm:$0xf] %vm3582_vm9, %v8117_v9 }
 0x291   : > { %v3378_v60 = vmax.f32 %v3234_v8, %v3298_v34  ;;  %v2868_v49 = vsel %vm1497_vm4, %v2865_v24, %v2867_v31  ;;  %v3012_v62 = vsel %vm1642_vm5, %v3009_v56, %v3011_v59  ;;  %v3156_v27 = vsel %vm1787_vm6, %v3153_v42, %v3155_v48  ;;  %v8119_v34 = vpop.permute.xlu1 %3500  ;;  %v2372_v48 = vld [vmem:[#allocation2 + $0x130] sm:$0xf] }
 0x292   : > { %v2947_v2 = vmax.f32 %v8069_v29, %v2868_v49  ;;  %v3300_v3 = vsel %vm1932_vm7, %v3297_v57, %v3299_v22  ;;  %v2752_v18 = vmax.f32 %v2656_v25, %v8099_v10  ;;  %v2869_v17 = vrot.slane %v2751_v30, 1  ;;  %v2420_v22 = vld [vmem:[#allocation2 + $0x148] sm:$0xf]  ;;  %3590 = vst.msk [vmem:[#allocation3 + $0x1c] sm:$0xf] %vm3582_vm9, %v8119_v34 }
 0x293   : > { %v5880_v41 = vpack.c.bf16 %v3378_v60, %v3378_v60  ;;  %v3013_v0 = vrot.slane %v2751_v30, 2  ;;  %v3157_v32 = vrot.slane %v2751_v30, 3  ;;  %v3301_v47 = vrot.slane %v2751_v30, 4  ;;  %3635 = vst.msk [vmem:[#allocation2 + $0x122] sm:$0xff] %vm934_vm1, %v3378_v60 }
 0x294   : > { %v3091_v54 = vmax.f32 %v2947_v2, %v3012_v62  ;;  %v2870_v24 = vrot.slane %v2752_v18, 1  ;;  %v3014_v20 = vrot.slane %v2752_v18, 2  ;;  %v3158_v56 = vrot.slane %v2752_v18, 3 }
 0x295   : > { %3526 = vrot.lane.b32.xlu0 %v5880_v41, %s6475_s8  ;;  %v3302_v42 = vrot.slane %v2752_v18, 4  ;;  %v2753_v29 = vmax.f32 %v2657_v11, %v2705_v28  ;;  %v2563_v57 = vmax.f32 %v2467_v35, %v8061_v26  ;;  %v2658_v21 = vmax.f32 %v2562_v61, %v8091_v19  ;;  %v2216_v28 = vpop.permute.xlu1 %2215 }
 0x296   : > { %v3235_v55 = vmax.f32 %v3091_v54, %v3156_v27  ;;  %v2871_v39 = vsel %vm1497_vm4, %v2869_v17, %v2870_v24  ;;  %v3015_v23 = vsel %vm1642_vm5, %v3013_v0, %v3014_v20  ;;  %v3159_v12 = vsel %vm1787_vm6, %v3157_v32, %v3158_v56  ;;  %v2214_v17 = vpop.permute.xlu0 %2213  ;;  %2291 = vst.msk [vmem:[#allocation3 + $0x54] sm:$0xf] %vm2269_vm8, %v2216_v28 }
 0x297   : > { %v2948_v52 = vmax.f32 %v2751_v30, %v2871_v39  ;;  %v3303_v33 = vsel %vm1932_vm7, %v3301_v47, %v3302_v42  ;;  %v2872_v51 = vrot.slane %v2753_v29, 1  ;;  %v3016_v44 = vrot.slane %v2753_v29, 2  ;;  %2290 = vst.msk [vmem:[#allocation3 + $0x50] sm:$0xf] %vm2269_vm8, %v2214_v17  ;;  %v3709_v39 = vld [vmem:[#allocation2 + $0x88] sm:$0xf] }
 0x298   : > { %v3379_v5 = vmax.f32 %v3235_v55, %v3300_v3  ;;  %v3160_v35 = vrot.slane %v2753_v29, 3  ;;  %v3304_v6 = vrot.slane %v2753_v29, 4  ;;  %v2659_v45 = vmax.f32 %v2563_v57, %v8099_v10  ;;  %v2516_v3 = vld [vmem:[#allocation2 + $0x160] sm:$0xf] }
 0x299   : > { %v3092_v61 = vmax.f32 %v2948_v52, %v3015_v23  ;;  %v2873_v8 = vsel %vm1497_vm4, %v2870_v24, %v2872_v51  ;;  %v3017_v31 = vsel %vm1642_vm5, %v3014_v20, %v3016_v44  ;;  %v2754_v59 = vmax.f32 %v2658_v21, %v8124_v63  ;;  %v2708_v51 = vld [vmem:[#allocation2 + $0x190] sm:$0xf]  ;;  %v2220_v28 = vpop.permute.xlu1 %2219 }
 0x29a   : > { %v5881_v25 = vpack.c.bf16 %v3379_v5, %v3379_v5  ;;  %v2949_v30 = vmax.f32 %v2752_v18, %v2873_v8  ;;  %v3161_v11 = vsel %vm1787_vm6, %v3158_v56, %v3160_v35  ;;  %v3305_v60 = vsel %vm1932_vm7, %v3302_v42, %v3304_v6  ;;  %3636 = vst.msk [vmem:[#allocation2 + $0x12a] sm:$0xff] %vm934_vm1, %v3379_v5  ;;  %v2612_v56 = vld [vmem:[#allocation2 + $0x178] sm:$0xf]  ;;  %v3659_v42 = vld [vmem:[#allocation2 + $0x60] sm:$0xff]  ;;  %v2218_v17 = vpop.permute.xlu0 %2217 }
 0x29b   : > { %v3236_v49 = vmax.f32 %v3092_v61, %v3159_v12  ;;  %v8137_v62 = vmax.f32 %v2659_v45, %v8128_v40  ;;  %v2874_v27 = vrot.slane %v2754_v59, 1  ;;  %v3018_v2 = vrot.slane %v2754_v59, 2  ;;  %v3660_v45 = vld [vmem:[#allocation2 + $0x68] sm:$0xff]  ;;  %v3661_v61 = vld [vmem:[#allocation2 + $0x70] sm:$0xf] }
 0x29c   : > { %3528 = vrot.lane.b32.xlu1 %v5881_v25, %s6475_s8  ;;  %v3093_v41 = vmax.f32 %v2949_v30, %v3017_v31  ;;  %v3162_v0 = vrot.slane %v2754_v59, 3  ;;  %v3306_v18 = vrot.slane %v2754_v59, 4  ;;  %v2468_v32 = vmax.f32 %v2372_v48, %v2420_v22  ;;  %v3805_v8 = vld [vmem:[#allocation2 + $0xa0] sm:$0xf]  ;;  %v8157_v25 = vld [vmem:[#allocation2 + $0x148] sm:$0xf] }
 0x29d   : > { %v3380_v47 = vmax.f32 %v3236_v49, %v3303_v33  ;;  %v2875_v54 = vrot.slane %v8137_v62, 1  ;;  %v3019_v24 = vrot.slane %v8137_v62, 2  ;;  %v3163_v20 = vrot.slane %v8137_v62, 3  ;;  %v3901_v49 = vld [vmem:[#allocation2 + $0xb8] sm:$0xf] }
 0x29e   : > { %v3237_v29 = vmax.f32 %v3093_v41, %v3161_v11  ;;  %v3307_v57 = vrot.slane %v8137_v62, 4  ;;  %v2564_v21 = vmax.f32 %v2468_v32, %v2516_v3  ;;  %v3755_v55 = vmax.f32 %v3659_v42, %v7849_v4  ;;  %2292 = vst.msk [vmem:[#allocation3 + $0x58] sm:$0xf] %vm2269_vm8, %v2218_v17  ;;  %2293 = vst.msk [vmem:[#allocation3 + $0x5c] sm:$0xf] %vm2269_vm8, %v2220_v28 }
 0x29f   : > { %v5882_v23 = vpack.c.bf16 %v3380_v47, %v3380_v47  ;;  %v2876_v12 = vsel %vm1497_vm4, %v2874_v27, %v2875_v54  ;;  %v3020_v52 = vsel %vm1642_vm5, %v3018_v2, %v3019_v24  ;;  %v3164_v33 = vsel %vm1787_vm6, %v3162_v0, %v3163_v20  ;;  %3637 = vst.msk [vmem:[#allocation2 + $0x13a] sm:$0xff] %vm934_vm1, %v3380_v47  ;;  %v8168_v47 = vld [vmem:[#allocation2 + $0xc8] sm:$0xff] }
 0x2a0   : > { %v3381_v44 = vmax.f32 %v3237_v29, %v3305_v60  ;;  %v2950_v5 = vmax.f32 %v2754_v59, %v2876_v12  ;;  %v3308_v35 = vsel %vm1932_vm7, %v3306_v18, %v3307_v57  ;;  %v2660_v6 = vmax.f32 %v2564_v21, %v2612_v56  ;;  %v8159_v60 = vld [vmem:[#allocation2 + $0xc0] sm:$0xff] }
 0x2a1   : > { %3530 = vrot.lane.b32.xlu0 %v5882_v23, %s6475_s8  ;;  %v3756_v4 = vmax.f32 %v3660_v45, %v7854_v15  ;;  %v3851_v31 = vmax.f32 %v3755_v55, %v7987_v36  ;;  %v3757_v48 = vmax.f32 %v3661_v61, %v3709_v39  ;;  %v2469_v22 = vmax.f32 %v7917_v50, %v8057_v37 }
 0x2a2   : > { %v5883_v30 = vpack.c.bf16 %v3381_v44, %v3381_v44  ;;  %v3094_v59 = vmax.f32 %v2950_v5, %v3020_v52  ;;  %v2756_v11 = vmax.f32 %v2660_v6, %v2708_v51  ;;  %v2470_v27 = vmax.f32 %v7922_v16, %v8061_v26  ;;  %3638 = vst.msk [vmem:[#allocation2 + $0x142] sm:$0xff] %vm934_vm1, %v3381_v44  ;;  %v3997_v44 = vld [vmem:[#allocation2 + $0xd0] sm:$0xf] }
 0x2a3   : > { %v3852_v15 = vmax.f32 %v3756_v4, %v7993_v1  ;;  %v3947_v2 = vmax.f32 %v3851_v31, %v8030_v53  ;;  %v3853_v3 = vmax.f32 %v3757_v48, %v3805_v8  ;;  %v2565_v50 = vmax.f32 %v2469_v22, %v8091_v19 }
 0x2a4   : > { %3532 = vrot.lane.b32.xlu1 %v5883_v30, %s6475_s8  ;;  %v3238_v41 = vmax.f32 %v3094_v59, %v3164_v33  ;;  %v2877_v0 = vrot.slane %v2756_v11, 1  ;;  %v3021_v18 = vrot.slane %v2756_v11, 2  ;;  %v3165_v32 = vrot.slane %v2756_v11, 3  ;;  %v8187_v59 = vld [vmem:[#allocation2 + $0x198] sm:$0xff] }
 0x2a5   : > { %v3309_v16 = vrot.slane %v2756_v11, 4  ;;  %v3948_v56 = vmax.f32 %v3852_v15, %v8041_v43  ;;  %v4043_v42 = vmax.f32 %v3947_v2, %v8159_v60  ;;  %v3949_v29 = vmax.f32 %v3853_v3, %v3901_v49 }
 0x2a6   : > { %v3382_v21 = vmax.f32 %v3238_v41, %v3308_v35  ;;  %v2878_v55 = vsel %vm1497_vm4, %v2875_v54, %v2877_v0  ;;  %v3022_v39 = vsel %vm1642_vm5, %v3019_v24, %v3021_v18  ;;  %v3166_v23 = vsel %vm1787_vm6, %v3163_v20, %v3165_v32 }
 0x2a7   : > { %v2951_v12 = vmax.f32 %v8137_v62, %v2878_v55  ;;  %v3310_v52 = vsel %vm1932_vm7, %v3307_v57, %v3309_v16  ;;  %v4044_v33 = vmax.f32 %v3948_v56, %v8168_v47  ;;  %v4147_v51 = vrot.slane %v4043_v42, 1  ;;  %v2423_v16 = vld [vmem:[#allocation2 + $0x160] sm:$0xf] }
 0x2a8   : > { %v5884_v5 = vpack.c.bf16 %v3382_v21, %v3382_v21  ;;  %v4291_v6 = vrot.slane %v4043_v42, 2  ;;  %v4435_v45 = vrot.slane %v4043_v42, 3  ;;  %v4579_v61 = vrot.slane %v4043_v42, 4  ;;  %3639 = vst.msk [vmem:[#allocation2 + $0x152] sm:$0xff] %vm934_vm1, %v3382_v21  ;;  %v8196_v56 = vld [vmem:[#allocation2 + $0x160] sm:$0xf] }
 0x2a9   : > { %v3095_v35 = vmax.f32 %v2951_v12, %v3022_v39  ;;  %v4148_v54 = vrot.slane %v4044_v33, 1  ;;  %v4292_v8 = vrot.slane %v4044_v33, 2  ;;  %v4436_v24 = vrot.slane %v4044_v33, 3 }
 0x2aa   : > { %3534 = vrot.lane.b32.xlu0 %v5884_v5, %s6475_s8  ;;  %v4580_v20 = vrot.slane %v4044_v33, 4  ;;  %v4045_v62 = vmax.f32 %v3949_v29, %v3997_v44  ;;  %v2566_v57 = vmax.f32 %v2470_v27, %v8099_v10  ;;  %v2661_v4 = vmax.f32 %v2565_v50, %v8124_v63  ;;  %v8191_v50 = vld [vmem:[#allocation2 + $0x1a0] sm:$0xff] }
 0x2ab   : > { %v3239_v31 = vmax.f32 %v3095_v35, %v3166_v23  ;;  %v4149_v48 = vsel %vm1497_vm4, %v4147_v51, %v4148_v54  ;;  %v4293_v22 = vsel %vm1642_vm5, %v4291_v6, %v4292_v8  ;;  %v4437_v30 = vsel %vm1787_vm6, %v4435_v45, %v4436_v24  ;;  %v2519_v51 = vld [vmem:[#allocation2 + $0x178] sm:$0xf] }
 0x2ac   : > { %v4247_v11 = vmax.f32 %v4043_v42, %v4149_v48  ;;  %v4581_v49 = vsel %vm1932_vm7, %v4579_v61, %v4580_v20  ;;  %v4150_v15 = vrot.slane %v4045_v62, 1  ;;  %v4294_v2 = vrot.slane %v4045_v62, 2 }
 0x2ad   : > { %v3383_v3 = vmax.f32 %v3239_v31, %v3310_v52  ;;  %v4438_v17 = vrot.slane %v4045_v62, 3  ;;  %v4582_v28 = vrot.slane %v4045_v62, 4  ;;  %v2662_v27 = vmax.f32 %v2566_v57, %v8128_v40  ;;  %v3712_v31 = vld [vmem:[#allocation2 + $0xa0] sm:$0xf] }
 0x2ae   : > { %v4391_v41 = vmax.f32 %v4247_v11, %v4293_v22  ;;  %v4151_v0 = vsel %vm1497_vm4, %v4148_v54, %v4150_v15  ;;  %v4295_v18 = vsel %vm1642_vm5, %v4292_v8, %v4294_v2  ;;  %v2757_v32 = vmax.f32 %v2661_v4, %v8187_v59  ;;  %v2615_v8 = vld [vmem:[#allocation2 + $0x190] sm:$0xf]  ;;  %v2711_v11 = vld [vmem:[#allocation2 + $0x1a8] sm:$0xf] }
 0x2af   : > { %v5885_v42 = vpack.c.bf16 %v3383_v3, %v3383_v3  ;;  %v4248_v29 = vmax.f32 %v4044_v33, %v4151_v0  ;;  %v4439_v21 = vsel %vm1787_vm6, %v4436_v24, %v4438_v17  ;;  %v4583_v55 = vsel %vm1932_vm7, %v4580_v20, %v4582_v28  ;;  %3640 = vst.msk [vmem:[#allocation2 + $0x15a] sm:$0xff] %vm934_vm1, %v3383_v3  ;;  %v3662_v24 = vld [vmem:[#allocation2 + $0x78] sm:$0xff]  ;;  %v3663_v17 = vld [vmem:[#allocation2 + $0x80] sm:$0xff]  ;;  %v3664_v28 = vld [vmem:[#allocation2 + $0x88] sm:$0xf] }
 0x2b0   : > { %v4535_v39 = vmax.f32 %v4391_v41, %v4437_v30  ;;  %v8202_v23 = vmax.f32 %v2662_v27, %v8191_v50  ;;  %v2879_v12 = vrot.slane %v2757_v32, 1  ;;  %v3023_v52 = vrot.slane %v2757_v32, 2  ;;  %v3808_v27 = vld [vmem:[#allocation2 + $0xb8] sm:$0xf] }
 0x2b1   : > { %3536 = vrot.lane.b32.xlu1 %v5885_v42, %s6475_s8  ;;  %v4392_v44 = vmax.f32 %v4248_v29, %v4295_v18  ;;  %v3167_v5 = vrot.slane %v2757_v32, 3  ;;  %v3311_v6 = vrot.slane %v2757_v32, 4  ;;  %v2471_v33 = vmax.f32 %v8157_v25, %v2423_v16 }
 0x2b2   : > { %v4679_v45 = vmax.f32 %v4535_v39, %v4581_v49  ;;  %v2880_v61 = vrot.slane %v8202_v23, 1  ;;  %v3024_v35 = vrot.slane %v8202_v23, 2  ;;  %v3168_v54 = vrot.slane %v8202_v23, 3 }
 0x2b3   : > { %v4536_v20 = vmax.f32 %v4392_v44, %v4439_v21  ;;  %v3312_v62 = vrot.slane %v8202_v23, 4  ;;  %v2567_v57 = vmax.f32 %v2471_v33, %v2519_v51  ;;  %v3758_v4 = vmax.f32 %v3662_v24, %v7987_v36  ;;  %v3904_v21 = vld [vmem:[#allocation2 + $0xd0] sm:$0xf]  ;;  %v8229_v51 = vpop.permute.xlu1 %3504  ;;  %v8232_v33 = vld [vmem:[#allocation2 + $0xe0] sm:$0xff] }
 0x2b4   : > { %v5900_v48 = vpack.c.bf16 %v4679_v45, %v4679_v45  ;;  %v2881_v22 = vsel %vm1497_vm4, %v2879_v12, %v2880_v61  ;;  %v3025_v25 = vsel %vm1642_vm5, %v3023_v52, %v3024_v35  ;;  %v3169_v30 = vsel %vm1787_vm6, %v3167_v5, %v3168_v54  ;;  %v8227_v52 = vpop.permute.xlu0 %3502  ;;  %3592 = vst.msk [vmem:[#allocation3 + $0x24] sm:$0xf] %vm3582_vm9, %v8229_v51  ;;  %v3666_v51 = vld [vmem:[#allocation2 + $0x98] sm:$0xff] }
 0x2b5   : > { %v4680_v49 = vmax.f32 %v4536_v20, %v4583_v55  ;;  %v2952_v15 = vmax.f32 %v2757_v32, %v2881_v22  ;;  %v3313_v2 = vsel %vm1932_vm7, %v3311_v6, %v3312_v62  ;;  %v2663_v3 = vmax.f32 %v2567_v57, %v2615_v8  ;;  %v8220_v32 = vld [vmem:[#allocation2 + $0xd8] sm:$0xff]  ;;  %3591 = vst.msk [vmem:[#allocation3 + $0x20] sm:$0xf] %vm3582_vm9, %v8227_v52 }
 0x2b6   : > { %4815 = vrot.lane.b32.xlu0 %v5900_v48, %s6476_s7  ;;  %v3759_v36 = vmax.f32 %v3663_v17, %v7993_v1  ;;  %v3854_v41 = vmax.f32 %v3758_v4, %v8030_v53  ;;  %v3760_v0 = vmax.f32 %v3664_v28, %v3712_v31  ;;  %v2472_v18 = vmax.f32 %v8057_v37, %v8091_v19 }
 0x2b7   : > { %v5901_v16 = vpack.c.bf16 %v4680_v49, %v4680_v49  ;;  %v3096_v42 = vmax.f32 %v2952_v15, %v3025_v25  ;;  %v2759_v29 = vmax.f32 %v2663_v3, %v2711_v11  ;;  %v2473_v55 = vmax.f32 %v8061_v26, %v8099_v10 }
 0x2b8   : > { %v3855_v39 = vmax.f32 %v3759_v36, %v8041_v43  ;;  %v3950_v12 = vmax.f32 %v3854_v41, %v8159_v60  ;;  %v3856_v1 = vmax.f32 %v3760_v0, %v3808_v27  ;;  %v2568_v53 = vmax.f32 %v2472_v18, %v8124_v63  ;;  %v8243_v28 = vpop.permute.xlu0 %3506 }
 0x2b9   : > { %4817 = vrot.lane.b32.xlu1 %v5901_v16, %s6476_s7  ;;  %v3240_v37 = vmax.f32 %v3096_v42, %v3169_v30  ;;  %v2882_v44 = vrot.slane %v2759_v29, 1  ;;  %v3026_v5 = vrot.slane %v2759_v29, 2  ;;  %v3170_v6 = vrot.slane %v2759_v29, 3  ;;  %v4000_v30 = vld [vmem:[#allocation2 + $0xe8] sm:$0xf]  ;;  %v8253_v42 = vld [vmem:[#allocation2 + $0x1b0] sm:$0xff] }
 0x2ba   : > { %v3314_v26 = vrot.slane %v2759_v29, 4  ;;  %v3951_v43 = vmax.f32 %v3855_v39, %v8168_v47  ;;  %v4046_v45 = vmax.f32 %v3950_v12, %v8220_v32  ;;  %v3952_v8 = vmax.f32 %v3856_v1, %v3904_v21  ;;  %3593 = vst.msk [vmem:[#allocation3 + $0x28] sm:$0xf] %vm3582_vm9, %v8243_v28 }
 0x2bb   : > { %v3384_v24 = vmax.f32 %v3240_v37, %v3313_v2  ;;  %v2883_v20 = vsel %vm1497_vm4, %v2880_v61, %v2882_v44  ;;  %v3027_v57 = vsel %vm1642_vm5, %v3024_v35, %v3026_v5  ;;  %v3171_v4 = vsel %vm1787_vm6, %v3168_v54, %v3170_v6  ;;  %v8245_v54 = vpop.permute.xlu1 %3508 }
 0x2bc   : > { %v2953_v31 = vmax.f32 %v8202_v23, %v2883_v20  ;;  %v3315_v48 = vsel %vm1932_vm7, %v3312_v62, %v3314_v26  ;;  %v4047_v22 = vmax.f32 %v3951_v43, %v8232_v33  ;;  %v4152_v25 = vrot.slane %v4046_v45, 1  ;;  %3594 = vst.msk [vmem:[#allocation3 + $0x2c] sm:$0xf] %vm3582_vm9, %v8245_v54 }
 0x2bd   : > { %v5886_v11 = vpack.c.bf16 %v3384_v24, %v3384_v24  ;;  %v4296_v49 = vrot.slane %v4046_v45, 2  ;;  %v4440_v15 = vrot.slane %v4046_v45, 3  ;;  %v4584_v3 = vrot.slane %v4046_v45, 4  ;;  %3641 = vst.msk [vmem:[#allocation2 + $0x16a] sm:$0xff] %vm934_vm1, %v3384_v24 }
 0x2be   : > { %v3097_v2 = vmax.f32 %v2953_v31, %v3027_v57  ;;  %v4153_v61 = vrot.slane %v4047_v22, 1  ;;  %v4297_v17 = vrot.slane %v4047_v22, 2  ;;  %v4441_v35 = vrot.slane %v4047_v22, 3  ;;  %v2222_v31 = vpop.permute.xlu0 %2221 }
 0x2bf   : > { %3538 = vrot.lane.b32.xlu0 %v5886_v11, %s6475_s8  ;;  %v4585_v23 = vrot.slane %v4047_v22, 4  ;;  %v4048_v62 = vmax.f32 %v3952_v8, %v4000_v30  ;;  %v2569_v27 = vmax.f32 %v2473_v55, %v8128_v40  ;;  %v2664_v36 = vmax.f32 %v2568_v53, %v8187_v59  ;;  %v8257_v53 = vld [vmem:[#allocation2 + $0x1b8] sm:$0xff]  ;;  %2294 = vst.msk [vmem:[#allocation3 + $0x60] sm:$0xf] %vm2269_vm8, %v2222_v31 }
 0x2c0   : > { %v3241_v41 = vmax.f32 %v3097_v2, %v3171_v4  ;;  %v4154_v0 = vsel %vm1497_vm4, %v4152_v25, %v4153_v61  ;;  %v4298_v18 = vsel %vm1642_vm5, %v4296_v49, %v4297_v17  ;;  %v4442_v16 = vsel %vm1787_vm6, %v4440_v15, %v4441_v35  ;;  %v8264_v8 = vld [vmem:[#allocation2 + $0x178] sm:$0xf]  ;;  %v2522_v15 = vld [vmem:[#allocation2 + $0x190] sm:$0xf] }
 0x2c1   : > { %v4249_v29 = vmax.f32 %v4046_v45, %v4154_v0  ;;  %v4586_v21 = vsel %vm1932_vm7, %v4584_v3, %v4585_v23  ;;  %v4155_v39 = vrot.slane %v4048_v62, 1  ;;  %v4299_v12 = vrot.slane %v4048_v62, 2  ;;  %v2426_v45 = vld [vmem:[#allocation2 + $0x178] sm:$0xf] }
 0x2c2   : > { %v3385_v1 = vmax.f32 %v3241_v41, %v3315_v48  ;;  %v4443_v37 = vrot.slane %v4048_v62, 3  ;;  %v4587_v44 = vrot.slane %v4048_v62, 4  ;;  %v2665_v55 = vmax.f32 %v2569_v27, %v8191_v50  ;;  %v2224_v48 = vpop.permute.xlu1 %2223  ;;  %v2618_v27 = vld [vmem:[#allocation2 + $0x1a8] sm:$0xf] }
 0x2c3   : > { %v4393_v5 = vmax.f32 %v4249_v29, %v4298_v18  ;;  %v4156_v6 = vsel %vm1497_vm4, %v4153_v61, %v4155_v39  ;;  %v4300_v26 = vsel %vm1642_vm5, %v4297_v17, %v4299_v12  ;;  %v8262_v43 = vmax.f32 %v2664_v36, %v8253_v42  ;;  %2295 = vst.msk [vmem:[#allocation3 + $0x64] sm:$0xf] %vm2269_vm8, %v2224_v48  ;;  %v2429_v18 = vld [vmem:[#allocation2 + $0x190] sm:$0xf]  ;;  %v2714_v12 = vld [vmem:[#allocation2 + $0x1c0] sm:$0xf] }
 0x2c4   : > { %v5887_v24 = vpack.c.bf16 %v3385_v1, %v3385_v1  ;;  %v4250_v20 = vmax.f32 %v4047_v22, %v4156_v6  ;;  %v4444_v57 = vsel %vm1787_vm6, %v4441_v35, %v4443_v37  ;;  %v4588_v4 = vsel %vm1932_vm7, %v4585_v23, %v4587_v44  ;;  %3642 = vst.msk [vmem:[#allocation2 + $0x172] sm:$0xff] %vm934_vm1, %v3385_v1  ;;  %v8303_v1 = vld [vmem:[#allocation2 + $0xb0] sm:$0xff] }
 0x2c5   : > { %v4537_v25 = vmax.f32 %v4393_v5, %v4442_v16  ;;  %v8270_v30 = vmax.f32 %v2665_v55, %v8257_v53  ;;  %v2884_v11 = vrot.slane %v8262_v43, 1  ;;  %v3028_v49 = vrot.slane %v8262_v43, 2  ;;  %v8284_v16 = vld [vmem:[#allocation2 + $0xa8] sm:$0xff]  ;;  %v2621_v55 = vld [vmem:[#allocation2 + $0x1c0] sm:$0xf] }
 0x2c6   : > { %3540 = vrot.lane.b32.xlu1 %v5887_v24, %s6475_s8  ;;  %v4394_v22 = vmax.f32 %v4250_v20, %v4300_v26  ;;  %v3172_v3 = vrot.slane %v8262_v43, 3  ;;  %v3316_v2 = vrot.slane %v8262_v43, 4  ;;  %v2474_v61 = vmax.f32 %v8196_v56, %v2426_v45  ;;  %v2716_v24 = vld [vmem:[#allocation2 + $0x1d0] sm:$0xff]  ;;  %v2226_v20 = vpop.permute.xlu0 %2225 }
 0x2c7   : > { %v4681_v17 = vmax.f32 %v4537_v25, %v4586_v21  ;;  %v2885_v35 = vrot.slane %v8270_v30, 1  ;;  %v3029_v23 = vrot.slane %v8270_v30, 2  ;;  %v3173_v62 = vrot.slane %v8270_v30, 3  ;;  %2296 = vst.msk [vmem:[#allocation3 + $0x68] sm:$0xf] %vm2269_vm8, %v2226_v20 }
 0x2c8   : > { %v4538_v36 = vmax.f32 %v4394_v22, %v4444_v57  ;;  %v3317_v41 = vrot.slane %v8270_v30, 4  ;;  %v2570_v0 = vmax.f32 %v2474_v61, %v2522_v15  ;;  %v2475_v9 = vmax.f32 %v8091_v19, %v8124_v63  ;;  %v2228_v57 = vpop.permute.xlu1 %2227 }
 0x2c9   : > { %v5902_v29 = vpack.c.bf16 %v4681_v17, %v4681_v17  ;;  %v2886_v56 = vsel %vm1497_vm4, %v2884_v11, %v2885_v35  ;;  %v3030_v21 = vsel %vm1642_vm5, %v3028_v49, %v3029_v23  ;;  %v3174_v39 = vsel %vm1787_vm6, %v3172_v3, %v3173_v62  ;;  %v2717_v11 = vld [vmem:[#allocation2 + $0x1d8] sm:$0xf]  ;;  %2297 = vst.msk [vmem:[#allocation3 + $0x6c] sm:$0xf] %vm2269_vm8, %v2228_v57 }
 0x2ca   : > { %v4682_v46 = vmax.f32 %v4538_v36, %v4588_v4  ;;  %v2954_v58 = vmax.f32 %v8262_v43, %v2886_v56  ;;  %v3318_v7 = vsel %vm1932_vm7, %v3316_v2, %v3317_v41  ;;  %v2666_v13 = vmax.f32 %v2570_v0, %v2618_v27  ;;  %v2715_v43 = vld [vmem:[#allocation2 + $0x1c8] sm:$0xff] }
 0x2cb   : > { %4819 = vrot.lane.b32.xlu0 %v5902_v29, %s6476_s7  ;;  %v2476_v34 = vmax.f32 %v8099_v10, %v8128_v40  ;;  %v2477_v52 = vmax.f32 %v8264_v8, %v2429_v18  ;;  %v3761_v28 = vmax.f32 %v3665_v14, %v8284_v16  ;;  %v3762_v5 = vmax.f32 %v3666_v51, %v8303_v1 }
 0x2cc   : > { %v5903_v54 = vpack.c.bf16 %v4682_v46, %v4682_v46  ;;  %v3098_v37 = vmax.f32 %v2954_v58, %v3030_v21  ;;  %v2762_v44 = vmax.f32 %v2666_v13, %v2714_v12  ;;  %v2571_v6 = vmax.f32 %v2475_v9, %v8187_v59  ;;  %v6100_v59 = vld [vmem:[%s9068_s3 + $0x8] sm:$0xff]   ;;  %v2232_v36 = vpop.permute.xlu1 %2231 }
 0x2cd   : > { %v2572_v26 = vmax.f32 %v2476_v34, %v8191_v50  ;;  %v2573_v19 = vmax.f32 %v2477_v52, %v2525_v38  ;;  %v8336_v63 = vmax.f32 %v3761_v28, %v8159_v60  ;;  %v6101_v50 = vld [vmem:[%s9068_s3] sm:$0xff]   ;;  %5994 = vmatprep.subr.bf16.mxu1 %v6100_v59  ;;  %2299 = vst.msk [vmem:[#allocation3 + $0x74] sm:$0xf] %vm2269_vm8, %v2232_v36  ;;  %v8372_v34 = vld [vmem:[#allocation2 + $0xf0] sm:$0xff] }
 0x2ce   : > { %4821 = vrot.lane.b32.xlu1 %v5903_v54, %s6476_s7  ;;  %v3242_v10 = vmax.f32 %v3098_v37, %v3174_v39  ;;  %v2887_v40 = vrot.slane %v2762_v44, 1  ;;  %v3031_v45 = vrot.slane %v2762_v44, 2  ;;  %v3175_v8 = vrot.slane %v2762_v44, 3  ;;  %5995 = vmatpush3.bf16.msra.mxu1 %v6100_v59 }
 0x2cf   : > { %v3319_v4 = vrot.slane %v2762_v44, 4  ;;  %v2667_v31 = vmax.f32 %v2571_v6, %v8253_v42  ;;  %v2668_v48 = vmax.f32 %v2572_v26, %v8257_v53  ;;  %v2669_v25 = vmax.f32 %v2573_v19, %v2621_v55  ;;  %5996 = vmatprep.subr.bf16.mxu1 %v6101_v50  ;;  %v3715_v55 = vld [vmem:[#allocation2 + $0xb8] sm:$0xf] }
 0x2d0   : > { %v3386_v49 = vmax.f32 %v3242_v10, %v3318_v7  ;;  %v2888_v15 = vsel %vm1497_vm4, %v2885_v35, %v2887_v40  ;;  %v3032_v22 = vsel %vm1642_vm5, %v3029_v23, %v3031_v45  ;;  %v3176_v42 = vsel %vm1787_vm6, %v3173_v62, %v3175_v8  ;;  %v2230_v62 = vpop.permute.xlu0 %2229  ;;  %v3513_v51 = vpop.permute.xlu1 %3512  ;;  %v8379_v19 = vld [vmem:[#allocation2 + $0xf8] sm:$0xff]  ;;  %v3667_v8 = vld [vmem:[#allocation2 + $0xa0] sm:$0xf] }
 0x2d1   : > { %v2955_v53 = vmax.f32 %v8270_v30, %v2888_v15  ;;  %v3320_v3 = vsel %vm1932_vm7, %v3317_v41, %v3319_v4  ;;  %v2763_v2 = vmax.f32 %v2667_v31, %v2715_v43  ;;  %v2764_v61 = vmax.f32 %v2668_v48, %v2716_v24  ;;  %2298 = vst.msk [vmem:[#allocation3 + $0x70] sm:$0xf] %vm2269_vm8, %v2230_v62  ;;  %v3811_v24 = vld [vmem:[#allocation2 + $0xd0] sm:$0xf]  ;;  %v3907_v15 = vld [vmem:[#allocation2 + $0xe8] sm:$0xf] }
 0x2d2   : > { %v5888_v17 = vpack.c.bf16 %v3386_v49, %v3386_v49  ;;  %3643 = vst.msk [vmem:[#allocation2 + $0x182] sm:$0xff] %vm934_vm1, %v3386_v49  ;;  %v2765_v35 = vmax.f32 %v2669_v25, %v2717_v11  ;;  %v3858_v23 = vmax.f32 %v3762_v5, %v8168_v47  ;;  %v3953_v27 = vmax.f32 %v8336_v63, %v8220_v32 }
 0x2d3   : > { %v3099_v0 = vmax.f32 %v2955_v53, %v3032_v22  ;;  %v2889_v18 = vrot.slane %v2763_v2, 1  ;;  %v2890_v30 = vrot.slane %v2764_v61, 1  ;;  %v3033_v29 = vrot.slane %v2763_v2, 2  ;;  %5997 = vmatpush3.bf16.msra.mxu1 %v6101_v50  ;;  %3596 = vst.msk [vmem:[#allocation3 + $0x34] sm:$0xf] %vm3582_vm9, %v3513_v51 }
 0x2d4   : > { %3542 = vrot.lane.b32.xlu0 %v5888_v17, %s6475_s8  ;;  %v3034_v41 = vrot.slane %v2764_v61, 2  ;;  %v3177_v56 = vrot.slane %v2763_v2, 3  ;;  %v3178_v21 = vrot.slane %v2764_v61, 3  ;;  %v3321_v39 = vrot.slane %v2763_v2, 4  ;;  %v3511_v52 = vpop.permute.xlu0 %3510  ;;  %v2236_v31 = vpop.permute.xlu1 %2235 }
 0x2d5   : > { %v3243_v12 = vmax.f32 %v3099_v0, %v3176_v42  ;;  %v2891_v46 = vsel %vm1497_vm4, %v2889_v18, %v2890_v30  ;;  %v3322_v58 = vrot.slane %v2764_v61, 4  ;;  %v2892_v7 = vrot.slane %v2765_v35, 1  ;;  %3595 = vst.msk [vmem:[#allocation3 + $0x30] sm:$0xf] %vm3582_vm9, %v3511_v52  ;;  %v3718_v18 = vld [vmem:[#allocation2 + $0xd0] sm:$0xf] }
 0x2d6   : > { %v2956_v13 = vmax.f32 %v2763_v2, %v2891_v46  ;;  %v3035_v38 = vsel %vm1642_vm5, %v3033_v29, %v3034_v41  ;;  %v3179_v14 = vsel %vm1787_vm6, %v3177_v56, %v3178_v21  ;;  %v3036_v9 = vrot.slane %v2765_v35, 2  ;;  %2301 = vst.msk [vmem:[#allocation3 + $0x7c] sm:$0xf] %vm2269_vm8, %v2236_v31 }
 0x2d7   : > { %v3387_v28 = vmax.f32 %v3243_v12, %v3320_v3  ;;  %v3323_v54 = vsel %vm1932_vm7, %v3321_v39, %v3322_v58  ;;  %v2893_v37 = vsel %vm1497_vm4, %v2890_v30, %v2892_v7  ;;  %v3180_v44 = vrot.slane %v2765_v35, 3  ;;  %v3670_v7 = vld [vmem:[#allocation2 + $0xb8] sm:$0xf] }
 0x2d8   : > { %v3100_v5 = vmax.f32 %v2956_v13, %v3035_v38  ;;  %v2957_v6 = vmax.f32 %v2764_v61, %v2893_v37  ;;  %v3037_v26 = vsel %vm1642_vm5, %v3034_v41, %v3036_v9  ;;  %v3324_v43 = vrot.slane %v2765_v35, 4  ;;  %v2234_v4 = vpop.permute.xlu0 %2233  ;;  %v3517_v29 = vpop.permute.xlu1 %3516  ;;  %v3814_v13 = vld [vmem:[#allocation2 + $0xe8] sm:$0xf] }
 0x2d9   : > { %v5889_v63 = vpack.c.bf16 %v3387_v28, %v3387_v28  ;;  %v3181_v10 = vsel %vm1787_vm6, %v3178_v21, %v3180_v44  ;;  %3644 = vst.msk [vmem:[#allocation2 + $0x18a] sm:$0xff] %vm934_vm1, %v3387_v28  ;;  %v3954_v40 = vmax.f32 %v3858_v23, %v8232_v33  ;;  %v4049_v45 = vmax.f32 %v3953_v27, %v8372_v34  ;;  %v4003_v23 = vld [vmem:[#allocation2 + $0x100] sm:$0xf]  ;;  %v8415_v44 = vld [vmem:[#allocation2 + $0x108] sm:$0xff] }
 0x2da   : > { %v3244_v20 = vmax.f32 %v3100_v5, %v3179_v14  ;;  %v3101_v57 = vmax.f32 %v2957_v6, %v3037_v26  ;;  %v3325_v59 = vsel %vm1932_vm7, %v3322_v58, %v3324_v43  ;;  %v3763_v50 = vmax.f32 %v3667_v8, %v3715_v55  ;;  %2300 = vst.msk [vmem:[#allocation3 + $0x78] sm:$0xf] %vm2269_vm8, %v2234_v4  ;;  %v3910_v43 = vld [vmem:[#allocation2 + $0x100] sm:$0xf] }
 0x2db   : > { %3544 = vrot.lane.b32.xlu1 %v5889_v63, %s6475_s8  ;;  %v8388_v48 = vmax.f32 %v3954_v40, %v8379_v19  ;;  %v4157_v25 = vrot.slane %v4049_v45, 1  ;;  %v4301_v11 = vrot.slane %v4049_v45, 2  ;;  %v4445_v49 = vrot.slane %v4049_v45, 3  ;;  %3598 = vst.msk [vmem:[#allocation3 + $0x3c] sm:$0xf] %vm3582_vm9, %v3517_v29 }
 0x2dc   : > { %v3388_v22 = vmax.f32 %v3244_v20, %v3323_v54  ;;  %v3245_v42 = vmax.f32 %v3101_v57, %v3181_v10  ;;  %v4589_v53 = vrot.slane %v4049_v45, 4  ;;  %v3859_v3 = vmax.f32 %v3763_v50, %v3811_v24  ;;  %v3515_v30 = vpop.permute.xlu0 %3514  ;;  %v8419_v55 = vpop.permute.xlu1 %4801 }
 0x2dd   : > { %v4158_v2 = vrot.slane %v8388_v48, 1  ;;  %v4302_v61 = vrot.slane %v8388_v48, 2  ;;  %v4446_v17 = vrot.slane %v8388_v48, 3  ;;  %v4590_v35 = vrot.slane %v8388_v48, 4  ;;  %3597 = vst.msk [vmem:[#allocation3 + $0x38] sm:$0xf] %vm3582_vm9, %v3515_v30 }
 0x2de   : > { %v5890_v27 = vpack.c.bf16 %v3388_v22, %v3388_v22  ;;  %3645 = vst.msk [vmem:[#allocation2 + $0x19a] sm:$0xff] %vm934_vm1, %v3388_v22  ;;  %v3389_v62 = vmax.f32 %v3245_v42, %v3325_v59  ;;  %v3955_v36 = vmax.f32 %v3859_v3, %v3907_v15  ;;  %v3764_v0 = vmax.f32 %v8284_v16, %v8159_v60  ;;  %v4006_v59 = vld [vmem:[#allocation2 + $0x118] sm:$0xf] }
 0x2df   : > { %v4159_v41 = vsel %vm1497_vm4, %v4157_v25, %v4158_v2  ;;  %v4303_v56 = vsel %vm1642_vm5, %v4301_v11, %v4302_v61  ;;  %v4447_v21 = vsel %vm1787_vm6, %v4445_v49, %v4446_v17  ;;  %v4591_v39 = vsel %vm1932_vm7, %v4589_v53, %v4590_v35  ;;  %4897 = vst.msk [vmem:[#allocation3 + $0x4] sm:$0xf] %vm4895_vm10, %v8419_v55 }
 0x2e0   : > { %3546 = vrot.lane.b32.xlu0 %v5890_v27, %s6475_s8  ;;  %v5891_v12 = vpack.c.bf16 %v3389_v62, %v3389_v62  ;;  %3646 = vst.msk [vmem:[#allocation2 + $0x1a2] sm:$0xff] %vm934_vm1, %v3389_v62  ;;  %v4251_v16 = vmax.f32 %v4049_v45, %v4159_v41  ;;  %v4051_v46 = vmax.f32 %v3955_v36, %v4003_v23  ;;  %v8426_v45 = vld [vmem:[#allocation2 + $0x110] sm:$0xff]  ;;  %v8436_v49 = vpop.permute.xlu1 %4805 }
 0x2e1   : > { %v3765_v58 = vmax.f32 %v8303_v1, %v8168_v47  ;;  %v3860_v38 = vmax.f32 %v3764_v0, %v8220_v32  ;;  %v3766_v14 = vmax.f32 %v3670_v7, %v3718_v18  ;;  %v3767_v9 = vmax.f32 %v8159_v60, %v8220_v32  ;;  %v8417_v1 = vpop.permute.xlu0 %4799  ;;  %4899 = vst.msk [vmem:[#allocation3 + $0xc] sm:$0xf] %vm4895_vm10, %v8436_v49 }
 0x2e2   : > { %v3768_v52 = vmax.f32 %v8168_v47, %v8232_v33  ;;  %3548 = vrot.lane.b32.xlu1 %v5891_v12, %s6475_s8  ;;  %v4395_v51 = vmax.f32 %v4251_v16, %v4303_v56  ;;  %v4160_v28 = vrot.slane %v4051_v46, 1  ;;  %v4304_v54 = vrot.slane %v4051_v46, 2  ;;  %v3721_v12 = vld [vmem:[#allocation2 + $0xe8] sm:$0xf]  ;;  %4896 = vst.msk [vmem:[#allocation3] sm:$0xf] %vm4895_vm10, %v8417_v1  ;;  %s9015_s8 = scalar_lea.hbm %s9070_s5, %s5924_s12 }
 0x2e3   : > { %v4448_v37 = vrot.slane %v4051_v46, 3  ;;  %v4592_v5 = vrot.slane %v4051_v46, 4  ;;  %v3861_v6 = vmax.f32 %v3765_v58, %v8232_v33  ;;  %v3956_v60 = vmax.f32 %v3860_v38, %v8372_v34 }
 0x2e4   : > { %v3862_v26 = vmax.f32 %v3766_v14, %v3814_v13  ;;  %v4539_v47 = vmax.f32 %v4395_v51, %v4447_v21  ;;  %v4161_v63 = vsel %vm1497_vm4, %v4158_v2, %v4160_v28  ;;  %v4305_v10 = vsel %vm1642_vm5, %v4302_v61, %v4304_v54  ;;  %v3521_v29 = vpop.permute.xlu1 %3520  ;;  %v3673_v13 = vld [vmem:[#allocation2 + $0xd0] sm:$0xf]  ;;  %v8449_v51 = vld [vmem:[#allocation2 + $0x120] sm:$0xff]  ;;  %v8451_v28 = vld [vmem:[#allocation2 + $0x128] sm:$0xff] }
 0x2e5   : > { %v4449_v40 = vsel %vm1787_vm6, %v4446_v17, %v4448_v37  ;;  %v4252_v8 = vmax.f32 %v8388_v48, %v4161_v63  ;;  %v4593_v24 = vsel %vm1932_vm7, %v4590_v35, %v4592_v5  ;;  %v3957_v20 = vmax.f32 %v3861_v6, %v8379_v19  ;;  %v8434_v11 = vpop.permute.xlu0 %4803  ;;  %3600 = vst.msk [vmem:[#allocation3 + $0x44] sm:$0xf] %vm3582_vm9, %v3521_v29  ;;  %v3817_v54 = vld [vmem:[#allocation2 + $0x100] sm:$0xf] }
 0x2e6   : > { %v4052_v57 = vmax.f32 %v3956_v60, %v8415_v44  ;;  %v4683_v50 = vmax.f32 %v4539_v47, %v4591_v39  ;;  %v3958_v4 = vmax.f32 %v3862_v26, %v3910_v43  ;;  %v3863_v31 = vmax.f32 %v3767_v9, %v8372_v34  ;;  %v3724_v26 = vld [vmem:[#allocation2 + $0x100] sm:$0xf]  ;;  %4898 = vst.msk [vmem:[#allocation3 + $0x8] sm:$0xf] %vm4895_vm10, %v8434_v11 }
 0x2e7   : > { %v3864_v25 = vmax.f32 %v3768_v52, %v8379_v19  ;;  %v4396_v15 = vmax.f32 %v4252_v8, %v4305_v10  ;;  %v4053_v48 = vmax.f32 %v3957_v20, %v8426_v45  ;;  %v3769_v60 = vmax.f32 %v3673_v13, %v3721_v12 }
 0x2e8   : > { %v4162_v22 = vrot.slane %v4052_v57, 1  ;;  %v4306_v42 = vrot.slane %v4052_v57, 2  ;;  %v5904_v53 = vpack.c.bf16 %v4683_v50, %v4683_v50  ;;  %v4450_v3 = vrot.slane %v4052_v57, 3  ;;  %v3676_v50 = vld [vmem:[#allocation2 + $0xe8] sm:$0xf] }
 0x2e9   : > { %v4594_v2 = vrot.slane %v4052_v57, 4  ;;  %v4054_v61 = vmax.f32 %v3958_v4, %v4006_v59  ;;  %v4540_v17 = vmax.f32 %v4396_v15, %v4449_v40  ;;  %v4163_v35 = vrot.slane %v4053_v48, 1  ;;  %v3519_v30 = vpop.permute.xlu0 %3518 }
 0x2ea   : > { %v4307_v23 = vrot.slane %v4053_v48, 2  ;;  %v4451_v27 = vrot.slane %v4053_v48, 3  ;;  %4823 = vrot.lane.b32.xlu0 %v5904_v53, %s6476_s7  ;;  %v4595_v62 = vrot.slane %v4053_v48, 4  ;;  %3599 = vst.msk [vmem:[#allocation3 + $0x40] sm:$0xf] %vm3582_vm9, %v3519_v30  ;;  %v3959_v5 = vmax.f32 %v3863_v31, %v8415_v44 }
 0x2eb   : > { %v4165_v36 = vrot.slane %v4054_v61, 1  ;;  %v4309_v0 = vrot.slane %v4054_v61, 2  ;;  %v4453_v18 = vrot.slane %v4054_v61, 3  ;;  %v4684_v41 = vmax.f32 %v4540_v17, %v4593_v24 }
 0x2ec   : > { %v4164_v56 = vsel %vm1497_vm4, %v4162_v22, %v4163_v35  ;;  %v4308_v21 = vsel %vm1642_vm5, %v4306_v42, %v4307_v23  ;;  %v4452_v39 = vsel %vm1787_vm6, %v4450_v3, %v4451_v27  ;;  %v4596_v46 = vsel %vm1932_vm7, %v4594_v2, %v4595_v62  ;;  %v3525_v47 = vpop.permute.xlu1 %3524 }
 0x2ed   : > { %v4253_v16 = vmax.f32 %v4052_v57, %v4164_v56  ;;  %v4166_v58 = vsel %vm1497_vm4, %v4163_v35, %v4165_v36  ;;  %v4310_v7 = vsel %vm1642_vm5, %v4307_v23, %v4309_v0  ;;  %v5905_v38 = vpack.c.bf16 %v4684_v41, %v4684_v41  ;;  %v3523_v43 = vpop.permute.xlu0 %3522  ;;  %3602 = vst.msk [vmem:[#allocation3 + $0x4c] sm:$0xf] %vm3582_vm9, %v3525_v47  ;;  %v8474_v36 = vld [vmem:[#allocation2 + $0x118] sm:$0xf]  ;;  %v4009_v41 = vld [vmem:[#allocation2 + $0x130] sm:$0xf] }
 0x2ee   : > { %v4254_v14 = vmax.f32 %v4053_v48, %v4166_v58  ;;  %v4454_v9 = vsel %vm1787_vm6, %v4451_v27, %v4453_v18  ;;  %v4597_v52 = vrot.slane %v4054_v61, 4  ;;  %v3960_v6 = vmax.f32 %v3864_v25, %v8426_v45  ;;  %3601 = vst.msk [vmem:[#allocation3 + $0x48] sm:$0xf] %vm3582_vm9, %v3523_v43  ;;  %v3913_v61 = vld [vmem:[#allocation2 + $0x118] sm:$0xf] }
 0x2ef   : > { %v4397_v37 = vmax.f32 %v4253_v16, %v4308_v21  ;;  %4825 = vrot.lane.b32.xlu1 %v5905_v38, %s6476_s7  ;;  %v3770_v40 = vmax.f32 %v8220_v32, %v8372_v34  ;;  %v3771_v8 = vmax.f32 %v8232_v33, %v8379_v19  ;;  %v4055_v20 = vmax.f32 %v3959_v5, %v8449_v51  ;;  %v8478_v56 = vld [vmem:[#allocation2 + $0x138] sm:$0xff]  ;;  %v8480_v21 = vld [vmem:[#allocation2 + $0x140] sm:$0xff]  ;;  %v3916_v58 = vld [vmem:[#allocation2 + $0x130] sm:$0xf] }
 0x2f0   : > { %v4398_v63 = vmax.f32 %v4254_v14, %v4310_v7  ;;  %v4598_v10 = vsel %vm1932_vm7, %v4595_v62, %v4597_v52  ;;  %v8465_v57 = vmax.f32 %v3960_v6, %v8451_v28  ;;  %v3865_v59 = vmax.f32 %v3769_v60, %v3817_v54  ;;  %v3820_v62 = vld [vmem:[#allocation2 + $0x118] sm:$0xf] }
 0x2f1   : > { %v4541_v24 = vmax.f32 %v4397_v37, %v4452_v39  ;;  %v3866_v31 = vmax.f32 %v3770_v40, %v8415_v44  ;;  %v3867_v32 = vmax.f32 %v3771_v8, %v8426_v45  ;;  %v3772_v25 = vmax.f32 %v3676_v50, %v3724_v26 }
 0x2f2   : > { %v4542_v4 = vmax.f32 %v4398_v63, %v4454_v9  ;;  %v4167_v33 = vrot.slane %v4055_v20, 1  ;;  %v4168_v48 = vrot.slane %v8465_v57, 1  ;;  %v4311_v22 = vrot.slane %v4055_v20, 2  ;;  %v8491_v9 = vld [vmem:[#allocation2 + $0x100] sm:$0xf] }
 0x2f3   : > { %v4685_v15 = vmax.f32 %v4541_v24, %v4596_v46  ;;  %v4312_v53 = vrot.slane %v8465_v57, 2  ;;  %v4455_v3 = vrot.slane %v4055_v20, 3  ;;  %v4456_v2 = vrot.slane %v8465_v57, 3 }
 0x2f4   : > { %v4686_v42 = vmax.f32 %v4542_v4, %v4598_v10  ;;  %v4169_v35 = vsel %vm1497_vm4, %v4167_v33, %v4168_v48  ;;  %v4599_v23 = vrot.slane %v4055_v20, 4  ;;  %v4600_v27 = vrot.slane %v8465_v57, 4 }
 0x2f5   : > { %v5906_v17 = vpack.c.bf16 %v4685_v15, %v4685_v15  ;;  %v4255_v18 = vmax.f32 %v4055_v20, %v4169_v35  ;;  %v4313_v30 = vsel %vm1642_vm5, %v4311_v22, %v4312_v53  ;;  %v4457_v29 = vsel %vm1787_vm6, %v4455_v3, %v4456_v2  ;;  %v8502_v20 = vpop.permute.xlu0 %4807 }
 0x2f6   : > { %v5907_v0 = vpack.c.bf16 %v4686_v42, %v4686_v42  ;;  %v4601_v39 = vsel %vm1932_vm7, %v4599_v23, %v4600_v27  ;;  %v3961_v12 = vmax.f32 %v3865_v59, %v3913_v61  ;;  %v3962_v16 = vmax.f32 %v3866_v31, %v8449_v51  ;;  %v8515_v23 = vld [vmem:[#allocation2 + $0x150] sm:$0xff]  ;;  %4900 = vst.msk [vmem:[#allocation3 + $0x10] sm:$0xf] %vm4895_vm10, %v8502_v20 }
 0x2f7   : > { %4827 = vrot.lane.b32.xlu0 %v5906_v17, %s6476_s7  ;;  %v3963_v46 = vmax.f32 %v3867_v32, %v8451_v28  ;;  %v4399_v7 = vmax.f32 %v4255_v18, %v4313_v30  ;;  %v3868_v13 = vmax.f32 %v3772_v25, %v3820_v62  ;;  %v3773_v38 = vmax.f32 %v8372_v34, %v8415_v44  ;;  %v4012_v32 = vld [vmem:[#allocation2 + $0x148] sm:$0xf]  ;;  %v8520_v18 = vld [vmem:[#allocation2 + $0x158] sm:$0xff] }
 0x2f8   : > { %4829 = vrot.lane.b32.xlu1 %v5907_v0, %s6476_s7  ;;  %v3774_v14 = vmax.f32 %v8379_v19, %v8426_v45  ;;  %v4057_v52 = vmax.f32 %v3961_v12, %v4009_v41  ;;  %v4058_v54 = vmax.f32 %v3962_v16, %v8478_v56  ;;  %v3775_v5 = vmax.f32 %v8491_v9, %v8474_v36 }
 0x2f9   : > { %v8495_v37 = vmax.f32 %v3963_v46, %v8480_v21  ;;  %v4543_v6 = vmax.f32 %v4399_v7, %v4457_v29  ;;  %v3964_v60 = vmax.f32 %v3868_v13, %v3916_v58  ;;  %v3869_v26 = vmax.f32 %v3773_v38, %v8449_v51  ;;  %v8526_v13 = vpop.permute.xlu1 %4809 }
 0x2fa   : > { %v3870_v34 = vmax.f32 %v3774_v14, %v8451_v28  ;;  %v4170_v43 = vrot.slane %v4057_v52, 1  ;;  %v4314_v47 = vrot.slane %v4057_v52, 2  ;;  %v4458_v19 = vrot.slane %v4057_v52, 3  ;;  %4901 = vst.msk [vmem:[#allocation3 + $0x14] sm:$0xf] %vm4895_vm10, %v8526_v13 }
 0x2fb   : > { %v4602_v63 = vrot.slane %v4057_v52, 4  ;;  %v4687_v10 = vmax.f32 %v4543_v6, %v4601_v39  ;;  %v4172_v40 = vrot.slane %v4058_v54, 1  ;;  %v4173_v8 = vrot.slane %v8495_v37, 1 }
 0x2fc   : > { %v4316_v24 = vrot.slane %v4058_v54, 2  ;;  %v4171_v59 = vsel %vm1497_vm4, %v4168_v48, %v4170_v43  ;;  %v4315_v50 = vsel %vm1642_vm5, %v4312_v53, %v4314_v47  ;;  %v4459_v4 = vsel %vm1787_vm6, %v4456_v2, %v4458_v19 }
 0x2fd   : > { %v4603_v31 = vsel %vm1932_vm7, %v4600_v27, %v4602_v63  ;;  %v5908_v25 = vpack.c.bf16 %v4687_v10, %v4687_v10  ;;  %v4256_v15 = vmax.f32 %v8465_v57, %v4171_v59  ;;  %v4174_v33 = vsel %vm1497_vm4, %v4172_v40, %v4173_v8  ;;  %v3823_v10 = vld [vmem:[#allocation2 + $0x130] sm:$0xf] }
 0x2fe   : > { %v4317_v22 = vrot.slane %v8495_v37, 2  ;;  %v4257_v42 = vmax.f32 %v4058_v54, %v4174_v33  ;;  %v4460_v3 = vrot.slane %v4058_v54, 3  ;;  %v4461_v61 = vrot.slane %v8495_v37, 3  ;;  %v8523_v12 = vpop.permute.xlu0 %4811 }
 0x2ff   : > { %v4604_v17 = vrot.slane %v4058_v54, 4  ;;  %4831 = vrot.lane.b32.xlu0 %v5908_v25, %s6476_s7  ;;  %v4400_v48 = vmax.f32 %v4256_v15, %v4315_v50  ;;  %v4605_v2 = vrot.slane %v8495_v37, 4  ;;  %v4060_v35 = vmax.f32 %v3964_v60, %v4012_v32  ;;  %v3730_v50 = vld [vmem:[#allocation2 + $0x130] sm:$0xf]  ;;  %v3919_v25 = vld [vmem:[#allocation2 + $0x148] sm:$0xf] }
 0x300   : > { %v4318_v53 = vsel %vm1642_vm5, %v4316_v24, %v4317_v22  ;;  %v4462_v27 = vsel %vm1787_vm6, %v4460_v3, %v4461_v61  ;;  %v3965_v62 = vmax.f32 %v3869_v26, %v8478_v56  ;;  %v3966_v0 = vmax.f32 %v3870_v34, %v8480_v21  ;;  %4902 = vst.msk [vmem:[#allocation3 + $0x18] sm:$0xf] %vm4895_vm10, %v8523_v12 }
 0x301   : > { %v4401_v57 = vmax.f32 %v4257_v42, %v4318_v53  ;;  %v4544_v30 = vmax.f32 %v4400_v48, %v4459_v4  ;;  %v4606_v29 = vsel %vm1932_vm7, %v4604_v17, %v4605_v2  ;;  %v4175_v41 = vrot.slane %v4060_v35, 1  ;;  %v4015_v53 = vld [vmem:[#allocation2 + $0x160] sm:$0xf] }
 0x302   : > { %v4319_v39 = vrot.slane %v4060_v35, 2  ;;  %v4463_v46 = vrot.slane %v4060_v35, 3  ;;  %v4607_v58 = vrot.slane %v4060_v35, 4  ;;  %v4061_v7 = vmax.f32 %v3965_v62, %v8515_v23 }
 0x303   : > { %v4545_v16 = vmax.f32 %v4401_v57, %v4462_v27  ;;  %v4688_v38 = vmax.f32 %v4544_v30, %v4603_v31  ;;  %v4176_v14 = vsel %vm1497_vm4, %v4173_v8, %v4175_v41  ;;  %v8531_v54 = vmax.f32 %v3966_v0, %v8520_v18  ;;  %v3682_v57 = vld [vmem:[#allocation2 + $0x118] sm:$0xf]  ;;  %v3826_v27 = vld [vmem:[#allocation2 + $0x148] sm:$0xf] }
 0x304   : > { %v4320_v52 = vsel %vm1642_vm5, %v4317_v22, %v4319_v39  ;;  %v4258_v60 = vmax.f32 %v8495_v37, %v4176_v14  ;;  %v4464_v26 = vsel %vm1787_vm6, %v4461_v61, %v4463_v46  ;;  %v4608_v34 = vsel %vm1932_vm7, %v4605_v2, %v4607_v58  ;;  %v8547_v61 = vpop.permute.xlu1 %4813  ;;  %v8564_v46 = vld [vmem:[#allocation2 + $0x170] sm:$0xff] }
 0x305   : > { %v4689_v6 = vmax.f32 %v4545_v16, %v4606_v29  ;;  %v5909_v43 = vpack.c.bf16 %v4688_v38, %v4688_v38  ;;  %v4177_v47 = vrot.slane %v4061_v7, 1  ;;  %v4178_v19 = vrot.slane %v8531_v54, 1  ;;  %4903 = vst.msk [vmem:[#allocation3 + $0x1c] sm:$0xf] %vm4895_vm10, %v8547_v61 }
 0x306   : > { %v4321_v63 = vrot.slane %v4061_v7, 2  ;;  %v4402_v8 = vmax.f32 %v4258_v60, %v4320_v52  ;;  %v4322_v24 = vrot.slane %v8531_v54, 2  ;;  %v4465_v59 = vrot.slane %v4061_v7, 3 }
 0x307   : > { %v5910_v40 = vpack.c.bf16 %v4689_v6, %v4689_v6  ;;  %4833 = vrot.lane.b32.xlu1 %v5909_v43, %s6476_s7  ;;  %v4179_v37 = vsel %vm1497_vm4, %v4177_v47, %v4178_v19  ;;  %v4466_v4 = vrot.slane %v8531_v54, 3  ;;  %v4609_v31 = vrot.slane %v4061_v7, 4  ;;  %v3527_v15 = vpop.permute.xlu0 %3526 }
 0x308   : > { %v4610_v32 = vrot.slane %v8531_v54, 4  ;;  %v4546_v33 = vmax.f32 %v4402_v8, %v4464_v26  ;;  %v4259_v22 = vmax.f32 %v4061_v7, %v4179_v37  ;;  %v4323_v42 = vsel %vm1642_vm5, %v4321_v63, %v4322_v24  ;;  %3603 = vst.msk [vmem:[#allocation3 + $0x50] sm:$0xf] %vm3582_vm9, %v3527_v15  ;;  %v3922_v7 = vld [vmem:[#allocation2 + $0x160] sm:$0xf] }
 0x309   : > { %4835 = vrot.lane.b32.xlu0 %v5910_v40, %s6476_s7  ;;  %v3871_v3 = vmax.f32 %v3775_v5, %v3823_v10  ;;  %v4467_v17 = vsel %vm1787_vm6, %v4465_v59, %v4466_v4  ;;  %v3776_v2 = vmax.f32 %v8415_v44, %v8449_v51  ;;  %v3777_v35 = vmax.f32 %v8426_v45, %v8451_v28  ;;  %v8562_v45 = vld [vmem:[#allocation2 + $0x168] sm:$0xff] }
 0x30a   : > { %v4611_v48 = vsel %vm1932_vm7, %v4609_v31, %v4610_v32  ;;  %v4690_v62 = vmax.f32 %v4546_v33, %v4608_v34  ;;  %v4403_v36 = vmax.f32 %v4259_v22, %v4323_v42  ;;  %v3778_v5 = vmax.f32 %v3682_v57, %v3730_v50  ;;  %v4018_v33 = vld [vmem:[#allocation2 + $0x178] sm:$0xf]  ;;  %v8583_v57 = vld [vmem:[#allocation2 + $0x180] sm:$0xff] }
 0x30b   : > { %v3967_v9 = vmax.f32 %v3871_v3, %v3919_v25  ;;  %v3872_v0 = vmax.f32 %v3776_v2, %v8478_v56  ;;  %v3873_v30 = vmax.f32 %v3777_v35, %v8480_v21  ;;  %v3779_v29 = vmax.f32 %v8449_v51, %v8478_v56 }
 0x30c   : > { %v3780_v41 = vmax.f32 %v8451_v28, %v8480_v21  ;;  %v5911_v44 = vpack.c.bf16 %v4690_v62, %v4690_v62  ;;  %v4547_v39 = vmax.f32 %v4403_v36, %v4467_v17  ;;  %v3874_v58 = vmax.f32 %v3778_v5, %v3826_v27  ;;  %v8585_v27 = vld [vmem:[#allocation2 + $0x188] sm:$0xff] }
 0x30d   : > { %v4063_v16 = vmax.f32 %v3967_v9, %v4015_v53  ;;  %v3968_v38 = vmax.f32 %v3872_v0, %v8515_v23  ;;  %v3969_v14 = vmax.f32 %v3873_v30, %v8520_v18  ;;  %v3875_v52 = vmax.f32 %v3779_v29, %v8515_v23 }
 0x30e   : > { %v3876_v51 = vmax.f32 %v3780_v41, %v8520_v18  ;;  %4837 = vrot.lane.b32.xlu1 %v5911_v44, %s6476_s7  ;;  %v4691_v28 = vmax.f32 %v4547_v39, %v4611_v48  ;;  %v3529_v34 = vpop.permute.xlu1 %3528  ;;  %v3970_v10 = vmax.f32 %v3874_v58, %v3922_v7 }
 0x30f   : > { %v4180_v6 = vrot.slane %v4063_v16, 1  ;;  %v4324_v60 = vrot.slane %v4063_v16, 2  ;;  %v4468_v26 = vrot.slane %v4063_v16, 3  ;;  %v4612_v43 = vrot.slane %v4063_v16, 4  ;;  %3604 = vst.msk [vmem:[#allocation3 + $0x54] sm:$0xf] %vm3582_vm9, %v3529_v34 }
 0x310   : > { %v4064_v47 = vmax.f32 %v3968_v38, %v8562_v45  ;;  %v4065_v63 = vmax.f32 %v3969_v14, %v8564_v46  ;;  %v5912_v40 = vpack.c.bf16 %v4691_v28, %v4691_v28  ;;  %v4066_v35 = vmax.f32 %v3970_v10, %v4018_v33 }
 0x311   : > { %v4181_v8 = vsel %vm1497_vm4, %v4178_v19, %v4180_v6  ;;  %v4325_v59 = vsel %vm1642_vm5, %v4322_v24, %v4324_v60  ;;  %v4469_v50 = vsel %vm1787_vm6, %v4466_v4, %v4468_v26  ;;  %v4613_v31 = vsel %vm1932_vm7, %v4610_v32, %v4612_v43 }
 0x312   : > { %v4260_v37 = vmax.f32 %v8531_v54, %v4181_v8  ;;  %v4182_v25 = vrot.slane %v4064_v47, 1  ;;  %v4183_v15 = vrot.slane %v4065_v63, 1  ;;  %4839 = vrot.lane.b32.xlu0 %v5912_v40, %s6476_s7  ;;  %v4326_v22 = vrot.slane %v4064_v47, 2  ;;  %v3733_v40 = vld [vmem:[#allocation2 + $0x148] sm:$0xf] }
 0x313   : > { %v4327_v42 = vrot.slane %v4065_v63, 2  ;;  %v4470_v3 = vrot.slane %v4064_v47, 3  ;;  %v4471_v17 = vrot.slane %v4065_v63, 3  ;;  %v4614_v53 = vrot.slane %v4064_v47, 4  ;;  %v3531_v2 = vpop.permute.xlu0 %3530 }
 0x314   : > { %v4404_v48 = vmax.f32 %v4260_v37, %v4325_v59  ;;  %v4184_v19 = vsel %vm1497_vm4, %v4182_v25, %v4183_v15  ;;  %v4615_v24 = vrot.slane %v4065_v63, 4  ;;  %3605 = vst.msk [vmem:[#allocation3 + $0x58] sm:$0xf] %vm3582_vm9, %v3531_v2  ;;  %v3971_v9 = vmax.f32 %v3875_v52, %v8562_v45  ;;  %v3832_v2 = vld [vmem:[#allocation2 + $0x178] sm:$0xf] }
 0x315   : > { %v4261_v4 = vmax.f32 %v4064_v47, %v4184_v19  ;;  %v4328_v54 = vsel %vm1642_vm5, %v4326_v22, %v4327_v42  ;;  %v4472_v32 = vsel %vm1787_vm6, %v4470_v3, %v4471_v17  ;;  %v3972_v5 = vmax.f32 %v3876_v51, %v8564_v46  ;;  %v3685_v22 = vld [vmem:[#allocation2 + $0x130] sm:$0xf] }
 0x316   : > { %v4548_v62 = vmax.f32 %v4404_v48, %v4469_v50  ;;  %v4616_v36 = vsel %vm1932_vm7, %v4614_v53, %v4615_v24  ;;  %v4185_v30 = vrot.slane %v4066_v35, 1  ;;  %v4329_v29 = vrot.slane %v4066_v35, 2  ;;  %v3533_v44 = vpop.permute.xlu1 %3532 }
 0x317   : > { %v4405_v0 = vmax.f32 %v4261_v4, %v4328_v54  ;;  %v4473_v41 = vrot.slane %v4066_v35, 3  ;;  %v4617_v16 = vrot.slane %v4066_v35, 4  ;;  %v4067_v58 = vmax.f32 %v3971_v9, %v8583_v57  ;;  %3606 = vst.msk [vmem:[#allocation3 + $0x5c] sm:$0xf] %vm3582_vm9, %v3533_v44  ;;  %v3925_v54 = vld [vmem:[#allocation2 + $0x178] sm:$0xf] }
 0x318   : > { %v4692_v39 = vmax.f32 %v4548_v62, %v4613_v31  ;;  %v8593_v7 = vmax.f32 %v3972_v5, %v8585_v27  ;;  %v4186_v14 = vsel %vm1497_vm4, %v4183_v15, %v4185_v30  ;;  %v4330_v52 = vsel %vm1642_vm5, %v4327_v42, %v4329_v29  ;;  %v3736_v31 = vld [vmem:[#allocation2 + $0x160] sm:$0xf]  ;;  %v4021_v29 = vld [vmem:[#allocation2 + $0x190] sm:$0xf] }
 0x319   : > { %v4549_v38 = vmax.f32 %v4405_v0, %v4472_v32  ;;  %v4474_v51 = vsel %vm1787_vm6, %v4471_v17, %v4473_v41  ;;  %v4262_v6 = vmax.f32 %v4065_v63, %v4186_v14  ;;  %v4618_v60 = vsel %vm1932_vm7, %v4615_v24, %v4617_v16  ;;  %v3829_v42 = vld [vmem:[#allocation2 + $0x160] sm:$0xf]  ;;  %v3688_v24 = vld [vmem:[#allocation2 + $0x148] sm:$0xf]  ;;  %v3928_v0 = vld [vmem:[#allocation2 + $0x190] sm:$0xf] }
 0x31a   : > { %v5913_v28 = vpack.c.bf16 %v4692_v39, %v4692_v39  ;;  %v4187_v26 = vrot.slane %v4067_v58, 1  ;;  %v4188_v43 = vrot.slane %v8593_v7, 1  ;;  %v4331_v47 = vrot.slane %v4067_v58, 2  ;;  %v8627_v39 = vld [vmem:[#allocation2 + $0x198] sm:$0xff]  ;;  %v8631_v14 = vld [vmem:[#allocation2 + $0x1a0] sm:$0xff] }
 0x31b   : > { %v4693_v34 = vmax.f32 %v4549_v38, %v4616_v36  ;;  %v4332_v10 = vrot.slane %v8593_v7, 2  ;;  %v4406_v8 = vmax.f32 %v4262_v6, %v4330_v52  ;;  %v4475_v59 = vrot.slane %v4067_v58, 3  ;;  %v4024_v52 = vld [vmem:[#allocation2 + $0x1a8] sm:$0xf] }
 0x31c   : > { %4841 = vrot.lane.b32.xlu1 %v5913_v28, %s6476_s7  ;;  %v4476_v50 = vrot.slane %v8593_v7, 3  ;;  %v4619_v37 = vrot.slane %v4067_v58, 4  ;;  %v4189_v63 = vsel %vm1497_vm4, %v4187_v26, %v4188_v43  ;;  %v4620_v33 = vrot.slane %v8593_v7, 4  ;;  %v3535_v3 = vpop.permute.xlu0 %3534 }
 0x31d   : > { %v5914_v25 = vpack.c.bf16 %v4693_v34, %v4693_v34  ;;  %v4333_v15 = vsel %vm1642_vm5, %v4331_v47, %v4332_v10  ;;  %v4550_v17 = vmax.f32 %v4406_v8, %v4474_v51  ;;  %v4263_v48 = vmax.f32 %v4067_v58, %v4189_v63  ;;  %3607 = vst.msk [vmem:[#allocation3 + $0x60] sm:$0xf] %vm3582_vm9, %v3535_v3 }
 0x31e   : > { %v4477_v19 = vsel %vm1787_vm6, %v4475_v59, %v4476_v50  ;;  %v3781_v53 = vmax.f32 %v3685_v22, %v3733_v40  ;;  %v4621_v4 = vsel %vm1932_vm7, %v4619_v37, %v4620_v33  ;;  %v3782_v32 = vmax.f32 %v8478_v56, %v8515_v23  ;;  %v3691_v40 = vld [vmem:[#allocation2 + $0x160] sm:$0xf] }
 0x31f   : > { %4843 = vrot.lane.b32.xlu0 %v5914_v25, %s6476_s7  ;;  %v3783_v35 = vmax.f32 %v8480_v21, %v8520_v18  ;;  %v3784_v62 = vmax.f32 %v3688_v24, %v3736_v31  ;;  %v4694_v36 = vmax.f32 %v4550_v17, %v4618_v60  ;;  %v4407_v9 = vmax.f32 %v4263_v48, %v4333_v15 }
 0x320   : > { %v3877_v5 = vmax.f32 %v3781_v53, %v3829_v42  ;;  %v3785_v30 = vmax.f32 %v8515_v23, %v8562_v45  ;;  %v3878_v41 = vmax.f32 %v3782_v32, %v8562_v45  ;;  %v3786_v56 = vmax.f32 %v8520_v18, %v8564_v46  ;;  %v3739_v23 = vld [vmem:[#allocation2 + $0x178] sm:$0xf] }
 0x321   : > { %v3879_v44 = vmax.f32 %v3783_v35, %v8564_v46  ;;  %v3880_v16 = vmax.f32 %v3784_v62, %v3832_v2  ;;  %v5915_v21 = vpack.c.bf16 %v4694_v36, %v4694_v36  ;;  %v4551_v58 = vmax.f32 %v4407_v9, %v4477_v19 }
 0x322   : > { %v3973_v38 = vmax.f32 %v3877_v5, %v3925_v54  ;;  %v3881_v51 = vmax.f32 %v3785_v30, %v8583_v57  ;;  %v3974_v28 = vmax.f32 %v3878_v41, %v8583_v57  ;;  %v3882_v26 = vmax.f32 %v3786_v56, %v8585_v27  ;;  %v8671_v56 = vld [vmem:[#allocation2 + $0x1b0] sm:$0xff] }
 0x323   : > { %v3975_v6 = vmax.f32 %v3879_v44, %v8585_v27  ;;  %v3976_v60 = vmax.f32 %v3880_v16, %v3928_v0  ;;  %4845 = vrot.lane.b32.xlu1 %v5915_v21, %s6476_s7  ;;  %v4695_v34 = vmax.f32 %v4551_v58, %v4621_v4  ;;  %v3537_v8 = vpop.permute.xlu1 %3536  ;;  %v3787_v25 = vmax.f32 %v3691_v40, %v3739_v23  ;;  %v8673_v21 = vld [vmem:[#allocation2 + $0x1b8] sm:$0xff]  ;;  %v3835_v58 = vld [vmem:[#allocation2 + $0x190] sm:$0xf] }
 0x324   : > { %v4069_v18 = vmax.f32 %v3973_v38, %v4021_v29  ;;  %v3977_v47 = vmax.f32 %v3881_v51, %v8627_v39  ;;  %v4070_v59 = vmax.f32 %v3974_v28, %v8627_v39  ;;  %3608 = vst.msk [vmem:[#allocation3 + $0x64] sm:$0xf] %vm3582_vm9, %v3537_v8  ;;  %v3978_v19 = vmax.f32 %v3882_v26, %v8631_v14 }
 0x325   : > { %v8641_v37 = vmax.f32 %v3975_v6, %v8631_v14  ;;  %v8643_v31 = vmax.f32 %v3976_v60, %v4024_v52  ;;  %v5916_v63 = vpack.c.bf16 %v4695_v34, %v4695_v34  ;;  %v3883_v40 = vmax.f32 %v3787_v25, %v3835_v58  ;;  %v3838_v58 = vld [vmem:[#allocation2 + $0x1a8] sm:$0xf] }
 0x326   : > { %v4190_v15 = vrot.slane %v4069_v18, 1  ;;  %v4334_v22 = vrot.slane %v4069_v18, 2  ;;  %v4478_v42 = vrot.slane %v4069_v18, 3  ;;  %v4192_v3 = vrot.slane %v4070_v59, 1 }
 0x327   : > { %v4193_v17 = vrot.slane %v8641_v37, 1  ;;  %v4336_v48 = vrot.slane %v4070_v59, 2  ;;  %4847 = vrot.lane.b32.xlu0 %v5916_v63, %s6476_s7  ;;  %v4622_v2 = vrot.slane %v4069_v18, 4  ;;  %v4337_v4 = vrot.slane %v8641_v37, 2 }
 0x328   : > { %v4191_v53 = vsel %vm1497_vm4, %v4188_v43, %v4190_v15  ;;  %v4335_v24 = vsel %vm1642_vm5, %v4332_v10, %v4334_v22  ;;  %v4479_v32 = vsel %vm1787_vm6, %v4476_v50, %v4478_v42  ;;  %v4480_v62 = vrot.slane %v4070_v59, 3  ;;  %v8675_v38 = vpop.permute.xlu0 %4815 }
 0x329   : > { %v4264_v54 = vmax.f32 %v8593_v7, %v4191_v53  ;;  %v4194_v35 = vsel %vm1497_vm4, %v4192_v3, %v4193_v17  ;;  %v4338_v9 = vsel %vm1642_vm5, %v4336_v48, %v4337_v4  ;;  %v4481_v43 = vrot.slane %v8641_v37, 3  ;;  %v3931_v3 = vld [vmem:[#allocation2 + $0x1a8] sm:$0xf]  ;;  %v3742_v53 = vld [vmem:[#allocation2 + $0x190] sm:$0xf] }
 0x32a   : > { %v4265_v36 = vmax.f32 %v4070_v59, %v4194_v35  ;;  %v4624_v5 = vrot.slane %v4070_v59, 4  ;;  %v4625_v10 = vrot.slane %v8641_v37, 4  ;;  %v4195_v30 = vrot.slane %v8643_v31, 1  ;;  %4904 = vst.msk [vmem:[#allocation3 + $0x20] sm:$0xf] %vm4895_vm10, %v8675_v38 }
 0x32b   : > { %v4408_v0 = vmax.f32 %v4264_v54, %v4335_v24  ;;  %v4339_v29 = vrot.slane %v8643_v31, 2  ;;  %v4623_v50 = vsel %vm1932_vm7, %v4620_v33, %v4622_v2  ;;  %v4482_v44 = vsel %vm1787_vm6, %v4480_v62, %v4481_v43  ;;  %v4818_v24 = vpop.permute.xlu1 %4817 }
 0x32c   : > { %v4409_v41 = vmax.f32 %v4265_v36, %v4338_v9  ;;  %v4483_v16 = vrot.slane %v8643_v31, 3  ;;  %v4626_v51 = vsel %vm1932_vm7, %v4624_v5, %v4625_v10  ;;  %v4196_v23 = vsel %vm1497_vm4, %v4193_v17, %v4195_v30  ;;  %v4028_v30 = vld [vmem:[#allocation2 + $0x1c8] sm:$0xff]  ;;  %4905 = vst.msk [vmem:[#allocation3 + $0x24] sm:$0xf] %vm4895_vm10, %v4818_v24 }
 0x32d   : > { %v4552_v52 = vmax.f32 %v4408_v0, %v4479_v32  ;;  %v4627_v7 = vrot.slane %v8643_v31, 4  ;;  %v4266_v28 = vmax.f32 %v8641_v37, %v4196_v23  ;;  %v4340_v6 = vsel %vm1642_vm5, %v4337_v4, %v4339_v29  ;;  %v4029_v29 = vld [vmem:[#allocation2 + $0x1d0] sm:$0xff]  ;;  %v3934_v23 = vld [vmem:[#allocation2 + $0x1c0] sm:$0xf] }
 0x32e   : > { %v4553_v33 = vmax.f32 %v4409_v41, %v4482_v44  ;;  %v4484_v60 = vsel %vm1787_vm6, %v4481_v43, %v4483_v16  ;;  %v4073_v34 = vmax.f32 %v3977_v47, %v8671_v56  ;;  %v8685_v18 = vmax.f32 %v3978_v19, %v8673_v21  ;;  %v3694_v43 = vld [vmem:[#allocation2 + $0x178] sm:$0xf] }
 0x32f   : > { %v4696_v26 = vmax.f32 %v4552_v52, %v4623_v50  ;;  %v4410_v59 = vmax.f32 %v4266_v28, %v4340_v6  ;;  %v3788_v63 = vmax.f32 %v8562_v45, %v8583_v57  ;;  %v3789_v31 = vmax.f32 %v8564_v46, %v8585_v27  ;;  %v4027_v27 = vld [vmem:[#allocation2 + $0x1c0] sm:$0xf] }
 0x330   : > { %v4697_v8 = vmax.f32 %v4553_v33, %v4626_v51  ;;  %v4197_v15 = vrot.slane %v4073_v34, 1  ;;  %v4198_v22 = vrot.slane %v8685_v18, 1  ;;  %v4341_v42 = vrot.slane %v4073_v34, 2 }
 0x331   : > { %v5917_v37 = vpack.c.bf16 %v4696_v26, %v4696_v26  ;;  %v4554_v47 = vmax.f32 %v4410_v59, %v4484_v60  ;;  %v4342_v48 = vrot.slane %v8685_v18, 2  ;;  %v3539_v19 = vpop.permute.xlu0 %3538  ;;  %v4628_v25 = vsel %vm1932_vm7, %v4625_v10, %v4627_v7 }
 0x332   : > { %v5918_v17 = vpack.c.bf16 %v4697_v8, %v4697_v8  ;;  %v4199_v45 = vsel %vm1497_vm4, %v4197_v15, %v4198_v22  ;;  %v4485_v57 = vrot.slane %v4073_v34, 3  ;;  %v4486_v46 = vrot.slane %v8685_v18, 3  ;;  %3609 = vst.msk [vmem:[#allocation3 + $0x68] sm:$0xf] %vm3582_vm9, %v3539_v19  ;;  %v4030_v8 = vld [vmem:[#allocation2 + $0x1d8] sm:$0xf] }
 0x333   : > { %4849 = vrot.lane.b32.xlu1 %v5917_v37, %s6476_s7  ;;  %v4698_v2 = vmax.f32 %v4554_v47, %v4628_v25  ;;  %v4267_v4 = vmax.f32 %v4073_v34, %v4199_v45  ;;  %v4629_v54 = vrot.slane %v4073_v34, 4  ;;  %v3979_v32 = vmax.f32 %v3883_v40, %v3931_v3  ;;  %v6103_v25 = vld [vmem:[#allocation3 + $0x8] sm:$0xff]  }
 0x334   : > { %4851 = vrot.lane.b32.xlu0 %v5918_v17, %s6476_s7  ;;  %v4343_v35 = vsel %vm1642_vm5, %v4341_v42, %v4342_v48  ;;  %v4630_v62 = vrot.slane %v8685_v18, 4  ;;  %v3884_v36 = vmax.f32 %v3788_v63, %v8627_v39  ;;  %v3885_v9 = vmax.f32 %v3789_v31, %v8631_v14  ;;  %v6102_v17 = vld [vmem:[#allocation3] sm:$0xff]  }
 0x335   : > { %v5919_v5 = vpack.c.bf16 %v4698_v2, %v4698_v2  ;;  %v4411_v0 = vmax.f32 %v4267_v4, %v4343_v35  ;;  %v4075_v10 = vmax.f32 %v3979_v32, %v4027_v27  ;;  %v3790_v50 = vmax.f32 %v3694_v43, %v3742_v53  ;;  %5998 = vmatprep.mubr.msk.bf16.mxu1 %vm5063_vm11, %v6102_v17  ;;  %v8809_v17 = vld [vmem:[%s9069_s4] ss:$0 sm:$0xff] }
 0x336   : > { %v4487_v41 = vsel %vm1787_vm6, %v4485_v57, %v4486_v46  ;;  %v3980_v44 = vmax.f32 %v3884_v36, %v8671_v56  ;;  %v3981_v16 = vmax.f32 %v3885_v9, %v8673_v21  ;;  %v4631_v1 = vsel %vm1932_vm7, %v4629_v54, %v4630_v62  ;;  %5999 = vmatmul.mubr.msk.bf16.vlgmr.msra.gmra.mxu1 %vm5063_vm11, %v6103_v25 }
 0x337   : > { %4853 = vrot.lane.b32.xlu1 %v5919_v5, %s6476_s7  ;;  %v4555_v39 = vmax.f32 %v4411_v0, %v4487_v41  ;;  %v4200_v14 = vrot.slane %v4075_v10, 1  ;;  %v4344_v52 = vrot.slane %v4075_v10, 2  ;;  %v4488_v13 = vrot.slane %v4075_v10, 3  ;;  %v6105_v5 = vld [vmem:[#allocation3 + $0x18] sm:$0xff]  }
 0x338   : > { %v4076_v55 = vmax.f32 %v3980_v44, %v4028_v30  ;;  %v8733_v11 = vmax.f32 %v3981_v16, %v4029_v29  ;;  %v3541_v49 = vpop.permute.xlu1 %3540  ;;  %v3886_v56 = vmax.f32 %v3790_v50, %v3838_v58  ;;  %v4632_v21 = vrot.slane %v4075_v10, 4  ;;  %v6106_v30 = vld [vmem:[#allocation3 + $0x20] sm:$0xff]  }
 0x339   : > { %v4699_v20 = vmax.f32 %v4555_v39, %v4631_v1  ;;  %v4201_v12 = vsel %vm1497_vm4, %v4198_v22, %v4200_v14  ;;  %3610 = vst.msk [vmem:[#allocation3 + $0x6c] sm:$0xf] %vm3582_vm9, %v3541_v49  ;;  %v4345_v33 = vsel %vm1642_vm5, %v4342_v48, %v4344_v52  ;;  %v4489_v59 = vsel %vm1787_vm6, %v4486_v46, %v4488_v13  ;;  %v6104_v46 = vld [vmem:[#allocation3 + $0x10] sm:$0xff]  }
 0x33a   : > { %v4268_v61 = vmax.f32 %v8685_v18, %v4201_v12  ;;  %v4202_v38 = vrot.slane %v4076_v55, 1  ;;  %v4203_v51 = vrot.slane %v8733_v11, 1  ;;  %v4346_v28 = vrot.slane %v4076_v55, 2  ;;  %6002 = vmatprep.mubr.msk.bf16.mxu1 %vm5063_vm11, %v6104_v46 }
 0x33b   : > { %v5920_v7 = vpack.c.bf16 %v4699_v20, %v4699_v20  ;;  %v4347_v6 = vrot.slane %v8733_v11, 2  ;;  %v4490_v34 = vrot.slane %v4076_v55, 3  ;;  %v4491_v40 = vrot.slane %v8733_v11, 3 }
 0x33c   : > { %v4412_v60 = vmax.f32 %v4268_v61, %v4345_v33  ;;  %v4204_v26 = vsel %vm1497_vm4, %v4202_v38, %v4203_v51  ;;  %v4634_v31 = vrot.slane %v4076_v55, 4  ;;  %v3982_v37 = vmax.f32 %v3886_v56, %v3934_v23 }
 0x33d   : > { %4855 = vrot.lane.b32.xlu0 %v5920_v7, %s6476_s7  ;;  %v4269_v63 = vmax.f32 %v4076_v55, %v4204_v26  ;;  %v4820_v15 = vpop.permute.xlu0 %4819  ;;  %v4348_v42 = vsel %vm1642_vm5, %v4346_v28, %v4347_v6  ;;  %v4635_v3 = vrot.slane %v8733_v11, 4  ;;  %v4633_v47 = vsel %vm1932_vm7, %v4630_v62, %v4632_v21 }
 0x33e   : > { %v4556_v22 = vmax.f32 %v4412_v60, %v4489_v59  ;;  %4906 = vst.msk [vmem:[#allocation3 + $0x28] sm:$0xf] %vm4895_vm10, %v4820_v15  ;;  %v4078_v19 = vmax.f32 %v3982_v37, %v4030_v8  ;;  %v4492_v57 = vsel %vm1787_vm6, %v4490_v34, %v4491_v40  ;;  %6003 = vmatmul.mubr.msk.bf16.gmra.mxu1 %vm5063_vm11, %v6105_v5 }
 0x33f   : > { %v4413_v48 = vmax.f32 %v4269_v63, %v4348_v42  ;;  %v4636_v4 = vsel %vm1932_vm7, %v4634_v31, %v4635_v3  ;;  %6006 = vmatprep.mubr.msk.bf16.mxu1 %vm5063_vm11, %v6106_v30 }
 0x340   : > { %v4700_v45 = vmax.f32 %v4556_v22, %v4633_v47  ;;  %v4822_v27 = vpop.permute.xlu1 %4821  ;;  %v4205_v24 = vrot.slane %v4078_v19, 1  ;;  %v4349_v2 = vrot.slane %v4078_v19, 2  ;;  %v4493_v35 = vrot.slane %v4078_v19, 3 }
 0x341   : > { %v4557_v53 = vmax.f32 %v4413_v48, %v4492_v57  ;;  %4907 = vst.msk [vmem:[#allocation3 + $0x2c] sm:$0xf] %vm4895_vm10, %v4822_v27  ;;  %v4637_v43 = vrot.slane %v4078_v19, 4 }
 0x342   : > { %v5921_v18 = vpack.c.bf16 %v4700_v45, %v4700_v45  ;;  %v4206_v32 = vsel %vm1497_vm4, %v4203_v51, %v4205_v24  ;;  %v4350_v9 = vsel %vm1642_vm5, %v4347_v6, %v4349_v2  ;;  %v4494_v29 = vsel %vm1787_vm6, %v4491_v40, %v4493_v35 }
 0x343   : > { %v4701_v54 = vmax.f32 %v4557_v53, %v4636_v4  ;;  %v4270_v62 = vmax.f32 %v8733_v11, %v4206_v32  ;;  %v4638_v41 = vsel %vm1932_vm7, %v4635_v3, %v4637_v43 }
 0x344   : > { %4857 = vrot.lane.b32.xlu1 %v5921_v18, %s6476_s7 }
 0x345   : > { %v5922_v36 = vpack.c.bf16 %v4701_v54, %v4701_v54  ;;  %v4414_v0 = vmax.f32 %v4270_v62, %v4350_v9 }
 0x346   : > { %v3543_v10 = vpop.permute.xlu0 %3542 }
 0x347   : > { %4859 = vrot.lane.b32.xlu0 %v5922_v36, %s6476_s7  ;;  %3611 = vst.msk [vmem:[#allocation3 + $0x70] sm:$0xf] %vm3582_vm9, %v3543_v10  ;;  %v4558_v50 = vmax.f32 %v4414_v0, %v4494_v29 }
 0x348   : > { %v6107_v39 = vld [vmem:[#allocation3 + $0x28] sm:$0xff]  }
 0x349   : > { %v4702_v44 = vmax.f32 %v4558_v50, %v4638_v41  ;;  %6007 = vmatmul.mubr.msk.bf16.gmra.mxu1 %vm5063_vm11, %v6107_v39 }
 0x34b   : > { %v5923_v16 = vpack.c.bf16 %v4702_v44, %v4702_v44 }
 0x34d   : > { %v3545_v58 = vpop.permute.xlu1 %3544  ;;  %4861 = vrot.lane.b32.xlu1 %v5923_v16, %s6476_s7  ;;  %s6404_s7 = scalar_lea.vmem %s9019_s14, 4096 }
 0x34e   : > { %3612 = vst.msk [vmem:[#allocation3 + $0x74] sm:$0xf] %vm3582_vm9, %v3545_v58  ;;  %p6405_p11 = scmp.ne.s32.totalorder %s9019_s14, %s6404_s7  ;;  %p6412_p7 = scmp.lt.s32.totalorder %s6410_s11, %s6404_s7 }
 0x350   : > { %p6406_p13 = pnand %p6405_p11, %p9079_p12  ;;  %p6413_p8 = por %p6412_p7, %p6411_p5 }
 0x352   : > { %v3547_v14 = vpop.permute.xlu0 %3546  ;;  %p6407_p4 = pneg %p6406_p13 }
 0x353   : > { %3613 = vst.msk [vmem:[#allocation3 + $0x78] sm:$0xf] %vm3582_vm9, %v3547_v14 }
 0x354   : > { %v3549_v52 = vpop.permute.xlu1 %3548  ;;  %p6414_p10 = pnand %p6413_p8, %p6407_p4 }
 0x355   : > { %3614 = vst.msk [vmem:[#allocation3 + $0x7c] sm:$0xf] %vm3582_vm9, %v3549_v52 }
 0x35c   : > { %v4824_v1 = vpop.permute.xlu0 %4823 }
 0x35d   : > { %4908 = vst.msk [vmem:[#allocation3 + $0x30] sm:$0xf] %vm4895_vm10, %v4824_v1 }
 0x361   : > { %v4826_v55 = vpop.permute.xlu1 %4825 }
 0x362   : > { %4909 = vst.msk [vmem:[#allocation3 + $0x34] sm:$0xf] %vm4895_vm10, %v4826_v55 }
 0x369   : > { %v4828_v11 = vpop.permute.xlu0 %4827  ;;  %v6108_v20 = vld [vmem:[#allocation3 + $0x30] sm:$0xff]  }
 0x36a   : > { %4910 = vst.msk [vmem:[#allocation3 + $0x38] sm:$0xf] %vm4895_vm10, %v4828_v11  ;;  %v4830_v49 = vpop.permute.xlu1 %4829  ;;  %6010 = vmatprep.mubr.msk.bf16.mxu1 %vm5063_vm11, %v6108_v20 }
 0x36b   : > { %4911 = vst.msk [vmem:[#allocation3 + $0x3c] sm:$0xf] %vm4895_vm10, %v4830_v49 }
 0x371   : > { %v4832_v12 = vpop.permute.xlu0 %4831 }
 0x372   : > { %v6109_v13 = vld [vmem:[#allocation3 + $0x38] sm:$0xff]   ;;  %4912 = vst.msk [vmem:[#allocation3 + $0x40] sm:$0xf] %vm4895_vm10, %v4832_v12 }
 0x373   : > { %6011 = vmatmul.mubr.msk.bf16.gmra.mxu1 %vm5063_vm11, %v6109_v13 }
 0x379   : > { %v4834_v56 = vpop.permute.xlu1 %4833 }
 0x37a   : > { %4913 = vst.msk [vmem:[#allocation3 + $0x44] sm:$0xf] %vm4895_vm10, %v4834_v56 }
 0x37b   : > { %v4836_v61 = vpop.permute.xlu0 %4835 }
 0x37c   : > { %4914 = vst.msk [vmem:[#allocation3 + $0x48] sm:$0xf] %vm4895_vm10, %v4836_v61 }
 0x380   : > { %v4838_v21 = vpop.permute.xlu1 %4837 }
 0x381   : > { %4915 = vst.msk [vmem:[#allocation3 + $0x4c] sm:$0xf] %vm4895_vm10, %v4838_v21  ;;  %v6110_v38 = vld [vmem:[#allocation3 + $0x40] sm:$0xff]  }
 0x382   : > { %6014 = vmatprep.mubr.msk.bf16.mxu1 %vm5063_vm11, %v6110_v38 }
 0x384   : > { %v4840_v51 = vpop.permute.xlu0 %4839 }
 0x385   : > { %4916 = vst.msk [vmem:[#allocation3 + $0x50] sm:$0xf] %vm4895_vm10, %v4840_v51 }
 0x388   : > { %v6111_v23 = vld [vmem:[#allocation3 + $0x48] sm:$0xff]  }
 0x389   : > { %6015 = vmatmul.mubr.msk.bf16.gmra.mxu1 %vm5063_vm11, %v6111_v23 }
 0x38e   : > { %v4842_v7 = vpop.permute.xlu1 %4841 }
 0x38f   : > { %4917 = vst.msk [vmem:[#allocation3 + $0x54] sm:$0xf] %vm4895_vm10, %v4842_v7 }
 0x391   : > { %v4844_v33 = vpop.permute.xlu0 %4843 }
 0x392   : > { %4918 = vst.msk [vmem:[#allocation3 + $0x58] sm:$0xf] %vm4895_vm10, %v4844_v33 }
 0x395   : > { %v4846_v28 = vpop.permute.xlu1 %4845 }
 0x396   : > { %v6112_v6 = vld [vmem:[#allocation3 + $0x50] sm:$0xff]   ;;  %4919 = vst.msk [vmem:[#allocation3 + $0x5c] sm:$0xf] %vm4895_vm10, %v4846_v28 }
 0x397   : > { %6018 = vmatprep.mubr.msk.bf16.mxu1 %vm5063_vm11, %v6112_v6 }
 0x399   : > { %v4848_v60 = vpop.permute.xlu0 %4847 }
 0x39a   : > { %4920 = vst.msk [vmem:[#allocation3 + $0x60] sm:$0xf] %vm4895_vm10, %v4848_v60 }
 0x39d   : > { %v6113_v26 = vld [vmem:[#allocation3 + $0x58] sm:$0xff]  }
 0x39e   : > { %6019 = vmatmul.mubr.msk.bf16.gmra.mxu1 %vm5063_vm11, %v6113_v26 }
 0x3a5   : > { %v4850_v34 = vpop.permute.xlu1 %4849 }
 0x3a6   : > { %4921 = vst.msk [vmem:[#allocation3 + $0x64] sm:$0xf] %vm4895_vm10, %v4850_v34  ;;  %v4852_v40 = vpop.permute.xlu0 %4851 }
 0x3a7   : > { %4922 = vst.msk [vmem:[#allocation3 + $0x68] sm:$0xf] %vm4895_vm10, %v4852_v40 }
 0x3a9   : > { %v4854_v8 = vpop.permute.xlu1 %4853 }
 0x3aa   : > { %4923 = vst.msk [vmem:[#allocation3 + $0x6c] sm:$0xf] %vm4895_vm10, %v4854_v8 }
 0x3ad   : > { %v6114_v59 = vld [vmem:[#allocation3 + $0x60] sm:$0xff]  }
 0x3ae   : > { %6022 = vmatprep.mubr.msk.bf16.mxu1 %vm5063_vm11, %v6114_v59 }
 0x3af   : > { %v4856_v63 = vpop.permute.xlu0 %4855 }
 0x3b0   : > { %4924 = vst.msk [vmem:[#allocation3 + $0x70] sm:$0xf] %vm4895_vm10, %v4856_v63 }
 0x3b1   : > { %v6115_v31 = vld [vmem:[#allocation3 + $0x68] sm:$0xff]  }
 0x3b2   : > { %6023 = vmatmul.mubr.msk.bf16.gmra.mxu1 %vm5063_vm11, %v6115_v31 }
 0x3b6   : > { %v4858_v37 = vpop.permute.xlu1 %4857 }
 0x3b7   : > { %4925 = vst.msk [vmem:[#allocation3 + $0x74] sm:$0xf] %vm4895_vm10, %v4858_v37 }
 0x3b9   : > { %v4860_v15 = vpop.permute.xlu0 %4859 }
 0x3ba   : > { %4926 = vst.msk [vmem:[#allocation3 + $0x78] sm:$0xf] %vm4895_vm10, %v4860_v15 }
 0x3be   : > { %v6116_v22 = vld [vmem:[#allocation3 + $0x70] sm:$0xff]  }
 0x3bf   : > { %v4862_v42 = vpop.permute.xlu1 %4861  ;;  %6026 = vmatprep.mubr.msk.bf16.mxu1 %vm5063_vm11, %v6116_v22 }
 0x3c0   : > { %4927 = vst.msk [vmem:[#allocation3 + $0x7c] sm:$0xf] %vm4895_vm10, %v4862_v42 }
 0x3c7   : > { %v6117_v3 = vld [vmem:[#allocation3 + $0x78] sm:$0xff]  }
 0x3c8   : > { %6027 = vmatmul.mubr.msk.bf16.gmra.mxu1 %vm5063_vm11, %v6117_v3 }
 0x3f6   : > { %v6000_v47 = vpop.f32.mrf.mxu1 }
 0x3f7   : > { %v8812_v48 = vadd.f32 %v6000_v47, %v8809_v17 }
 0x3f8   : > { %v5146_v19 = vpop.f32.mrf.mxu1 }
 0x3f9   : > { %v5275_v25 = vsub.f32 0.0, %v8812_v48  ;;  %v8816_v45 = vadd.f32 %v8809_v17, %v5146_v19 }
 0x3fa   : > { %v6001_v57 = vpop.f32.mrf.mxu1 }
 0x3fb   : > { %v5309_v46 = vmul.f32 1.442695, %v5275_v25  ;;  %v5273_v27 = vsub.f32 0.0, %v8816_v45  ;;  %v8820_v53 = vadd.f32 %v6001_v57, %v8809_v17 }
 0x3fc   : > { %v5149_v24 = vpop.f32.mrf.mxu1 }
 0x3fd   : > { %6246 = vpow2.f32 %v5309_v46  ;;  %v5305_v2 = vmul.f32 1.442695, %v5273_v27  ;;  %v5276_v18 = vsub.f32 0.0, %v8820_v53  ;;  %v8824_v4 = vadd.f32 %v8809_v17, %v5149_v24 }
 0x3fe   : > { %v6004_v54 = vpop.f32.mrf.mxu1 }
 0x3ff   : > { %6248 = vpow2.f32 %v5305_v2  ;;  %v5311_v32 = vmul.f32 1.442695, %v5276_v18  ;;  %v5274_v35 = vsub.f32 0.0, %v8824_v4  ;;  %v8828_v62 = vadd.f32 %v6004_v54, %v8809_v17 }
 0x400   : > { %v5162_v36 = vpop.f32.mrf.mxu1 }
 0x401   : > { %6250 = vpow2.f32 %v5311_v32  ;;  %v5307_v9 = vmul.f32 1.442695, %v5274_v35  ;;  %v5279_v43 = vsub.f32 0.0, %v8828_v62  ;;  %v8832_v5 = vadd.f32 %v8809_v17, %v5162_v36 }
 0x402   : > { %v6005_v0 = vpop.f32.mrf.mxu1 }
 0x403   : > { %6252 = vpow2.f32 %v5307_v9  ;;  %v5317_v10 = vmul.f32 1.442695, %v5279_v43  ;;  %v5277_v30 = vsub.f32 0.0, %v8832_v5  ;;  %v8836_v29 = vadd.f32 %v6005_v0, %v8809_v17 }
 0x404   : > { %v5165_v50 = vpop.f32.mrf.mxu1 }
 0x405   : > { %6254 = vpow2.f32 %v5317_v10  ;;  %v5313_v41 = vmul.f32 1.442695, %v5277_v30  ;;  %v5280_v44 = vsub.f32 0.0, %v8836_v29  ;;  %v8840_v16 = vadd.f32 %v8809_v17, %v5165_v50 }
 0x407   : > { %6256 = vpow2.f32 %v5313_v41  ;;  %v5319_v39 = vmul.f32 1.442695, %v5280_v44  ;;  %v5278_v14 = vsub.f32 0.0, %v8840_v16 }
 0x409   : > { %v6008_v58 = vpop.f32.mrf.mxu1  ;;  %6258 = vpow2.f32 %v5319_v39  ;;  %v5315_v55 = vmul.f32 1.442695, %v5278_v14 }
 0x40a   : > { %v8844_v52 = vadd.f32 %v6008_v58, %v8809_v17  ;;  %v6247_v20 = vpop.eup %6246 }
 0x40b   : > { %v5178_v1 = vpop.f32.mrf.mxu1  ;;  %v5371_v13 = vadd.f32 1.0, %v6247_v20  ;;  %6260 = vpow2.f32 %v5315_v55 }
 0x40c   : > { %v5283_v11 = vsub.f32 0.0, %v8844_v52  ;;  %v8848_v49 = vadd.f32 %v8809_v17, %v5178_v1  ;;  %v6249_v21 = vpop.eup %6248 }
 0x40d   : > { %v6009_v12 = vpop.f32.mrf.mxu1  ;;  %6262 = vrcp.f32 %v5371_v13  ;;  %v5369_v23 = vadd.f32 1.0, %v6249_v21 }
 0x40e   : > { %v5325_v56 = vmul.f32 1.442695, %v5283_v11  ;;  %v5281_v61 = vsub.f32 0.0, %v8848_v49  ;;  %v8852_v38 = vadd.f32 %v6009_v12, %v8809_v17  ;;  %v6251_v28 = vpop.eup %6250 }
 0x40f   : > { %v5181_v51 = vpop.f32.mrf.mxu1  ;;  %v5372_v60 = vadd.f32 1.0, %v6251_v28 }
 0x410   : > { %v5321_v7 = vmul.f32 1.442695, %v5281_v61  ;;  %v8855_v33 = vadd.f32 %v8809_v17, %v5181_v51  ;;  %6264 = vpow2.f32 %v5325_v56  ;;  %v5284_v6 = vsub.f32 0.0, %v8852_v38  ;;  %v6253_v34 = vpop.eup %6252 }
 0x411   : > { %6266 = vrcp.f32 %v5369_v23  ;;  %v5370_v8 = vadd.f32 1.0, %v6253_v34 }
 0x412   : > { %v5282_v26 = vsub.f32 0.0, %v8855_v33  ;;  %6268 = vpow2.f32 %v5321_v7  ;;  %v5327_v40 = vmul.f32 1.442695, %v5284_v6  ;;  %v6255_v63 = vpop.eup %6254 }
 0x413   : > { %6270 = vrcp.f32 %v5372_v60  ;;  %v5375_v31 = vadd.f32 1.0, %v6255_v63 }
 0x414   : > { %v5323_v59 = vmul.f32 1.442695, %v5282_v26  ;;  %6272 = vpow2.f32 %v5327_v40  ;;  %v6257_v37 = vpop.eup %6256 }
 0x415   : > { %6274 = vrcp.f32 %v5370_v8  ;;  %v5373_v15 = vadd.f32 1.0, %v6257_v37 }
 0x416   : > { %6276 = vpow2.f32 %v5323_v59  ;;  %v6259_v22 = vpop.eup %6258 }
 0x417   : > { %6278 = vrcp.f32 %v5375_v31  ;;  %v5376_v42 = vadd.f32 1.0, %v6259_v22 }
 0x418   : > { %6280 = vrcp.f32 %v5373_v15  ;;  %v6261_v3 = vpop.eup %6260 }
 0x419   : > { %6282 = vrcp.f32 %v5376_v42  ;;  %v5374_v47 = vadd.f32 1.0, %v6261_v3 }
 0x41a   : > { %v6263_v19 = vpop.eup %6262 }
 0x41b   : > { %v5435_v57 = vmul.f32 %v6263_v19, %v8812_v48  ;;  %6284 = vrcp.f32 %v5374_v47 }
 0x41d   : > { %v6265_v25 = vpop.eup %6264  ;;  %5467 = vst.msk [vmem:[%s8861_s28 + $0x10] sm:$0xff] %vm371_vm0, %v5435_v57 }
 0x41e   : > { %v6267_v46 = vpop.eup %6266  ;;  %v5379_v27 = vadd.f32 1.0, %v6265_v25 }
 0x41f   : > { %v6269_v24 = vpop.eup %6268  ;;  %v5433_v2 = vmul.f32 %v6267_v46, %v8816_v45 }
 0x420   : > { %v6271_v18 = vpop.eup %6270  ;;  %6286 = vrcp.f32 %v5379_v27  ;;  %v5377_v54 = vadd.f32 1.0, %v6269_v24 }
 0x421   : > { %v6273_v32 = vpop.eup %6272  ;;  %5465 = vst.msk [vmem:[%s8861_s28] sm:$0xff] %vm371_vm0, %v5433_v2  ;;  %v5436_v48 = vmul.f32 %v6271_v18, %v8820_v53 }
 0x422   : > { %v6275_v35 = vpop.eup %6274  ;;  %6288 = vrcp.f32 %v5377_v54  ;;  %v5380_v36 = vadd.f32 1.0, %v6273_v32 }
 0x423   : > { %v6277_v9 = vpop.eup %6276  ;;  %5468 = vst.msk [vmem:[%s8861_s28 + $0x18] sm:$0xff] %vm371_vm0, %v5436_v48  ;;  %v5434_v45 = vmul.f32 %v6275_v35, %v8824_v4 }
 0x424   : > { %v6279_v43 = vpop.eup %6278  ;;  %6290 = vrcp.f32 %v5380_v36  ;;  %v5378_v0 = vadd.f32 1.0, %v6277_v9 }
 0x425   : > { %5466 = vst.msk [vmem:[%s8861_s28 + $0x8] sm:$0xff] %vm371_vm0, %v5434_v45  ;;  %v5439_v10 = vmul.f32 %v6279_v43, %v8828_v62  ;;  %v6281_v30 = vpop.eup %6280 }
 0x426   : > { %6292 = vrcp.f32 %v5378_v0  ;;  %v5437_v53 = vmul.f32 %v6281_v30, %v8832_v5  ;;  %v6283_v50 = vpop.eup %6282 }
 0x427   : > { %5471 = vst.msk [vmem:[%s8861_s28 + $0x30] sm:$0xff] %vm371_vm0, %v5439_v10  ;;  %v5440_v41 = vmul.f32 %v6283_v50, %v8836_v29 }
 0x428   : > { %5469 = vst.msk [vmem:[%s8861_s28 + $0x20] sm:$0xff] %vm371_vm0, %v5437_v53  ;;  %v6285_v4 = vpop.eup %6284 }
 0x429   : > { %5472 = vst.msk [vmem:[%s8861_s28 + $0x38] sm:$0xff] %vm371_vm0, %v5440_v41  ;;  %v5438_v58 = vmul.f32 %v6285_v4, %v8840_v16 }
 0x42b   : > { %5470 = vst.msk [vmem:[%s8861_s28 + $0x28] sm:$0xff] %vm371_vm0, %v5438_v58 }
 0x42d   : > { %v6287_v14 = vpop.eup %6286 }
 0x42e   : > { %v5443_v29 = vmul.f32 %v6287_v14, %v8844_v52 }
 0x42f   : > { %v6289_v11 = vpop.eup %6288 }
 0x430   : > { %5475 = vst.msk [vmem:[%s8861_s28 + $0x50] sm:$0xff] %vm371_vm0, %v5443_v29  ;;  %v5441_v13 = vmul.f32 %v6289_v11, %v8848_v49 }
 0x431   : > { %v6291_v61 = vpop.eup %6290 }
 0x432   : > { %5473 = vst.msk [vmem:[%s8861_s28 + $0x40] sm:$0xff] %vm371_vm0, %v5441_v13  ;;  %v5444_v23 = vmul.f32 %v6291_v61, %v8852_v38 }
 0x433   : > { %v6012_v44 = vpop.f32.mrf.mxu1  ;;  %v6293_v7 = vpop.eup %6292 }
 0x434   : > { %v8885_v62 = vadd.f32 %v6012_v44, %v8809_v17  ;;  %5476 = vst.msk [vmem:[%s8861_s28 + $0x58] sm:$0xff] %vm371_vm0, %v5444_v23  ;;  %v5442_v49 = vmul.f32 %v6293_v7, %v8855_v33 }
 0x435   : > { %v5194_v39 = vpop.f32.mrf.mxu1 }
 0x436   : > { %v5287_v5 = vsub.f32 0.0, %v8885_v62  ;;  %v8891_v1 = vadd.f32 %v8809_v17, %v5194_v39  ;;  %5474 = vst.msk [vmem:[%s8861_s28 + $0x48] sm:$0xff] %vm371_vm0, %v5442_v49 }
 0x437   : > { %v6013_v55 = vpop.f32.mrf.mxu1 }
 0x438   : > { %v5333_v20 = vmul.f32 1.442695, %v5287_v5  ;;  %v5285_v16 = vsub.f32 0.0, %v8891_v1  ;;  %v5206_v12 = vadd.f32 %v6013_v55, %v8809_v17 }
 0x439   : > { %v5197_v56 = vpop.f32.mrf.mxu1 }
 0x43a   : > { %6294 = vpow2.f32 %v5333_v20  ;;  %v5329_v21 = vmul.f32 1.442695, %v5285_v16  ;;  %v5288_v51 = vsub.f32 0.0, %v5206_v12  ;;  %v5198_v52 = vadd.f32 %v8809_v17, %v5197_v56 }
 0x43c   : > { %6296 = vpow2.f32 %v5329_v21  ;;  %v5335_v28 = vmul.f32 1.442695, %v5288_v51  ;;  %v5286_v6 = vsub.f32 0.0, %v5198_v52 }
 0x43e   : > { %6298 = vpow2.f32 %v5335_v28  ;;  %v5331_v60 = vmul.f32 1.442695, %v5286_v6 }
 0x440   : > { %6300 = vpow2.f32 %v5331_v60 }
 0x447   : > { %v6295_v26 = vpop.eup %6294 }
 0x448   : > { %v5383_v34 = vadd.f32 1.0, %v6295_v26 }
 0x449   : > { %v6297_v40 = vpop.eup %6296  ;;  %v6016_v59 = vpop.f32.mrf.mxu1 }
 0x44a   : > { %6302 = vrcp.f32 %v5383_v34  ;;  %v5381_v8 = vadd.f32 1.0, %v6297_v40  ;;  %v8909_v63 = vadd.f32 %v6016_v59, %v8809_v17 }
 0x44b   : > { %v6299_v38 = vpop.eup %6298  ;;  %v5210_v37 = vpop.f32.mrf.mxu1 }
 0x44c   : > { %6304 = vrcp.f32 %v5381_v8  ;;  %v5384_v31 = vadd.f32 1.0, %v6299_v38  ;;  %v5291_v33 = vsub.f32 0.0, %v8909_v63  ;;  %v8913_v22 = vadd.f32 %v8809_v17, %v5210_v37 }
 0x44d   : > { %v6301_v15 = vpop.eup %6300  ;;  %v6017_v3 = vpop.f32.mrf.mxu1 }
 0x44e   : > { %6306 = vrcp.f32 %v5384_v31  ;;  %v5382_v42 = vadd.f32 1.0, %v6301_v15  ;;  %v5341_v47 = vmul.f32 1.442695, %v5291_v33  ;;  %v5289_v19 = vsub.f32 0.0, %v8913_v22 }
 0x44f   : > { %v8917_v25 = vadd.f32 %v6017_v3, %v8809_v17  ;;  %v5213_v57 = vpop.f32.mrf.mxu1 }
 0x450   : > { %6308 = vrcp.f32 %v5382_v42  ;;  %v5337_v46 = vmul.f32 1.442695, %v5289_v19  ;;  %v8921_v24 = vadd.f32 %v8809_v17, %v5213_v57 }
 0x451   : > { %6310 = vpow2.f32 %v5341_v47  ;;  %v5292_v27 = vsub.f32 0.0, %v8917_v25 }
 0x452   : > { %6312 = vpow2.f32 %v5337_v46  ;;  %v5290_v18 = vsub.f32 0.0, %v8921_v24 }
 0x453   : > { %v5343_v2 = vmul.f32 1.442695, %v5292_v27 }
 0x454   : > { %v5339_v54 = vmul.f32 1.442695, %v5290_v18 }
 0x455   : > { %6314 = vpow2.f32 %v5343_v2 }
 0x456   : > { %6316 = vpow2.f32 %v5339_v54 }
 0x457   : > { %v6303_v32 = vpop.eup %6302 }
 0x458   : > { %v5447_v48 = vmul.f32 %v6303_v32, %v8885_v62 }
 0x459   : > { %v6305_v35 = vpop.eup %6304 }
 0x45a   : > { %5479 = vst.msk [vmem:[%s8861_s28 + $0x70] sm:$0xff] %vm371_vm0, %v5447_v48  ;;  %v5445_v36 = vmul.f32 %v6305_v35, %v8891_v1 }
 0x45b   : > { %v6307_v9 = vpop.eup %6306 }
 0x45c   : > { %5477 = vst.msk [vmem:[%s8861_s28 + $0x60] sm:$0xff] %vm371_vm0, %v5445_v36  ;;  %v5448_v45 = vmul.f32 %v6307_v9, %v5206_v12 }
 0x45d   : > { %v6309_v43 = vpop.eup %6308 }
 0x45e   : > { %v6311_v0 = vpop.eup %6310  ;;  %5480 = vst.msk [vmem:[%s8861_s28 + $0x78] sm:$0xff] %vm371_vm0, %v5448_v45  ;;  %v5446_v10 = vmul.f32 %v6309_v43, %v5198_v52  ;;  %v6020_v53 = vpop.f32.mrf.mxu1 }
 0x45f   : > { %v5387_v30 = vadd.f32 1.0, %v6311_v0  ;;  %v6313_v50 = vpop.eup %6312  ;;  %v8935_v41 = vadd.f32 %v6020_v53, %v8809_v17 }
 0x460   : > { %5478 = vst.msk [vmem:[%s8861_s28 + $0x68] sm:$0xff] %vm371_vm0, %v5446_v10  ;;  %v5385_v4 = vadd.f32 1.0, %v6313_v50  ;;  %v5226_v44 = vpop.f32.mrf.mxu1 }
 0x461   : > { %6318 = vrcp.f32 %v5387_v30  ;;  %v5295_v62 = vsub.f32 0.0, %v8935_v41  ;;  %v8939_v39 = vadd.f32 %v8809_v17, %v5226_v44 }
 0x462   : > { %v6315_v58 = vpop.eup %6314  ;;  %6320 = vrcp.f32 %v5385_v4  ;;  %v6021_v5 = vpop.f32.mrf.mxu1 }
 0x463   : > { %v5388_v14 = vadd.f32 1.0, %v6315_v58  ;;  %v6317_v1 = vpop.eup %6316  ;;  %v5349_v29 = vmul.f32 1.442695, %v5295_v62  ;;  %v5293_v55 = vsub.f32 0.0, %v8939_v39  ;;  %v8943_v11 = vadd.f32 %v6021_v5, %v8809_v17 }
 0x464   : > { %v5386_v20 = vadd.f32 1.0, %v6317_v1  ;;  %v5229_v16 = vpop.f32.mrf.mxu1 }
 0x465   : > { %6322 = vrcp.f32 %v5388_v14  ;;  %v5345_v12 = vmul.f32 1.442695, %v5293_v55  ;;  %v5296_v13 = vsub.f32 0.0, %v8943_v11  ;;  %v8947_v56 = vadd.f32 %v8809_v17, %v5229_v16 }
 0x466   : > { %6324 = vpow2.f32 %v5349_v29 }
 0x467   : > { %6326 = vrcp.f32 %v5386_v20  ;;  %v5351_v61 = vmul.f32 1.442695, %v5296_v13  ;;  %v5294_v21 = vsub.f32 0.0, %v8947_v56 }
 0x468   : > { %6328 = vpow2.f32 %v5345_v12 }
 0x469   : > { %6330 = vpow2.f32 %v5351_v61  ;;  %v5347_v51 = vmul.f32 1.442695, %v5294_v21 }
 0x46b   : > { %6332 = vpow2.f32 %v5347_v51 }
 0x46e   : > { %v6319_v52 = vpop.eup %6318 }
 0x46f   : > { %v5451_v23 = vmul.f32 %v6319_v52, %v8909_v63  ;;  %v6321_v7 = vpop.eup %6320 }
 0x470   : > { %v5449_v28 = vmul.f32 %v6321_v7, %v8913_v22 }
 0x471   : > { %5483 = vst.msk [vmem:[%s8861_s28 + $0x90] sm:$0xff] %vm371_vm0, %v5451_v23 }
 0x472   : > { %v6323_v6 = vpop.eup %6322  ;;  %5481 = vst.msk [vmem:[%s8861_s28 + $0x80] sm:$0xff] %vm371_vm0, %v5449_v28  ;;  %v6024_v26 = vpop.f32.mrf.mxu1 }
 0x473   : > { %v6325_v49 = vpop.eup %6324  ;;  %v5452_v60 = vmul.f32 %v6323_v6, %v8917_v25  ;;  %v8958_v8 = vadd.f32 %v6024_v26, %v8809_v17 }
 0x474   : > { %v6327_v34 = vpop.eup %6326  ;;  %v5391_v40 = vadd.f32 1.0, %v6325_v49  ;;  %v5242_v63 = vpop.f32.mrf.mxu1 }
 0x475   : > { %v6329_v59 = vpop.eup %6328  ;;  %5484 = vst.msk [vmem:[%s8861_s28 + $0x98] sm:$0xff] %vm371_vm0, %v5452_v60  ;;  %v5450_v38 = vmul.f32 %v6327_v34, %v8921_v24  ;;  %v5299_v37 = vsub.f32 0.0, %v8958_v8  ;;  %v8965_v15 = vadd.f32 %v8809_v17, %v5242_v63 }
 0x476   : > { %6334 = vrcp.f32 %v5391_v40  ;;  %v5389_v31 = vadd.f32 1.0, %v6329_v59  ;;  %v6331_v33 = vpop.eup %6330  ;;  %v6025_v22 = vpop.f32.mrf.mxu1 }
 0x477   : > { %5482 = vst.msk [vmem:[%s8861_s28 + $0x88] sm:$0xff] %vm371_vm0, %v5450_v38  ;;  %v5392_v42 = vadd.f32 1.0, %v6331_v33  ;;  %v5357_v3 = vmul.f32 1.442695, %v5299_v37  ;;  %v5297_v47 = vsub.f32 0.0, %v8965_v15  ;;  %v8971_v25 = vadd.f32 %v6025_v22, %v8809_v17 }
 0x478   : > { %6336 = vrcp.f32 %v5389_v31  ;;  %v6333_v19 = vpop.eup %6332  ;;  %v5245_v57 = vpop.f32.mrf.mxu1 }
 0x479   : > { %6338 = vrcp.f32 %v5392_v42  ;;  %v5390_v46 = vadd.f32 1.0, %v6333_v19  ;;  %v5353_v27 = vmul.f32 1.442695, %v5297_v47  ;;  %v8974_v24 = vadd.f32 %v8809_v17, %v5245_v57 }
 0x47a   : > { %6340 = vpow2.f32 %v5357_v3  ;;  %v5300_v2 = vsub.f32 0.0, %v8971_v25 }
 0x47b   : > { %6342 = vrcp.f32 %v5390_v46  ;;  %v5298_v18 = vsub.f32 0.0, %v8974_v24 }
 0x47c   : > { %6344 = vpow2.f32 %v5353_v27  ;;  %v5359_v54 = vmul.f32 1.442695, %v5300_v2 }
 0x47d   : > { %v5355_v32 = vmul.f32 1.442695, %v5298_v18 }
 0x47e   : > { %6346 = vpow2.f32 %v5359_v54 }
 0x47f   : > { %6348 = vpow2.f32 %v5355_v32 }
 0x483   : > { %v6335_v48 = vpop.eup %6334 }
 0x484   : > { %v5455_v35 = vmul.f32 %v6335_v48, %v8935_v41 }
 0x485   : > { %v6337_v36 = vpop.eup %6336 }
 0x486   : > { %5487 = vst.msk [vmem:[%s8861_s28 + $0xb0] sm:$0xff] %vm371_vm0, %v5455_v35  ;;  %v5453_v9 = vmul.f32 %v6337_v36, %v8939_v39  ;;  %v6339_v45 = vpop.eup %6338 }
 0x487   : > { %v6341_v43 = vpop.eup %6340  ;;  %v5456_v0 = vmul.f32 %v6339_v45, %v8943_v11 }
 0x488   : > { %5485 = vst.msk [vmem:[%s8861_s28 + $0xa0] sm:$0xff] %vm371_vm0, %v5453_v9  ;;  %v6343_v10 = vpop.eup %6342  ;;  %v5395_v30 = vadd.f32 1.0, %v6341_v43  ;;  %v6028_v41 = vpop.f32.mrf.mxu1 }
 0x489   : > { %v6345_v53 = vpop.eup %6344  ;;  %5488 = vst.msk [vmem:[%s8861_s28 + $0xb8] sm:$0xff] %vm371_vm0, %v5456_v0  ;;  %v5454_v50 = vmul.f32 %v6343_v10, %v8947_v56  ;;  %v5267_v44 = vadd.f32 %v6028_v41, %v8809_v17 }
 0x48a   : > { %6350 = vrcp.f32 %v5395_v30  ;;  %v5393_v4 = vadd.f32 1.0, %v6345_v53  ;;  %v5258_v62 = vpop.f32.mrf.mxu1 }
 0x48b   : > { %v6347_v58 = vpop.eup %6346  ;;  %5486 = vst.msk [vmem:[%s8861_s28 + $0xa8] sm:$0xff] %vm371_vm0, %v5454_v50  ;;  %v5303_v5 = vsub.f32 0.0, %v5267_v44  ;;  %v5259_v1 = vadd.f32 %v8809_v17, %v5258_v62 }
 0x48c   : > { %v6349_v39 = vpop.eup %6348  ;;  %6352 = vrcp.f32 %v5393_v4  ;;  %v5396_v14 = vadd.f32 1.0, %v6347_v58  ;;  %v6029_v55 = vpop.f32.mrf.mxu1 }
 0x48d   : > { %v5394_v29 = vadd.f32 1.0, %v6349_v39  ;;  %v5365_v11 = vmul.f32 1.442695, %v5303_v5  ;;  %v5301_v20 = vsub.f32 0.0, %v5259_v1  ;;  %v5270_v16 = vadd.f32 %v6029_v55, %v8809_v17 }
 0x48e   : > { %6354 = vrcp.f32 %v5396_v14  ;;  %v5261_v12 = vpop.f32.mrf.mxu1 }
 0x48f   : > { %6356 = vrcp.f32 %v5394_v29  ;;  %v5361_v13 = vmul.f32 1.442695, %v5301_v20  ;;  %v5304_v56 = vsub.f32 0.0, %v5270_v16  ;;  %v5262_v61 = vadd.f32 %v8809_v17, %v5261_v12 }
 0x490   : > { %6358 = vpow2.f32 %v5365_v11 }
 0x491   : > { %6360 = vpow2.f32 %v5361_v13  ;;  %v5367_v21 = vmul.f32 1.442695, %v5304_v56  ;;  %v5302_v51 = vsub.f32 0.0, %v5262_v61 }
 0x493   : > { %6362 = vpow2.f32 %v5367_v21  ;;  %v5363_v52 = vmul.f32 1.442695, %v5302_v51 }
 0x495   : > { %6364 = vpow2.f32 %v5363_v52 }
 0x497   : > { %v6351_v23 = vpop.eup %6350 }
 0x498   : > { %v5459_v7 = vmul.f32 %v6351_v23, %v8958_v8 }
 0x499   : > { %v6353_v28 = vpop.eup %6352 }
 0x49a   : > { %5491 = vst.msk [vmem:[%s8861_s28 + $0xd0] sm:$0xff] %vm371_vm0, %v5459_v7  ;;  %v5457_v6 = vmul.f32 %v6353_v28, %v8965_v15 }
 0x49b   : > { %v6355_v49 = vpop.eup %6354 }
 0x49c   : > { %v6357_v60 = vpop.eup %6356  ;;  %5489 = vst.msk [vmem:[%s8861_s28 + $0xc0] sm:$0xff] %vm371_vm0, %v5457_v6  ;;  %v5460_v17 = vmul.f32 %v6355_v49, %v8971_v25 }
 0x49d   : > { %v6359_v26 = vpop.eup %6358  ;;  %v5458_v34 = vmul.f32 %v6357_v60, %v8974_v24 }
 0x49e   : > { %5492 = vst.msk [vmem:[%s8861_s28 + $0xd8] sm:$0xff] %vm371_vm0, %v5460_v17  ;;  %v5399_v40 = vadd.f32 1.0, %v6359_v26  ;;  %v6361_v59 = vpop.eup %6360 }
 0x49f   : > { %5490 = vst.msk [vmem:[%s8861_s28 + $0xc8] sm:$0xff] %vm371_vm0, %v5458_v34  ;;  %v5397_v8 = vadd.f32 1.0, %v6361_v59 }
 0x4a0   : > { %6366 = vrcp.f32 %v5399_v40  ;;  %v6363_v38 = vpop.eup %6362 }
 0x4a1   : > { %6368 = vrcp.f32 %v5397_v8  ;;  %v5400_v63 = vadd.f32 1.0, %v6363_v38 }
 0x4a2   : > { %v6365_v31 = vpop.eup %6364 }
 0x4a3   : > { %6370 = vrcp.f32 %v5400_v63  ;;  %v5398_v37 = vadd.f32 1.0, %v6365_v31 }
 0x4a5   : > { %6372 = vrcp.f32 %v5398_v37 }
 0x4ad   : > { %v6367_v15 = vpop.eup %6366 }
 0x4ae   : > { %v5463_v33 = vmul.f32 %v6367_v15, %v5267_v44  ;;  %v6369_v22 = vpop.eup %6368 }
 0x4af   : > { %v5461_v42 = vmul.f32 %v6369_v22, %v5259_v1 }
 0x4b0   : > { %5495 = vst.msk [vmem:[%s8861_s28 + $0xf0] sm:$0xff] %vm371_vm0, %v5463_v33  ;;  %v6371_v3 = vpop.eup %6370 }
 0x4b1   : > { %5493 = vst.msk [vmem:[%s8861_s28 + $0xe0] sm:$0xff] %vm371_vm0, %v5461_v42  ;;  %v5464_v47 = vmul.f32 %v6371_v3, %v5270_v16 }
 0x4b2   : > { %v6373_v19 = vpop.eup %6372 }
 0x4b3   : > { %5496 = vst.msk [vmem:[%s8861_s28 + $0xf8] sm:$0xff] %vm371_vm0, %v5464_v47  ;;  %v5462_v25 = vmul.f32 %v6373_v19, %v5262_v61 }
 0x4b5   : > { %5494 = vst.msk [vmem:[%s8861_s28 + $0xe8] sm:$0xff] %vm371_vm0, %v5462_v25 }
 0x4b6   : > { %6417 = shalt.err (!%p6414_p10)
}
 0x4b7   : > { %s6418_s13 = scalar_lea.hbm %s9015_s8, 4096  ;;  %s6422_s26 = scalar_lea.hbm %s9070_s5, 8192 }
 0x4b8   : > { %p6419_p0 = scmp.ne.s32.totalorder %s9015_s8, %s6418_s13  ;;  %p6423_p1 = scmp.lt.s32.totalorder %s9015_s8, %s9070_s5 }
 0x4b9   : > { %p6424_p3 = scmp.lt.s32.totalorder %s6422_s26, %s6418_s13 }
 0x4ba   : > { %p6420_p2 = pnand %p6419_p0, %p9079_p12 }
 0x4bb   : > { %p6425_p6 = por %p6424_p3, %p6423_p1 }
 0x4bc   : > { %p6421_p9 = pneg %p6420_p2 }
 0x4be   : > { %p6426_p11 = pnand %p6425_p6, %p6421_p9 }
 0x4c0   : > { %6429 = shalt.err (!%p6426_p11)
}
 0x4c1   : > { %s6478_s29 = smov 128  }
 0x4c2   : > { %6032 = dma.vmem_to_hbm [thread:$0]  (%p9079_p12), %s9019_s14, 4096, %s9015_s8, %s5498_s22, %s6478_s29, %s6478_s29, %s6474_s16  }
 0x4c3 PF: > { %s5526_s15 = sand.u32 1, %s6456_s18   ;;  %p9080_p13 = scmp.ne.s32.totalorder %s9076_s6, 0 }
 0x4c4   : > { %p9081_p4 = scmp.ge.s32.totalorder %s6468_s21, 2  ;;  %s5527_s7 = scalar_lea.sflag [#allocation6], %s5526_s15 }
 0x4c6   : > { %p6039_p5 = pnand %p9081_p4, %p9080_p13 }
 0x4c8   : > { %p6040_p7 = pneg %p6039_p5 }
 0x4ca   : > { %6451 = dma.done.wait (%p6040_p7), %s5527_s7, 4096  }
 0x4cb   : > { %6453 = vsyncadd (%p6040_p7), %s5527_s7, 4294963200  ;;  %p18_p8 = scmp.ge.s32.totalorder %s6534_s24, 4   ;;  %s9082_s18 = smov %s6460_s19 }
 0x4cc   : > { %s9083_s19 = smov %s6464_s20  ;;  %s9084_s20 = smov %s6546_s27 }
 0x4cd   : > { %s9085_s21 = smov %s6534_s24  ;;  %20 = sbr.rel (!%p18_p8) target bundleno = 5 (0x5), region = 90 }
 0x4d2   :  { %5532 = vsyncpa [#allocation5], 1 }
 0x4d3   :  { %5534 = vsyncpa [#allocation5 + $0x1], 1 }
 0x4d4   :  { %5535 = vsyncpa [#allocation6], 1 }
 0x4d5   :  { %5537 = vsyncpa [#allocation6 + $0x1], 1 }

</bundles_post_ra>
